<compile_context>
chip_gen: v6e
topology: v6e:2x2x1
jax: 0.10.0
libtpu: 0.0.40
codegen_flags: <defaults>
</compile_context>

<pallas_src>
import functools
import math

import jax
import jax.numpy as jnp
from jax.experimental import pallas as pl
from jax.experimental.pallas import tpu as pltpu


# --------------------------------------------------------------------------
# ImageBind stub: enc = audio_feat @ W + b + pos  (pos broadcast in-kernel, not tiled)
# --------------------------------------------------------------------------

def _ib_stub_kernel(x_ref, w_ref, b_ref, pos_ref, o_ref, *, B, T):
    y = jnp.dot(x_ref[...], w_ref[...], preferred_element_type=jnp.float32)
    y = y + b_ref[...]
    pos = pos_ref[...].astype(jnp.float32)           # (T, E), shared across batch
    for b in range(B):                                # static sublane-aligned row slices
        o_ref[b * T:(b + 1) * T, :] = (y[b * T:(b + 1) * T, :] + pos).astype(o_ref.dtype)


def imagebind_stub(feat, w, b, pos, *, B, T):
    """feat: (B*T, K) bf16, w: (K, E) bf16, b: (1, E) f32, pos: (T, E) bf16."""
    M, K = feat.shape
    E = w.shape[1]
    cost = pl.CostEstimate(flops=2 * M * K * E, transcendentals=0,
                           bytes_accessed=2 * (M * K + K * E + M * E))
    return pl.pallas_call(
        functools.partial(_ib_stub_kernel, B=B, T=T),
        out_shape=jax.ShapeDtypeStruct((M, E), jnp.bfloat16),
        grid=(1,),
        in_specs=[
            pl.BlockSpec((M, K), lambda i: (0, 0)),
            pl.BlockSpec((K, E), lambda i: (0, 0)),
            pl.BlockSpec((1, E), lambda i: (0, 0)),
            pl.BlockSpec((T, E), lambda i: (0, 0)),
        ],
        out_specs=pl.BlockSpec((M, E), lambda i: (0, 0)),
        compiler_params=pltpu.CompilerParams(dimension_semantics=("arbitrary",)),
        cost_estimate=cost,
    )(feat, w, b, pos)


# --------------------------------------------------------------------------
# Fused Q-Former stack: one pallas_call, layer index = grid axis
# --------------------------------------------------------------------------

def _ln_f32(x, g, b, eps):
    mu = jnp.mean(x, axis=-1, keepdims=True)
    var = jnp.mean((x - mu) ** 2, axis=-1, keepdims=True)
    return (x - mu) * jax.lax.rsqrt(var + eps) * g + b


def _attend(q2, k2, v2, ctx_ref, *, B, Sq, Skv, num_heads, scale):
    """q2: (B*Sq, H) bf16, k2/v2: (B*Skv, H) bf16.  Per (batch, head) block attention.
    Each head's output is stored directly into its lane-dense slice of ctx_ref
    (no concatenate / relayout).  frame_atts / attention_mask is all-ones in the
    reference forward, so no mask is applied."""
    H = q2.shape[-1]
    hd = H // num_heads
    for b in range(B):
        qrows = slice(b * Sq, (b + 1) * Sq)
        krows = slice(b * Skv, (b + 1) * Skv)
        for h in range(num_heads):
            cols = slice(h * hd, (h + 1) * hd)
            qh = q2[qrows, cols]
            kh = k2[krows, cols]
            vh = v2[krows, cols]
            s = jax.lax.dot_general(qh, kh, (((1,), (1,)), ((), ())),
                                    preferred_element_type=jnp.float32) * scale
            m = jnp.max(s, axis=-1, keepdims=True)
            p = jnp.exp(s - m)
            den = jnp.sum(p, axis=-1, keepdims=True)
            o = jnp.dot(p.astype(v2.dtype), vh, preferred_element_type=jnp.float32) / den
            ctx_ref[qrows, cols] = o.astype(ctx_ref.dtype)


def _qformer_stack_kernel(
        enc_ref, qtok_ref, emb_g_ref, emb_b_ref, proj_w_ref, proj_b_ref,
        qkv_w_ref, qkv_b_ref, so_w_ref, so_b_ref, sln_g_ref, sln_b_ref,
        cq_w_ref, cq_b_ref, ckv_w_ref, ckv_b_ref, co_w_ref, co_b_ref,
        cln_g_ref, cln_b_ref, w1_ref, b1_ref, w2_ref, b2_ref, fln_g_ref, fln_b_ref,
        out_ref, h_res_ref, ctx_ref, *, B, T, nq, num_heads, eps):
    l = pl.program_id(0)
    H = qtok_ref.shape[-1]
    hd = H // num_heads
    scale = 1.0 / math.sqrt(hd)

    # step 0: embeddings LayerNorm of the (batch-shared) query tokens -> f32 residual
    @pl.when(l == 0)
    def _init():
        q0 = _ln_f32(qtok_ref[...].astype(jnp.float32),
                     emb_g_ref[...], emb_b_ref[...], eps)
        for b in range(B):
            h_res_ref[b * nq:(b + 1) * nq, :] = q0

    h = h_res_ref[...]                                 # (B*nq, H) f32 residual stream
    hb = h.astype(jnp.bfloat16)

    # ---------------- self attention (fused QKV projection) -------------------
    qkv = jnp.dot(hb, qkv_w_ref[0], preferred_element_type=jnp.float32) + qkv_b_ref[0]
    qkv = qkv.astype(jnp.bfloat16)
    _attend(qkv[:, :H], qkv[:, H:2 * H], qkv[:, 2 * H:], ctx_ref,
            B=B, Sq=nq, Skv=nq, num_heads=num_heads, scale=scale)
    y = jnp.dot(ctx_ref[...], so_w_ref[0], preferred_element_type=jnp.float32)
    sa = _ln_f32(y + so_b_ref[0] + h, sln_g_ref[0], sln_b_ref[0], eps)

    # ---------------- cross attention to imagebind states (fused KV) ----------
    qc = (jnp.dot(sa.astype(jnp.bfloat16), cq_w_ref[0],
                  preferred_element_type=jnp.float32) + cq_b_ref[0]).astype(jnp.bfloat16)
    kv = (jnp.dot(enc_ref[...], ckv_w_ref[0],
                  preferred_element_type=jnp.float32) + ckv_b_ref[0]).astype(jnp.bfloat16)
    _attend(qc, kv[:, :H], kv[:, H:], ctx_ref,
            B=B, Sq=nq, Skv=T, num_heads=num_heads, scale=scale)
    y = jnp.dot(ctx_ref[...], co_w_ref[0], preferred_element_type=jnp.float32)
    ca = _ln_f32(y + co_b_ref[0] + sa, cln_g_ref[0], cln_b_ref[0], eps)

    # ---------------- query feed-forward --------------------------------------
    # TODO(synk): HF BERT uses exact erf GELU; tanh approximation is within the bf16
    # noise floor and guaranteed to lower on all TPU generations.
    f = jnp.dot(ca.astype(jnp.bfloat16), w1_ref[0],
                preferred_element_type=jnp.float32) + b1_ref[0]
    f = jax.nn.gelu(f, approximate=True).astype(jnp.bfloat16)
    y = jnp.dot(f, w2_ref[0], preferred_element_type=jnp.float32) + b2_ref[0] + ca
    h_new = _ln_f32(y, fln_g_ref[0], fln_b_ref[0], eps)
    h_res_ref[...] = h_new

    # last step: fused audio_proj, single lane-dense store of the final output
    @pl.when(l == pl.num_programs(0) - 1)
    def _final():
        p = jnp.dot(h_new.astype(jnp.bfloat16), proj_w_ref[...],
                    preferred_element_type=jnp.float32) + proj_b_ref[...]
        out_ref[...] = p.astype(out_ref.dtype)


def qformer_stack(enc2, params, *, B, T, num_heads, eps=1e-12):
    """enc2: (B*T, E) bf16 position-embedded encoder states.  Returns (B*nq, P) bf16."""
    L, H = params["qkv_w"].shape[0], params["qkv_w"].shape[1]
    nq = params["query_tokens"].shape[0]
    E = enc2.shape[-1]
    I = params["ffn_w1"].shape[-1]
    P = params["proj_w"].shape[-1]
    M = B * nq
    assert H % num_heads == 0
    hd = H // num_heads

    const = lambda shape: pl.BlockSpec(shape, lambda l: (0, 0))
    perl = lambda shape: pl.BlockSpec((1,) + shape, lambda l: (l, 0, 0))

    in_specs = [
        const((B * T, E)),                       # enc (constant across layers)
        const((nq, H)),                          # query tokens
        const((1, H)), const((1, H)),            # embeddings LN gamma/beta
        const((H, P)), const((1, P)),            # audio_proj
        perl((H, 3 * H)), perl((1, 3 * H)),      # self QKV
        perl((H, H)), perl((1, H)),              # self output
        perl((1, H)), perl((1, H)),              # self LN
        perl((H, H)), perl((1, H)),              # cross Q
        perl((E, 2 * H)), perl((1, 2 * H)),      # cross KV
        perl((H, H)), perl((1, H)),              # cross output
        perl((1, H)), perl((1, H)),              # cross LN
        perl((H, I)), perl((1, I)),              # FFN 1
        perl((I, H)), perl((1, H)),              # FFN 2
        perl((1, H)), perl((1, H)),              # FFN LN
    ]

    mm = lambda m, k, n: 2 * m * k * n
    att_flops = B * num_heads * (mm(nq, hd, nq) + mm(nq, nq, hd)
                                 + mm(nq, hd, T) + mm(nq, T, hd))
    flops = L * (mm(M, H, 3 * H) + 3 * mm(M, H, H) + mm(B * T, E, 2 * H)
                 + mm(M, H, I) + mm(M, I, H) + att_flops) + mm(M, H, P)
    w_bytes = 2 * (L * (H * 3 * H + 3 * H * H + E * 2 * H + 2 * H * I)
                   + H * P + B * T * E + M * P)
    transc = L * (B * num_heads * nq * (nq + T) + M * I)
    cost = pl.CostEstimate(flops=flops, transcendentals=transc, bytes_accessed=w_bytes)

    return pl.pallas_call(
        functools.partial(_qformer_stack_kernel, B=B, T=T, nq=nq,
                          num_heads=num_heads, eps=eps),
        out_shape=jax.ShapeDtypeStruct((M, P), jnp.bfloat16),
        grid=(L,),
        in_specs=in_specs,
        out_specs=pl.BlockSpec((M, P), lambda l: (0, 0)),
        scratch_shapes=[pltpu.VMEM((M, H), jnp.float32),    # f32 residual stream
                        pltpu.VMEM((M, H), jnp.bfloat16)],  # attention context staging
        compiler_params=pltpu.CompilerParams(dimension_semantics=("arbitrary",)),
        cost_estimate=cost,
    )(enc2, params["query_tokens"], params["emb_ln_g"], params["emb_ln_b"],
      params["proj_w"], params["proj_b"],
      params["qkv_w"], params["qkv_b"], params["self_o_w"], params["self_o_b"],
      params["self_ln_g"], params["self_ln_b"],
      params["cross_q_w"], params["cross_q_b"], params["cross_kv_w"], params["cross_kv_b"],
      params["cross_o_w"], params["cross_o_b"], params["cross_ln_g"], params["cross_ln_b"],
      params["ffn_w1"], params["ffn_b1"], params["ffn_w2"], params["ffn_b2"],
      params["ffn_ln_g"], params["ffn_ln_b"])


# ------------------------------ model glue ---------------------------------

def audio_encoder_forward(params, audio, num_heads=2):
    """audio: (B, T, 1, mel, frames) mel-spectrogram clips, as in the PyTorch module."""
    B, T = audio.shape[:2]
    nq = params["query_tokens"].shape[0]
    # Reference indexes nn.Embedding(num_audio_query_token, E) with arange(T).
    assert T <= nq, "position table is sized num_audio_query_token in the reference"

    feat = audio.reshape(B * T, -1).astype(jnp.bfloat16)

    # TODO(synk): the frozen ImageBind-huge audio trunk (get_audio_feature) is replaced
    # by a single deterministic linear projection stub; everything downstream is the
    # trainable Q-Former / projection forward reproduced faithfully.
    pos = params["pos_emb"][:T]                          # (T, E), NOT tiled over batch
    enc2 = imagebind_stub(feat, params["ib_w"], params["ib_b"], pos, B=B, T=T)

    out = qformer_stack(enc2, params, B=B, T=T, num_heads=num_heads)
    P = params["proj_w"].shape[1]
    return out.reshape(B, nq, P)


# ------------------------------ parameters ---------------------------------

def init_params(key, *, mel, frames, audio_hidden, hidden, inter, nq, proj, num_layers):
    std = 0.02                                   # BertConfig.initializer_range
    kit = iter(jax.random.split(key, 16))
    H, E, I, P, L = hidden, audio_hidden, inter, proj, num_layers

    def dense(shape):
        return (jax.random.normal(next(kit), shape, jnp.float32) * std).astype(jnp.bfloat16)

    def zeros(shape):
        return jnp.zeros(shape, jnp.float32)

    def ones(shape):
        return jnp.ones(shape, jnp.float32)

    return {
        "ib_w": dense((mel * frames, E)), "ib_b": zeros((1, E)),
        "pos_emb": dense((nq, E)),
        "query_tokens": dense((nq, H)),
        "emb_ln_g": ones((1, H)), "emb_ln_b": zeros((1, H)),
        "proj_w": dense((H, P)), "proj_b": zeros((1, P)),
        # per-layer weight stacks, leading dim = layer (grid axis of the fused kernel)
        "qkv_w": dense((L, H, 3 * H)), "qkv_b": zeros((L, 1, 3 * H)),
        "self_o_w": dense((L, H, H)), "self_o_b": zeros((L, 1, H)),
        "self_ln_g": ones((L, 1, H)), "self_ln_b": zeros((L, 1, H)),
        "cross_q_w": dense((L, H, H)), "cross_q_b": zeros((L, 1, H)),
        "cross_kv_w": dense((L, E, 2 * H)), "cross_kv_b": zeros((L, 1, 2 * H)),
        "cross_o_w": dense((L, H, H)), "cross_o_b": zeros((L, 1, H)),
        "cross_ln_g": ones((L, 1, H)), "cross_ln_b": zeros((L, 1, H)),
        "ffn_w1": dense((L, H, I)), "ffn_b1": zeros((L, 1, I)),
        "ffn_w2": dense((L, I, H)), "ffn_b2": zeros((L, 1, H)),
        "ffn_ln_g": ones((L, 1, H)), "ffn_ln_b": zeros((L, 1, H)),
    }


if __name__ == "__main__":
    # small shapes consistent with the module's forward
    B, T = 2, 8              # batch, time_length (== num_audio_query_token here)
    MEL, FR = 16, 16         # mel bins x time frames per clip
    AUDIO_HIDDEN = 256       # stands in for imagebind audio_hidden_size (1024)
    HIDDEN = 256             # stands in for Q-Former hidden (768)
    INTER = 512              # stands in for FFN intermediate (3072)
    NQ = 8                   # num_audio_query_token
    PROJ = 128               # stands in for proj_size (768)
    NUM_LAYERS = 2           # num_hidden_layers (4 in reference; reduced for size)
    NUM_HEADS = 2            # head_dim = 128 (lane-aligned)

    key = jax.random.PRNGKey(0)
    pkey, xkey = jax.random.split(key)
    params = init_params(pkey, mel=MEL, frames=FR, audio_hidden=AUDIO_HIDDEN,
                         hidden=HIDDEN, inter=INTER, nq=NQ, proj=PROJ,
                         num_layers=NUM_LAYERS)
    audio = jax.random.normal(xkey, (B, T, 1, MEL, FR), jnp.float32)

    fwd = jax.jit(functools.partial(audio_encoder_forward, num_heads=NUM_HEADS))
    out = fwd(params, audio)
    jax.block_until_ready(out)
    assert out.shape == (B, NQ, PROJ), out.shape
    assert bool(jnp.all(jnp.isfinite(out.astype(jnp.float32))))
    print("KERNEL_OK")
</pallas_src>

<mosaic_0001>
module attributes {stable_mosaic.version = 11 : i64} {
  func.func @_qformer_stack_kernel(%arg0: i32, %arg1: memref<16x256xbf16, #tpu.memory_space<vmem>>, %arg2: memref<8x256xbf16, #tpu.memory_space<vmem>>, %arg3: memref<1x256xf32, #tpu.memory_space<vmem>>, %arg4: memref<1x256xf32, #tpu.memory_space<vmem>>, %arg5: memref<256x128xbf16, #tpu.memory_space<vmem>>, %arg6: memref<1x128xf32, #tpu.memory_space<vmem>>, %arg7: memref<1x256x768xbf16, #tpu.memory_space<vmem>>, %arg8: memref<1x1x768xf32, #tpu.memory_space<vmem>>, %arg9: memref<1x256x256xbf16, #tpu.memory_space<vmem>>, %arg10: memref<1x1x256xf32, #tpu.memory_space<vmem>>, %arg11: memref<1x1x256xf32, #tpu.memory_space<vmem>>, %arg12: memref<1x1x256xf32, #tpu.memory_space<vmem>>, %arg13: memref<1x256x256xbf16, #tpu.memory_space<vmem>>, %arg14: memref<1x1x256xf32, #tpu.memory_space<vmem>>, %arg15: memref<1x256x512xbf16, #tpu.memory_space<vmem>>, %arg16: memref<1x1x512xf32, #tpu.memory_space<vmem>>, %arg17: memref<1x256x256xbf16, #tpu.memory_space<vmem>>, %arg18: memref<1x1x256xf32, #tpu.memory_space<vmem>>, %arg19: memref<1x1x256xf32, #tpu.memory_space<vmem>>, %arg20: memref<1x1x256xf32, #tpu.memory_space<vmem>>, %arg21: memref<1x256x512xbf16, #tpu.memory_space<vmem>>, %arg22: memref<1x1x512xf32, #tpu.memory_space<vmem>>, %arg23: memref<1x512x256xbf16, #tpu.memory_space<vmem>>, %arg24: memref<1x1x256xf32, #tpu.memory_space<vmem>>, %arg25: memref<1x1x256xf32, #tpu.memory_space<vmem>>, %arg26: memref<1x1x256xf32, #tpu.memory_space<vmem>>, %arg27: memref<16x128xbf16, #tpu.memory_space<vmem>>, %arg28: memref<16x256xf32, #tpu.memory_space<vmem>>, %arg29: memref<16x256xbf16, #tpu.memory_space<vmem>>) attributes {dimension_semantics = [#tpu.dimension_semantics<arbitrary>], iteration_bounds = array<i64: 2>, scalar_prefetch = 0 : i64, scratch_operands = 2 : i64, tpu.core_type = #tpu.core_type<tc>, window_params = [{pipeline_mode = #tpu.pipeline_mode<synchronous>, transform_indices = @transform_0, window_bounds = array<i64: 16, 256>}, {pipeline_mode = #tpu.pipeline_mode<synchronous>, transform_indices = @transform_1, window_bounds = array<i64: 8, 256>}, {pipeline_mode = #tpu.pipeline_mode<synchronous>, transform_indices = @transform_2, window_bounds = array<i64: 1, 256>}, {pipeline_mode = #tpu.pipeline_mode<synchronous>, transform_indices = @transform_3, window_bounds = array<i64: 1, 256>}, {pipeline_mode = #tpu.pipeline_mode<synchronous>, transform_indices = @transform_4, window_bounds = array<i64: 256, 128>}, {pipeline_mode = #tpu.pipeline_mode<synchronous>, transform_indices = @transform_5, window_bounds = array<i64: 1, 128>}, {transform_indices = @transform_6, window_bounds = array<i64: 1, 256, 768>}, {transform_indices = @transform_7, window_bounds = array<i64: 1, 1, 768>}, {transform_indices = @transform_8, window_bounds = array<i64: 1, 256, 256>}, {transform_indices = @transform_9, window_bounds = array<i64: 1, 1, 256>}, {transform_indices = @transform_10, window_bounds = array<i64: 1, 1, 256>}, {transform_indices = @transform_11, window_bounds = array<i64: 1, 1, 256>}, {transform_indices = @transform_12, window_bounds = array<i64: 1, 256, 256>}, {transform_indices = @transform_13, window_bounds = array<i64: 1, 1, 256>}, {transform_indices = @transform_14, window_bounds = array<i64: 1, 256, 512>}, {transform_indices = @transform_15, window_bounds = array<i64: 1, 1, 512>}, {transform_indices = @transform_16, window_bounds = array<i64: 1, 256, 256>}, {transform_indices = @transform_17, window_bounds = array<i64: 1, 1, 256>}, {transform_indices = @transform_18, window_bounds = array<i64: 1, 1, 256>}, {transform_indices = @transform_19, window_bounds = array<i64: 1, 1, 256>}, {transform_indices = @transform_20, window_bounds = array<i64: 1, 256, 512>}, {transform_indices = @transform_21, window_bounds = array<i64: 1, 1, 512>}, {transform_indices = @transform_22, window_bounds = array<i64: 1, 512, 256>}, {transform_indices = @transform_23, window_bounds = array<i64: 1, 1, 256>}, {transform_indices = @transform_24, window_bounds = array<i64: 1, 1, 256>}, {transform_indices = @transform_25, window_bounds = array<i64: 1, 1, 256>}, {pipeline_mode = #tpu.pipeline_mode<synchronous>, transform_indices = @transform_26, window_bounds = array<i64: 16, 128>}]} {
    %c0_i32 = arith.constant 0 : i32
    %0 = arith.cmpi eq, %arg0, %c0_i32 : i32
    %1 = arith.extui %0 : i1 to i32
    %c0_i32_0 = arith.constant 0 : i32
    %2 = arith.cmpi ne, %1, %c0_i32_0 : i32
    scf.if %2 {
      %c0_150 = arith.constant 0 : index
      %c0_151 = arith.constant 0 : index
      %318 = vector.load %arg2[%c0_150, %c0_151] : memref<8x256xbf16, #tpu.memory_space<vmem>>, vector<8x256xbf16>
      %319 = arith.extf %318 : vector<8x256xbf16> to vector<8x256xf32>
      %c0_152 = arith.constant 0 : index
      %c0_153 = arith.constant 0 : index
      %320 = vector.load %arg3[%c0_152, %c0_153] : memref<1x256xf32, #tpu.memory_space<vmem>>, vector<1x256xf32>
      %c0_154 = arith.constant 0 : index
      %c0_155 = arith.constant 0 : index
      %321 = vector.load %arg4[%c0_154, %c0_155] : memref<1x256xf32, #tpu.memory_space<vmem>>, vector<1x256xf32>
      %cst_156 = arith.constant dense<0.000000e+00> : vector<8xf32>
      %322 = vector.multi_reduction <add>, %319, %cst_156 [1] : vector<8x256xf32> to vector<8xf32>
      %323 = vector.shape_cast %322 : vector<8xf32> to vector<8x1xf32>
      %cst_157 = arith.constant 2.560000e+02 : f32
      %324 = vector.broadcast %cst_157 : f32 to vector<8x1xf32>
      %325 = arith.divf %323, %324 : vector<8x1xf32>
      %326 = vector.broadcast %325 : vector<8x1xf32> to vector<8x256xf32>
      %327 = arith.subf %319, %326 : vector<8x256xf32>
      %328 = arith.mulf %327, %327 : vector<8x256xf32>
      %cst_158 = arith.constant dense<0.000000e+00> : vector<8xf32>
      %329 = vector.multi_reduction <add>, %328, %cst_158 [1] : vector<8x256xf32> to vector<8xf32>
      %330 = vector.shape_cast %329 : vector<8xf32> to vector<8x1xf32>
      %cst_159 = arith.constant 2.560000e+02 : f32
      %331 = vector.broadcast %cst_159 : f32 to vector<8x1xf32>
      %332 = arith.divf %330, %331 : vector<8x1xf32>
      %333 = vector.broadcast %325 : vector<8x1xf32> to vector<8x256xf32>
      %334 = arith.subf %319, %333 : vector<8x256xf32>
      %cst_160 = arith.constant 9.99999996E-13 : f32
      %335 = vector.broadcast %cst_160 : f32 to vector<8x1xf32>
      %336 = arith.addf %332, %335 : vector<8x1xf32>
      %337 = math.rsqrt %336 : vector<8x1xf32>
      %338 = vector.broadcast %337 : vector<8x1xf32> to vector<8x256xf32>
      %339 = arith.mulf %334, %338 : vector<8x256xf32>
      %340 = vector.broadcast %320 : vector<1x256xf32> to vector<8x256xf32>
      %341 = arith.mulf %339, %340 : vector<8x256xf32>
      %342 = vector.broadcast %321 : vector<1x256xf32> to vector<8x256xf32>
      %343 = arith.addf %341, %342 : vector<8x256xf32>
      %c0_161 = arith.constant 0 : index
      %c0_162 = arith.constant 0 : index
      %344 = vector.load %arg28[%c0_161, %c0_162] : memref<16x256xf32, #tpu.memory_space<vmem>>, vector<8x256xf32>
      tpu.vector_store %arg28[%c0_161, %c0_162], %343 {strides = array<i32>} : memref<16x256xf32, #tpu.memory_space<vmem>>, vector<8x256xf32>,
      %c8_163 = arith.constant 8 : index
      %c0_164 = arith.constant 0 : index
      %345 = vector.load %arg28[%c8_163, %c0_164] : memref<16x256xf32, #tpu.memory_space<vmem>>, vector<8x256xf32>
      tpu.vector_store %arg28[%c8_163, %c0_164], %343 {strides = array<i32>} : memref<16x256xf32, #tpu.memory_space<vmem>>, vector<8x256xf32>,
    } else {
    }
    %c0 = arith.constant 0 : index
    %c0_1 = arith.constant 0 : index
    %3 = vector.load %arg28[%c0, %c0_1] : memref<16x256xf32, #tpu.memory_space<vmem>>, vector<16x256xf32>
    %4 = arith.truncf %3 : vector<16x256xf32> to vector<16x256xbf16>
    %c0_2 = arith.constant 0 : index
    %c0_3 = arith.constant 0 : index
    %c0_4 = arith.constant 0 : index
    %5 = vector.load %arg7[%c0_2, %c0_3, %c0_4] : memref<1x256x768xbf16, #tpu.memory_space<vmem>>, vector<1x256x768xbf16>
    %6 = vector.shape_cast %5 : vector<1x256x768xbf16> to vector<256x768xbf16>
    %cst = arith.constant dense<0.000000e+00> : vector<16x768xf32>
    %7 = tpu.matmul %4, %6, %cst {dimension_numbers = #tpu.dot_dimension_numbers<[1], [0], [0], [1], [0, 0, 1, 1], [], []>} : vector<16x256xbf16>, vector<256x768xbf16>, vector<16x768xf32> -> vector<16x768xf32>
    %c0_5 = arith.constant 0 : index
    %c0_6 = arith.constant 0 : index
    %c0_7 = arith.constant 0 : index
    %8 = vector.load %arg8[%c0_5, %c0_6, %c0_7] : memref<1x1x768xf32, #tpu.memory_space<vmem>>, vector<1x1x768xf32>
    %9 = vector.shape_cast %8 : vector<1x1x768xf32> to vector<1x768xf32>
    %10 = vector.broadcast %9 : vector<1x768xf32> to vector<16x768xf32>
    %11 = arith.addf %7, %10 : vector<16x768xf32>
    %12 = arith.truncf %11 : vector<16x768xf32> to vector<16x768xbf16>
    %13 = vector.extract_strided_slice %12 {offsets = [0, 0], sizes = [16, 256], strides = [1, 1]} : vector<16x768xbf16> to vector<16x256xbf16>
    %14 = vector.extract_strided_slice %12 {offsets = [0, 256], sizes = [16, 256], strides = [1, 1]} : vector<16x768xbf16> to vector<16x256xbf16>
    %15 = vector.extract_strided_slice %12 {offsets = [0, 512], sizes = [16, 256], strides = [1, 1]} : vector<16x768xbf16> to vector<16x256xbf16>
    %16 = vector.extract_strided_slice %13 {offsets = [0, 0], sizes = [8, 128], strides = [1, 1]} : vector<16x256xbf16> to vector<8x128xbf16>
    %17 = vector.extract_strided_slice %14 {offsets = [0, 0], sizes = [8, 128], strides = [1, 1]} : vector<16x256xbf16> to vector<8x128xbf16>
    %18 = vector.extract_strided_slice %15 {offsets = [0, 0], sizes = [8, 128], strides = [1, 1]} : vector<16x256xbf16> to vector<8x128xbf16>
    %cst_8 = arith.constant dense<0.000000e+00> : vector<8x8xf32>
    %19 = tpu.matmul %16, %17, %cst_8 {dimension_numbers = #tpu.dot_dimension_numbers<[1], [1], [0], [0], [0, 0, 1, 0], [], []>} : vector<8x128xbf16>, vector<8x128xbf16>, vector<8x8xf32> -> vector<8x8xf32>
    %cst_9 = arith.constant 0.0883883461 : f32
    %20 = vector.broadcast %cst_9 : f32 to vector<8x8xf32>
    %21 = arith.mulf %19, %20 : vector<8x8xf32>
    %cst_10 = arith.constant dense<0xFF800000> : vector<8xf32>
    %22 = vector.multi_reduction <maximumf>, %21, %cst_10 [1] : vector<8x8xf32> to vector<8xf32>
    %23 = vector.shape_cast %22 : vector<8xf32> to vector<8x1xf32>
    %24 = vector.broadcast %23 : vector<8x1xf32> to vector<8x8xf32>
    %25 = arith.subf %21, %24 : vector<8x8xf32>
    %26 = math.exp %25 : vector<8x8xf32>
    %cst_11 = arith.constant dense<0.000000e+00> : vector<8xf32>
    %27 = vector.multi_reduction <add>, %26, %cst_11 [1] : vector<8x8xf32> to vector<8xf32>
    %28 = vector.shape_cast %27 : vector<8xf32> to vector<8x1xf32>
    %29 = arith.truncf %26 : vector<8x8xf32> to vector<8x8xbf16>
    %cst_12 = arith.constant dense<0.000000e+00> : vector<8x128xf32>
    %30 = tpu.matmul %29, %18, %cst_12 {dimension_numbers = #tpu.dot_dimension_numbers<[1], [0], [0], [1], [0, 0, 1, 1], [], []>} : vector<8x8xbf16>, vector<8x128xbf16>, vector<8x128xf32> -> vector<8x128xf32>
    %31 = vector.broadcast %28 : vector<8x1xf32> to vector<8x128xf32>
    %32 = arith.divf %30, %31 : vector<8x128xf32>
    %33 = arith.truncf %32 : vector<8x128xf32> to vector<8x128xbf16>
    %c0_13 = arith.constant 0 : index
    %c0_14 = arith.constant 0 : index
    %34 = vector.load %arg29[%c0_13, %c0_14] : memref<16x256xbf16, #tpu.memory_space<vmem>>, vector<8x128xbf16>
    tpu.vector_store %arg29[%c0_13, %c0_14], %33 {strides = array<i32>} : memref<16x256xbf16, #tpu.memory_space<vmem>>, vector<8x128xbf16>,
    %35 = vector.extract_strided_slice %13 {offsets = [0, 128], sizes = [8, 128], strides = [1, 1]} : vector<16x256xbf16> to vector<8x128xbf16>
    %36 = vector.extract_strided_slice %14 {offsets = [0, 128], sizes = [8, 128], strides = [1, 1]} : vector<16x256xbf16> to vector<8x128xbf16>
    %37 = vector.extract_strided_slice %15 {offsets = [0, 128], sizes = [8, 128], strides = [1, 1]} : vector<16x256xbf16> to vector<8x128xbf16>
    %cst_15 = arith.constant dense<0.000000e+00> : vector<8x8xf32>
    %38 = tpu.matmul %35, %36, %cst_15 {dimension_numbers = #tpu.dot_dimension_numbers<[1], [1], [0], [0], [0, 0, 1, 0], [], []>} : vector<8x128xbf16>, vector<8x128xbf16>, vector<8x8xf32> -> vector<8x8xf32>
    %cst_16 = arith.constant 0.0883883461 : f32
    %39 = vector.broadcast %cst_16 : f32 to vector<8x8xf32>
    %40 = arith.mulf %38, %39 : vector<8x8xf32>
    %cst_17 = arith.constant dense<0xFF800000> : vector<8xf32>
    %41 = vector.multi_reduction <maximumf>, %40, %cst_17 [1] : vector<8x8xf32> to vector<8xf32>
    %42 = vector.shape_cast %41 : vector<8xf32> to vector<8x1xf32>
    %43 = vector.broadcast %42 : vector<8x1xf32> to vector<8x8xf32>
    %44 = arith.subf %40, %43 : vector<8x8xf32>
    %45 = math.exp %44 : vector<8x8xf32>
    %cst_18 = arith.constant dense<0.000000e+00> : vector<8xf32>
    %46 = vector.multi_reduction <add>, %45, %cst_18 [1] : vector<8x8xf32> to vector<8xf32>
    %47 = vector.shape_cast %46 : vector<8xf32> to vector<8x1xf32>
    %48 = arith.truncf %45 : vector<8x8xf32> to vector<8x8xbf16>
    %cst_19 = arith.constant dense<0.000000e+00> : vector<8x128xf32>
    %49 = tpu.matmul %48, %37, %cst_19 {dimension_numbers = #tpu.dot_dimension_numbers<[1], [0], [0], [1], [0, 0, 1, 1], [], []>} : vector<8x8xbf16>, vector<8x128xbf16>, vector<8x128xf32> -> vector<8x128xf32>
    %50 = vector.broadcast %47 : vector<8x1xf32> to vector<8x128xf32>
    %51 = arith.divf %49, %50 : vector<8x128xf32>
    %52 = arith.truncf %51 : vector<8x128xf32> to vector<8x128xbf16>
    %c0_20 = arith.constant 0 : index
    %c128 = arith.constant 128 : index
    %53 = vector.load %arg29[%c0_20, %c128] : memref<16x256xbf16, #tpu.memory_space<vmem>>, vector<8x128xbf16>
    tpu.vector_store %arg29[%c0_20, %c128], %52 {strides = array<i32>} : memref<16x256xbf16, #tpu.memory_space<vmem>>, vector<8x128xbf16>,
    %54 = vector.extract_strided_slice %13 {offsets = [8, 0], sizes = [8, 128], strides = [1, 1]} : vector<16x256xbf16> to vector<8x128xbf16>
    %55 = vector.extract_strided_slice %14 {offsets = [8, 0], sizes = [8, 128], strides = [1, 1]} : vector<16x256xbf16> to vector<8x128xbf16>
    %56 = vector.extract_strided_slice %15 {offsets = [8, 0], sizes = [8, 128], strides = [1, 1]} : vector<16x256xbf16> to vector<8x128xbf16>
    %cst_21 = arith.constant dense<0.000000e+00> : vector<8x8xf32>
    %57 = tpu.matmul %54, %55, %cst_21 {dimension_numbers = #tpu.dot_dimension_numbers<[1], [1], [0], [0], [0, 0, 1, 0], [], []>} : vector<8x128xbf16>, vector<8x128xbf16>, vector<8x8xf32> -> vector<8x8xf32>
    %cst_22 = arith.constant 0.0883883461 : f32
    %58 = vector.broadcast %cst_22 : f32 to vector<8x8xf32>
    %59 = arith.mulf %57, %58 : vector<8x8xf32>
    %cst_23 = arith.constant dense<0xFF800000> : vector<8xf32>
    %60 = vector.multi_reduction <maximumf>, %59, %cst_23 [1] : vector<8x8xf32> to vector<8xf32>
    %61 = vector.shape_cast %60 : vector<8xf32> to vector<8x1xf32>
    %62 = vector.broadcast %61 : vector<8x1xf32> to vector<8x8xf32>
    %63 = arith.subf %59, %62 : vector<8x8xf32>
    %64 = math.exp %63 : vector<8x8xf32>
    %cst_24 = arith.constant dense<0.000000e+00> : vector<8xf32>
    %65 = vector.multi_reduction <add>, %64, %cst_24 [1] : vector<8x8xf32> to vector<8xf32>
    %66 = vector.shape_cast %65 : vector<8xf32> to vector<8x1xf32>
    %67 = arith.truncf %64 : vector<8x8xf32> to vector<8x8xbf16>
    %cst_25 = arith.constant dense<0.000000e+00> : vector<8x128xf32>
    %68 = tpu.matmul %67, %56, %cst_25 {dimension_numbers = #tpu.dot_dimension_numbers<[1], [0], [0], [1], [0, 0, 1, 1], [], []>} : vector<8x8xbf16>, vector<8x128xbf16>, vector<8x128xf32> -> vector<8x128xf32>
    %69 = vector.broadcast %66 : vector<8x1xf32> to vector<8x128xf32>
    %70 = arith.divf %68, %69 : vector<8x128xf32>
    %71 = arith.truncf %70 : vector<8x128xf32> to vector<8x128xbf16>
    %c8 = arith.constant 8 : index
    %c0_26 = arith.constant 0 : index
    %72 = vector.load %arg29[%c8, %c0_26] : memref<16x256xbf16, #tpu.memory_space<vmem>>, vector<8x128xbf16>
    tpu.vector_store %arg29[%c8, %c0_26], %71 {strides = array<i32>} : memref<16x256xbf16, #tpu.memory_space<vmem>>, vector<8x128xbf16>,
    %73 = vector.extract_strided_slice %13 {offsets = [8, 128], sizes = [8, 128], strides = [1, 1]} : vector<16x256xbf16> to vector<8x128xbf16>
    %74 = vector.extract_strided_slice %14 {offsets = [8, 128], sizes = [8, 128], strides = [1, 1]} : vector<16x256xbf16> to vector<8x128xbf16>
    %75 = vector.extract_strided_slice %15 {offsets = [8, 128], sizes = [8, 128], strides = [1, 1]} : vector<16x256xbf16> to vector<8x128xbf16>
    %cst_27 = arith.constant dense<0.000000e+00> : vector<8x8xf32>
    %76 = tpu.matmul %73, %74, %cst_27 {dimension_numbers = #tpu.dot_dimension_numbers<[1], [1], [0], [0], [0, 0, 1, 0], [], []>} : vector<8x128xbf16>, vector<8x128xbf16>, vector<8x8xf32> -> vector<8x8xf32>
    %cst_28 = arith.constant 0.0883883461 : f32
    %77 = vector.broadcast %cst_28 : f32 to vector<8x8xf32>
    %78 = arith.mulf %76, %77 : vector<8x8xf32>
    %cst_29 = arith.constant dense<0xFF800000> : vector<8xf32>
    %79 = vector.multi_reduction <maximumf>, %78, %cst_29 [1] : vector<8x8xf32> to vector<8xf32>
    %80 = vector.shape_cast %79 : vector<8xf32> to vector<8x1xf32>
    %81 = vector.broadcast %80 : vector<8x1xf32> to vector<8x8xf32>
    %82 = arith.subf %78, %81 : vector<8x8xf32>
    %83 = math.exp %82 : vector<8x8xf32>
    %cst_30 = arith.constant dense<0.000000e+00> : vector<8xf32>
    %84 = vector.multi_reduction <add>, %83, %cst_30 [1] : vector<8x8xf32> to vector<8xf32>
    %85 = vector.shape_cast %84 : vector<8xf32> to vector<8x1xf32>
    %86 = arith.truncf %83 : vector<8x8xf32> to vector<8x8xbf16>
    %cst_31 = arith.constant dense<0.000000e+00> : vector<8x128xf32>
    %87 = tpu.matmul %86, %75, %cst_31 {dimension_numbers = #tpu.dot_dimension_numbers<[1], [0], [0], [1], [0, 0, 1, 1], [], []>} : vector<8x8xbf16>, vector<8x128xbf16>, vector<8x128xf32> -> vector<8x128xf32>
    %88 = vector.broadcast %85 : vector<8x1xf32> to vector<8x128xf32>
    %89 = arith.divf %87, %88 : vector<8x128xf32>
    %90 = arith.truncf %89 : vector<8x128xf32> to vector<8x128xbf16>
    %c8_32 = arith.constant 8 : index
    %c128_33 = arith.constant 128 : index
    %91 = vector.load %arg29[%c8_32, %c128_33] : memref<16x256xbf16, #tpu.memory_space<vmem>>, vector<8x128xbf16>
    tpu.vector_store %arg29[%c8_32, %c128_33], %90 {strides = array<i32>} : memref<16x256xbf16, #tpu.memory_space<vmem>>, vector<8x128xbf16>,
    %c0_34 = arith.constant 0 : index
    %c0_35 = arith.constant 0 : index
    %92 = vector.load %arg29[%c0_34, %c0_35] : memref<16x256xbf16, #tpu.memory_space<vmem>>, vector<16x256xbf16>
    %c0_36 = arith.constant 0 : index
    %c0_37 = arith.constant 0 : index
    %c0_38 = arith.constant 0 : index
    %93 = vector.load %arg9[%c0_36, %c0_37, %c0_38] : memref<1x256x256xbf16, #tpu.memory_space<vmem>>, vector<1x256x256xbf16>
    %94 = vector.shape_cast %93 : vector<1x256x256xbf16> to vector<256x256xbf16>
    %cst_39 = arith.constant dense<0.000000e+00> : vector<16x256xf32>
    %95 = tpu.matmul %92, %94, %cst_39 {dimension_numbers = #tpu.dot_dimension_numbers<[1], [0], [0], [1], [0, 0, 1, 1], [], []>} : vector<16x256xbf16>, vector<256x256xbf16>, vector<16x256xf32> -> vector<16x256xf32>
    %c0_40 = arith.constant 0 : index
    %c0_41 = arith.constant 0 : index
    %c0_42 = arith.constant 0 : index
    %96 = vector.load %arg10[%c0_40, %c0_41, %c0_42] : memref<1x1x256xf32, #tpu.memory_space<vmem>>, vector<1x1x256xf32>
    %97 = vector.shape_cast %96 : vector<1x1x256xf32> to vector<1x256xf32>
    %98 = vector.broadcast %97 : vector<1x256xf32> to vector<16x256xf32>
    %99 = arith.addf %95, %98 : vector<16x256xf32>
    %100 = arith.addf %99, %3 : vector<16x256xf32>
    %c0_43 = arith.constant 0 : index
    %c0_44 = arith.constant 0 : index
    %c0_45 = arith.constant 0 : index
    %101 = vector.load %arg11[%c0_43, %c0_44, %c0_45] : memref<1x1x256xf32, #tpu.memory_space<vmem>>, vector<1x1x256xf32>
    %102 = vector.shape_cast %101 : vector<1x1x256xf32> to vector<1x256xf32>
    %c0_46 = arith.constant 0 : index
    %c0_47 = arith.constant 0 : index
    %c0_48 = arith.constant 0 : index
    %103 = vector.load %arg12[%c0_46, %c0_47, %c0_48] : memref<1x1x256xf32, #tpu.memory_space<vmem>>, vector<1x1x256xf32>
    %104 = vector.shape_cast %103 : vector<1x1x256xf32> to vector<1x256xf32>
    %cst_49 = arith.constant dense<0.000000e+00> : vector<16xf32>
    %105 = vector.multi_reduction <add>, %100, %cst_49 [1] : vector<16x256xf32> to vector<16xf32>
    %106 = vector.shape_cast %105 : vector<16xf32> to vector<16x1xf32>
    %cst_50 = arith.constant 2.560000e+02 : f32
    %107 = vector.broadcast %cst_50 : f32 to vector<16x1xf32>
    %108 = arith.divf %106, %107 : vector<16x1xf32>
    %109 = vector.broadcast %108 : vector<16x1xf32> to vector<16x256xf32>
    %110 = arith.subf %100, %109 : vector<16x256xf32>
    %111 = arith.mulf %110, %110 : vector<16x256xf32>
    %cst_51 = arith.constant dense<0.000000e+00> : vector<16xf32>
    %112 = vector.multi_reduction <add>, %111, %cst_51 [1] : vector<16x256xf32> to vector<16xf32>
    %113 = vector.shape_cast %112 : vector<16xf32> to vector<16x1xf32>
    %cst_52 = arith.constant 2.560000e+02 : f32
    %114 = vector.broadcast %cst_52 : f32 to vector<16x1xf32>
    %115 = arith.divf %113, %114 : vector<16x1xf32>
    %116 = vector.broadcast %108 : vector<16x1xf32> to vector<16x256xf32>
    %117 = arith.subf %100, %116 : vector<16x256xf32>
    %cst_53 = arith.constant 9.99999996E-13 : f32
    %118 = vector.broadcast %cst_53 : f32 to vector<16x1xf32>
    %119 = arith.addf %115, %118 : vector<16x1xf32>
    %120 = math.rsqrt %119 : vector<16x1xf32>
    %121 = vector.broadcast %120 : vector<16x1xf32> to vector<16x256xf32>
    %122 = arith.mulf %117, %121 : vector<16x256xf32>
    %123 = vector.broadcast %102 : vector<1x256xf32> to vector<16x256xf32>
    %124 = arith.mulf %122, %123 : vector<16x256xf32>
    %125 = vector.broadcast %104 : vector<1x256xf32> to vector<16x256xf32>
    %126 = arith.addf %124, %125 : vector<16x256xf32>
    %127 = arith.truncf %126 : vector<16x256xf32> to vector<16x256xbf16>
    %c0_54 = arith.constant 0 : index
    %c0_55 = arith.constant 0 : index
    %c0_56 = arith.constant 0 : index
    %128 = vector.load %arg13[%c0_54, %c0_55, %c0_56] : memref<1x256x256xbf16, #tpu.memory_space<vmem>>, vector<1x256x256xbf16>
    %129 = vector.shape_cast %128 : vector<1x256x256xbf16> to vector<256x256xbf16>
    %cst_57 = arith.constant dense<0.000000e+00> : vector<16x256xf32>
    %130 = tpu.matmul %127, %129, %cst_57 {dimension_numbers = #tpu.dot_dimension_numbers<[1], [0], [0], [1], [0, 0, 1, 1], [], []>} : vector<16x256xbf16>, vector<256x256xbf16>, vector<16x256xf32> -> vector<16x256xf32>
    %c0_58 = arith.constant 0 : index
    %c0_59 = arith.constant 0 : index
    %c0_60 = arith.constant 0 : index
    %131 = vector.load %arg14[%c0_58, %c0_59, %c0_60] : memref<1x1x256xf32, #tpu.memory_space<vmem>>, vector<1x1x256xf32>
    %132 = vector.shape_cast %131 : vector<1x1x256xf32> to vector<1x256xf32>
    %133 = vector.broadcast %132 : vector<1x256xf32> to vector<16x256xf32>
    %134 = arith.addf %130, %133 : vector<16x256xf32>
    %135 = arith.truncf %134 : vector<16x256xf32> to vector<16x256xbf16>
    %c0_61 = arith.constant 0 : index
    %c0_62 = arith.constant 0 : index
    %136 = vector.load %arg1[%c0_61, %c0_62] : memref<16x256xbf16, #tpu.memory_space<vmem>>, vector<16x256xbf16>
    %c0_63 = arith.constant 0 : index
    %c0_64 = arith.constant 0 : index
    %c0_65 = arith.constant 0 : index
    %137 = vector.load %arg15[%c0_63, %c0_64, %c0_65] : memref<1x256x512xbf16, #tpu.memory_space<vmem>>, vector<1x256x512xbf16>
    %138 = vector.shape_cast %137 : vector<1x256x512xbf16> to vector<256x512xbf16>
    %cst_66 = arith.constant dense<0.000000e+00> : vector<16x512xf32>
    %139 = tpu.matmul %136, %138, %cst_66 {dimension_numbers = #tpu.dot_dimension_numbers<[1], [0], [0], [1], [0, 0, 1, 1], [], []>} : vector<16x256xbf16>, vector<256x512xbf16>, vector<16x512xf32> -> vector<16x512xf32>
    %c0_67 = arith.constant 0 : index
    %c0_68 = arith.constant 0 : index
    %c0_69 = arith.constant 0 : index
    %140 = vector.load %arg16[%c0_67, %c0_68, %c0_69] : memref<1x1x512xf32, #tpu.memory_space<vmem>>, vector<1x1x512xf32>
    %141 = vector.shape_cast %140 : vector<1x1x512xf32> to vector<1x512xf32>
    %142 = vector.broadcast %141 : vector<1x512xf32> to vector<16x512xf32>
    %143 = arith.addf %139, %142 : vector<16x512xf32>
    %144 = arith.truncf %143 : vector<16x512xf32> to vector<16x512xbf16>
    %145 = vector.extract_strided_slice %144 {offsets = [0, 0], sizes = [16, 256], strides = [1, 1]} : vector<16x512xbf16> to vector<16x256xbf16>
    %146 = vector.extract_strided_slice %144 {offsets = [0, 256], sizes = [16, 256], strides = [1, 1]} : vector<16x512xbf16> to vector<16x256xbf16>
    %147 = vector.extract_strided_slice %135 {offsets = [0, 0], sizes = [8, 128], strides = [1, 1]} : vector<16x256xbf16> to vector<8x128xbf16>
    %148 = vector.extract_strided_slice %145 {offsets = [0, 0], sizes = [8, 128], strides = [1, 1]} : vector<16x256xbf16> to vector<8x128xbf16>
    %149 = vector.extract_strided_slice %146 {offsets = [0, 0], sizes = [8, 128], strides = [1, 1]} : vector<16x256xbf16> to vector<8x128xbf16>
    %cst_70 = arith.constant dense<0.000000e+00> : vector<8x8xf32>
    %150 = tpu.matmul %147, %148, %cst_70 {dimension_numbers = #tpu.dot_dimension_numbers<[1], [1], [0], [0], [0, 0, 1, 0], [], []>} : vector<8x128xbf16>, vector<8x128xbf16>, vector<8x8xf32> -> vector<8x8xf32>
    %cst_71 = arith.constant 0.0883883461 : f32
    %151 = vector.broadcast %cst_71 : f32 to vector<8x8xf32>
    %152 = arith.mulf %150, %151 : vector<8x8xf32>
    %cst_72 = arith.constant dense<0xFF800000> : vector<8xf32>
    %153 = vector.multi_reduction <maximumf>, %152, %cst_72 [1] : vector<8x8xf32> to vector<8xf32>
    %154 = vector.shape_cast %153 : vector<8xf32> to vector<8x1xf32>
    %155 = vector.broadcast %154 : vector<8x1xf32> to vector<8x8xf32>
    %156 = arith.subf %152, %155 : vector<8x8xf32>
    %157 = math.exp %156 : vector<8x8xf32>
    %cst_73 = arith.constant dense<0.000000e+00> : vector<8xf32>
    %158 = vector.multi_reduction <add>, %157, %cst_73 [1] : vector<8x8xf32> to vector<8xf32>
    %159 = vector.shape_cast %158 : vector<8xf32> to vector<8x1xf32>
    %160 = arith.truncf %157 : vector<8x8xf32> to vector<8x8xbf16>
    %cst_74 = arith.constant dense<0.000000e+00> : vector<8x128xf32>
    %161 = tpu.matmul %160, %149, %cst_74 {dimension_numbers = #tpu.dot_dimension_numbers<[1], [0], [0], [1], [0, 0, 1, 1], [], []>} : vector<8x8xbf16>, vector<8x128xbf16>, vector<8x128xf32> -> vector<8x128xf32>
    %162 = vector.broadcast %159 : vector<8x1xf32> to vector<8x128xf32>
    %163 = arith.divf %161, %162 : vector<8x128xf32>
    %164 = arith.truncf %163 : vector<8x128xf32> to vector<8x128xbf16>
    %c0_75 = arith.constant 0 : index
    %c0_76 = arith.constant 0 : index
    %165 = vector.load %arg29[%c0_75, %c0_76] : memref<16x256xbf16, #tpu.memory_space<vmem>>, vector<8x128xbf16>
    tpu.vector_store %arg29[%c0_75, %c0_76], %164 {strides = array<i32>} : memref<16x256xbf16, #tpu.memory_space<vmem>>, vector<8x128xbf16>,
    %166 = vector.extract_strided_slice %135 {offsets = [0, 128], sizes = [8, 128], strides = [1, 1]} : vector<16x256xbf16> to vector<8x128xbf16>
    %167 = vector.extract_strided_slice %145 {offsets = [0, 128], sizes = [8, 128], strides = [1, 1]} : vector<16x256xbf16> to vector<8x128xbf16>
    %168 = vector.extract_strided_slice %146 {offsets = [0, 128], sizes = [8, 128], strides = [1, 1]} : vector<16x256xbf16> to vector<8x128xbf16>
    %cst_77 = arith.constant dense<0.000000e+00> : vector<8x8xf32>
    %169 = tpu.matmul %166, %167, %cst_77 {dimension_numbers = #tpu.dot_dimension_numbers<[1], [1], [0], [0], [0, 0, 1, 0], [], []>} : vector<8x128xbf16>, vector<8x128xbf16>, vector<8x8xf32> -> vector<8x8xf32>
    %cst_78 = arith.constant 0.0883883461 : f32
    %170 = vector.broadcast %cst_78 : f32 to vector<8x8xf32>
    %171 = arith.mulf %169, %170 : vector<8x8xf32>
    %cst_79 = arith.constant dense<0xFF800000> : vector<8xf32>
    %172 = vector.multi_reduction <maximumf>, %171, %cst_79 [1] : vector<8x8xf32> to vector<8xf32>
    %173 = vector.shape_cast %172 : vector<8xf32> to vector<8x1xf32>
    %174 = vector.broadcast %173 : vector<8x1xf32> to vector<8x8xf32>
    %175 = arith.subf %171, %174 : vector<8x8xf32>
    %176 = math.exp %175 : vector<8x8xf32>
    %cst_80 = arith.constant dense<0.000000e+00> : vector<8xf32>
    %177 = vector.multi_reduction <add>, %176, %cst_80 [1] : vector<8x8xf32> to vector<8xf32>
    %178 = vector.shape_cast %177 : vector<8xf32> to vector<8x1xf32>
    %179 = arith.truncf %176 : vector<8x8xf32> to vector<8x8xbf16>
    %cst_81 = arith.constant dense<0.000000e+00> : vector<8x128xf32>
    %180 = tpu.matmul %179, %168, %cst_81 {dimension_numbers = #tpu.dot_dimension_numbers<[1], [0], [0], [1], [0, 0, 1, 1], [], []>} : vector<8x8xbf16>, vector<8x128xbf16>, vector<8x128xf32> -> vector<8x128xf32>
    %181 = vector.broadcast %178 : vector<8x1xf32> to vector<8x128xf32>
    %182 = arith.divf %180, %181 : vector<8x128xf32>
    %183 = arith.truncf %182 : vector<8x128xf32> to vector<8x128xbf16>
    %c0_82 = arith.constant 0 : index
    %c128_83 = arith.constant 128 : index
    %184 = vector.load %arg29[%c0_82, %c128_83] : memref<16x256xbf16, #tpu.memory_space<vmem>>, vector<8x128xbf16>
    tpu.vector_store %arg29[%c0_82, %c128_83], %183 {strides = array<i32>} : memref<16x256xbf16, #tpu.memory_space<vmem>>, vector<8x128xbf16>,
    %185 = vector.extract_strided_slice %135 {offsets = [8, 0], sizes = [8, 128], strides = [1, 1]} : vector<16x256xbf16> to vector<8x128xbf16>
    %186 = vector.extract_strided_slice %145 {offsets = [8, 0], sizes = [8, 128], strides = [1, 1]} : vector<16x256xbf16> to vector<8x128xbf16>
    %187 = vector.extract_strided_slice %146 {offsets = [8, 0], sizes = [8, 128], strides = [1, 1]} : vector<16x256xbf16> to vector<8x128xbf16>
    %cst_84 = arith.constant dense<0.000000e+00> : vector<8x8xf32>
    %188 = tpu.matmul %185, %186, %cst_84 {dimension_numbers = #tpu.dot_dimension_numbers<[1], [1], [0], [0], [0, 0, 1, 0], [], []>} : vector<8x128xbf16>, vector<8x128xbf16>, vector<8x8xf32> -> vector<8x8xf32>
    %cst_85 = arith.constant 0.0883883461 : f32
    %189 = vector.broadcast %cst_85 : f32 to vector<8x8xf32>
    %190 = arith.mulf %188, %189 : vector<8x8xf32>
    %cst_86 = arith.constant dense<0xFF800000> : vector<8xf32>
    %191 = vector.multi_reduction <maximumf>, %190, %cst_86 [1] : vector<8x8xf32> to vector<8xf32>
    %192 = vector.shape_cast %191 : vector<8xf32> to vector<8x1xf32>
    %193 = vector.broadcast %192 : vector<8x1xf32> to vector<8x8xf32>
    %194 = arith.subf %190, %193 : vector<8x8xf32>
    %195 = math.exp %194 : vector<8x8xf32>
    %cst_87 = arith.constant dense<0.000000e+00> : vector<8xf32>
    %196 = vector.multi_reduction <add>, %195, %cst_87 [1] : vector<8x8xf32> to vector<8xf32>
    %197 = vector.shape_cast %196 : vector<8xf32> to vector<8x1xf32>
    %198 = arith.truncf %195 : vector<8x8xf32> to vector<8x8xbf16>
    %cst_88 = arith.constant dense<0.000000e+00> : vector<8x128xf32>
    %199 = tpu.matmul %198, %187, %cst_88 {dimension_numbers = #tpu.dot_dimension_numbers<[1], [0], [0], [1], [0, 0, 1, 1], [], []>} : vector<8x8xbf16>, vector<8x128xbf16>, vector<8x128xf32> -> vector<8x128xf32>
    %200 = vector.broadcast %197 : vector<8x1xf32> to vector<8x128xf32>
    %201 = arith.divf %199, %200 : vector<8x128xf32>
    %202 = arith.truncf %201 : vector<8x128xf32> to vector<8x128xbf16>
    %c8_89 = arith.constant 8 : index
    %c0_90 = arith.constant 0 : index
    %203 = vector.load %arg29[%c8_89, %c0_90] : memref<16x256xbf16, #tpu.memory_space<vmem>>, vector<8x128xbf16>
    tpu.vector_store %arg29[%c8_89, %c0_90], %202 {strides = array<i32>} : memref<16x256xbf16, #tpu.memory_space<vmem>>, vector<8x128xbf16>,
    %204 = vector.extract_strided_slice %135 {offsets = [8, 128], sizes = [8, 128], strides = [1, 1]} : vector<16x256xbf16> to vector<8x128xbf16>
    %205 = vector.extract_strided_slice %145 {offsets = [8, 128], sizes = [8, 128], strides = [1, 1]} : vector<16x256xbf16> to vector<8x128xbf16>
    %206 = vector.extract_strided_slice %146 {offsets = [8, 128], sizes = [8, 128], strides = [1, 1]} : vector<16x256xbf16> to vector<8x128xbf16>
    %cst_91 = arith.constant dense<0.000000e+00> : vector<8x8xf32>
    %207 = tpu.matmul %204, %205, %cst_91 {dimension_numbers = #tpu.dot_dimension_numbers<[1], [1], [0], [0], [0, 0, 1, 0], [], []>} : vector<8x128xbf16>, vector<8x128xbf16>, vector<8x8xf32> -> vector<8x8xf32>
    %cst_92 = arith.constant 0.0883883461 : f32
    %208 = vector.broadcast %cst_92 : f32 to vector<8x8xf32>
    %209 = arith.mulf %207, %208 : vector<8x8xf32>
    %cst_93 = arith.constant dense<0xFF800000> : vector<8xf32>
    %210 = vector.multi_reduction <maximumf>, %209, %cst_93 [1] : vector<8x8xf32> to vector<8xf32>
    %211 = vector.shape_cast %210 : vector<8xf32> to vector<8x1xf32>
    %212 = vector.broadcast %211 : vector<8x1xf32> to vector<8x8xf32>
    %213 = arith.subf %209, %212 : vector<8x8xf32>
    %214 = math.exp %213 : vector<8x8xf32>
    %cst_94 = arith.constant dense<0.000000e+00> : vector<8xf32>
    %215 = vector.multi_reduction <add>, %214, %cst_94 [1] : vector<8x8xf32> to vector<8xf32>
    %216 = vector.shape_cast %215 : vector<8xf32> to vector<8x1xf32>
    %217 = arith.truncf %214 : vector<8x8xf32> to vector<8x8xbf16>
    %cst_95 = arith.constant dense<0.000000e+00> : vector<8x128xf32>
    %218 = tpu.matmul %217, %206, %cst_95 {dimension_numbers = #tpu.dot_dimension_numbers<[1], [0], [0], [1], [0, 0, 1, 1], [], []>} : vector<8x8xbf16>, vector<8x128xbf16>, vector<8x128xf32> -> vector<8x128xf32>
    %219 = vector.broadcast %216 : vector<8x1xf32> to vector<8x128xf32>
    %220 = arith.divf %218, %219 : vector<8x128xf32>
    %221 = arith.truncf %220 : vector<8x128xf32> to vector<8x128xbf16>
    %c8_96 = arith.constant 8 : index
    %c128_97 = arith.constant 128 : index
    %222 = vector.load %arg29[%c8_96, %c128_97] : memref<16x256xbf16, #tpu.memory_space<vmem>>, vector<8x128xbf16>
    tpu.vector_store %arg29[%c8_96, %c128_97], %221 {strides = array<i32>} : memref<16x256xbf16, #tpu.memory_space<vmem>>, vector<8x128xbf16>,
    %c0_98 = arith.constant 0 : index
    %c0_99 = arith.constant 0 : index
    %223 = vector.load %arg29[%c0_98, %c0_99] : memref<16x256xbf16, #tpu.memory_space<vmem>>, vector<16x256xbf16>
    %c0_100 = arith.constant 0 : index
    %c0_101 = arith.constant 0 : index
    %c0_102 = arith.constant 0 : index
    %224 = vector.load %arg17[%c0_100, %c0_101, %c0_102] : memref<1x256x256xbf16, #tpu.memory_space<vmem>>, vector<1x256x256xbf16>
    %225 = vector.shape_cast %224 : vector<1x256x256xbf16> to vector<256x256xbf16>
    %cst_103 = arith.constant dense<0.000000e+00> : vector<16x256xf32>
    %226 = tpu.matmul %223, %225, %cst_103 {dimension_numbers = #tpu.dot_dimension_numbers<[1], [0], [0], [1], [0, 0, 1, 1], [], []>} : vector<16x256xbf16>, vector<256x256xbf16>, vector<16x256xf32> -> vector<16x256xf32>
    %c0_104 = arith.constant 0 : index
    %c0_105 = arith.constant 0 : index
    %c0_106 = arith.constant 0 : index
    %227 = vector.load %arg18[%c0_104, %c0_105, %c0_106] : memref<1x1x256xf32, #tpu.memory_space<vmem>>, vector<1x1x256xf32>
    %228 = vector.shape_cast %227 : vector<1x1x256xf32> to vector<1x256xf32>
    %229 = vector.broadcast %228 : vector<1x256xf32> to vector<16x256xf32>
    %230 = arith.addf %226, %229 : vector<16x256xf32>
    %231 = arith.addf %230, %126 : vector<16x256xf32>
    %c0_107 = arith.constant 0 : index
    %c0_108 = arith.constant 0 : index
    %c0_109 = arith.constant 0 : index
    %232 = vector.load %arg19[%c0_107, %c0_108, %c0_109] : memref<1x1x256xf32, #tpu.memory_space<vmem>>, vector<1x1x256xf32>
    %233 = vector.shape_cast %232 : vector<1x1x256xf32> to vector<1x256xf32>
    %c0_110 = arith.constant 0 : index
    %c0_111 = arith.constant 0 : index
    %c0_112 = arith.constant 0 : index
    %234 = vector.load %arg20[%c0_110, %c0_111, %c0_112] : memref<1x1x256xf32, #tpu.memory_space<vmem>>, vector<1x1x256xf32>
    %235 = vector.shape_cast %234 : vector<1x1x256xf32> to vector<1x256xf32>
    %cst_113 = arith.constant dense<0.000000e+00> : vector<16xf32>
    %236 = vector.multi_reduction <add>, %231, %cst_113 [1] : vector<16x256xf32> to vector<16xf32>
    %237 = vector.shape_cast %236 : vector<16xf32> to vector<16x1xf32>
    %cst_114 = arith.constant 2.560000e+02 : f32
    %238 = vector.broadcast %cst_114 : f32 to vector<16x1xf32>
    %239 = arith.divf %237, %238 : vector<16x1xf32>
    %240 = vector.broadcast %239 : vector<16x1xf32> to vector<16x256xf32>
    %241 = arith.subf %231, %240 : vector<16x256xf32>
    %242 = arith.mulf %241, %241 : vector<16x256xf32>
    %cst_115 = arith.constant dense<0.000000e+00> : vector<16xf32>
    %243 = vector.multi_reduction <add>, %242, %cst_115 [1] : vector<16x256xf32> to vector<16xf32>
    %244 = vector.shape_cast %243 : vector<16xf32> to vector<16x1xf32>
    %cst_116 = arith.constant 2.560000e+02 : f32
    %245 = vector.broadcast %cst_116 : f32 to vector<16x1xf32>
    %246 = arith.divf %244, %245 : vector<16x1xf32>
    %247 = vector.broadcast %239 : vector<16x1xf32> to vector<16x256xf32>
    %248 = arith.subf %231, %247 : vector<16x256xf32>
    %cst_117 = arith.constant 9.99999996E-13 : f32
    %249 = vector.broadcast %cst_117 : f32 to vector<16x1xf32>
    %250 = arith.addf %246, %249 : vector<16x1xf32>
    %251 = math.rsqrt %250 : vector<16x1xf32>
    %252 = vector.broadcast %251 : vector<16x1xf32> to vector<16x256xf32>
    %253 = arith.mulf %248, %252 : vector<16x256xf32>
    %254 = vector.broadcast %233 : vector<1x256xf32> to vector<16x256xf32>
    %255 = arith.mulf %253, %254 : vector<16x256xf32>
    %256 = vector.broadcast %235 : vector<1x256xf32> to vector<16x256xf32>
    %257 = arith.addf %255, %256 : vector<16x256xf32>
    %258 = arith.truncf %257 : vector<16x256xf32> to vector<16x256xbf16>
    %c0_118 = arith.constant 0 : index
    %c0_119 = arith.constant 0 : index
    %c0_120 = arith.constant 0 : index
    %259 = vector.load %arg21[%c0_118, %c0_119, %c0_120] : memref<1x256x512xbf16, #tpu.memory_space<vmem>>, vector<1x256x512xbf16>
    %260 = vector.shape_cast %259 : vector<1x256x512xbf16> to vector<256x512xbf16>
    %cst_121 = arith.constant dense<0.000000e+00> : vector<16x512xf32>
    %261 = tpu.matmul %258, %260, %cst_121 {dimension_numbers = #tpu.dot_dimension_numbers<[1], [0], [0], [1], [0, 0, 1, 1], [], []>} : vector<16x256xbf16>, vector<256x512xbf16>, vector<16x512xf32> -> vector<16x512xf32>
    %c0_122 = arith.constant 0 : index
    %c0_123 = arith.constant 0 : index
    %c0_124 = arith.constant 0 : index
    %262 = vector.load %arg22[%c0_122, %c0_123, %c0_124] : memref<1x1x512xf32, #tpu.memory_space<vmem>>, vector<1x1x512xf32>
    %263 = vector.shape_cast %262 : vector<1x1x512xf32> to vector<1x512xf32>
    %264 = vector.broadcast %263 : vector<1x512xf32> to vector<16x512xf32>
    %265 = arith.addf %261, %264 : vector<16x512xf32>
    %266 = arith.mulf %265, %265 : vector<16x512xf32>
    %267 = arith.mulf %265, %266 : vector<16x512xf32>
    %cst_125 = arith.constant 4.471500e-02 : f32
    %268 = vector.broadcast %cst_125 : f32 to vector<16x512xf32>
    %269 = arith.mulf %268, %267 : vector<16x512xf32>
    %270 = arith.addf %265, %269 : vector<16x512xf32>
    %cst_126 = arith.constant 0.797884583 : f32
    %271 = vector.broadcast %cst_126 : f32 to vector<16x512xf32>
    %272 = arith.mulf %271, %270 : vector<16x512xf32>
    %273 = math.tanh %272 : vector<16x512xf32>
    %cst_127 = arith.constant 1.000000e+00 : f32
    %274 = vector.broadcast %cst_127 : f32 to vector<16x512xf32>
    %275 = arith.addf %274, %273 : vector<16x512xf32>
    %cst_128 = arith.constant 5.000000e-01 : f32
    %276 = vector.broadcast %cst_128 : f32 to vector<16x512xf32>
    %277 = arith.mulf %276, %275 : vector<16x512xf32>
    %278 = arith.mulf %265, %277 : vector<16x512xf32>
    %279 = arith.truncf %278 : vector<16x512xf32> to vector<16x512xbf16>
    %c0_129 = arith.constant 0 : index
    %c0_130 = arith.constant 0 : index
    %c0_131 = arith.constant 0 : index
    %280 = vector.load %arg23[%c0_129, %c0_130, %c0_131] : memref<1x512x256xbf16, #tpu.memory_space<vmem>>, vector<1x512x256xbf16>
    %281 = vector.shape_cast %280 : vector<1x512x256xbf16> to vector<512x256xbf16>
    %cst_132 = arith.constant dense<0.000000e+00> : vector<16x256xf32>
    %282 = tpu.matmul %279, %281, %cst_132 {dimension_numbers = #tpu.dot_dimension_numbers<[1], [0], [0], [1], [0, 0, 1, 1], [], []>} : vector<16x512xbf16>, vector<512x256xbf16>, vector<16x256xf32> -> vector<16x256xf32>
    %c0_133 = arith.constant 0 : index
    %c0_134 = arith.constant 0 : index
    %c0_135 = arith.constant 0 : index
    %283 = vector.load %arg24[%c0_133, %c0_134, %c0_135] : memref<1x1x256xf32, #tpu.memory_space<vmem>>, vector<1x1x256xf32>
    %284 = vector.shape_cast %283 : vector<1x1x256xf32> to vector<1x256xf32>
    %285 = vector.broadcast %284 : vector<1x256xf32> to vector<16x256xf32>
    %286 = arith.addf %282, %285 : vector<16x256xf32>
    %287 = arith.addf %286, %257 : vector<16x256xf32>
    %c0_136 = arith.constant 0 : index
    %c0_137 = arith.constant 0 : index
    %c0_138 = arith.constant 0 : index
    %288 = vector.load %arg25[%c0_136, %c0_137, %c0_138] : memref<1x1x256xf32, #tpu.memory_space<vmem>>, vector<1x1x256xf32>
    %289 = vector.shape_cast %288 : vector<1x1x256xf32> to vector<1x256xf32>
    %c0_139 = arith.constant 0 : index
    %c0_140 = arith.constant 0 : index
    %c0_141 = arith.constant 0 : index
    %290 = vector.load %arg26[%c0_139, %c0_140, %c0_141] : memref<1x1x256xf32, #tpu.memory_space<vmem>>, vector<1x1x256xf32>
    %291 = vector.shape_cast %290 : vector<1x1x256xf32> to vector<1x256xf32>
    %cst_142 = arith.constant dense<0.000000e+00> : vector<16xf32>
    %292 = vector.multi_reduction <add>, %287, %cst_142 [1] : vector<16x256xf32> to vector<16xf32>
    %293 = vector.shape_cast %292 : vector<16xf32> to vector<16x1xf32>
    %cst_143 = arith.constant 2.560000e+02 : f32
    %294 = vector.broadcast %cst_143 : f32 to vector<16x1xf32>
    %295 = arith.divf %293, %294 : vector<16x1xf32>
    %296 = vector.broadcast %295 : vector<16x1xf32> to vector<16x256xf32>
    %297 = arith.subf %287, %296 : vector<16x256xf32>
    %298 = arith.mulf %297, %297 : vector<16x256xf32>
    %cst_144 = arith.constant dense<0.000000e+00> : vector<16xf32>
    %299 = vector.multi_reduction <add>, %298, %cst_144 [1] : vector<16x256xf32> to vector<16xf32>
    %300 = vector.shape_cast %299 : vector<16xf32> to vector<16x1xf32>
    %cst_145 = arith.constant 2.560000e+02 : f32
    %301 = vector.broadcast %cst_145 : f32 to vector<16x1xf32>
    %302 = arith.divf %300, %301 : vector<16x1xf32>
    %303 = vector.broadcast %295 : vector<16x1xf32> to vector<16x256xf32>
    %304 = arith.subf %287, %303 : vector<16x256xf32>
    %cst_146 = arith.constant 9.99999996E-13 : f32
    %305 = vector.broadcast %cst_146 : f32 to vector<16x1xf32>
    %306 = arith.addf %302, %305 : vector<16x1xf32>
    %307 = math.rsqrt %306 : vector<16x1xf32>
    %308 = vector.broadcast %307 : vector<16x1xf32> to vector<16x256xf32>
    %309 = arith.mulf %304, %308 : vector<16x256xf32>
    %310 = vector.broadcast %289 : vector<1x256xf32> to vector<16x256xf32>
    %311 = arith.mulf %309, %310 : vector<16x256xf32>
    %312 = vector.broadcast %291 : vector<1x256xf32> to vector<16x256xf32>
    %313 = arith.addf %311, %312 : vector<16x256xf32>
    %c0_147 = arith.constant 0 : index
    %c0_148 = arith.constant 0 : index
    %314 = vector.load %arg28[%c0_147, %c0_148] : memref<16x256xf32, #tpu.memory_space<vmem>>, vector<16x256xf32>
    tpu.vector_store %arg28[%c0_147, %c0_148], %313 {strides = array<i32>} : memref<16x256xf32, #tpu.memory_space<vmem>>, vector<16x256xf32>,
    %c1_i32 = arith.constant 1 : i32
    %315 = arith.cmpi eq, %arg0, %c1_i32 : i32
    %316 = arith.extui %315 : i1 to i32
    %c0_i32_149 = arith.constant 0 : i32
    %317 = arith.cmpi ne, %316, %c0_i32_149 : i32
    scf.if %317 {
      %318 = arith.truncf %313 : vector<16x256xf32> to vector<16x256xbf16>
      %c0_150 = arith.constant 0 : index
      %c0_151 = arith.constant 0 : index
      %319 = vector.load %arg5[%c0_150, %c0_151] : memref<256x128xbf16, #tpu.memory_space<vmem>>, vector<256x128xbf16>
      %cst_152 = arith.constant dense<0.000000e+00> : vector<16x128xf32>
      %320 = tpu.matmul %318, %319, %cst_152 {dimension_numbers = #tpu.dot_dimension_numbers<[1], [0], [0], [1], [0, 0, 1, 1], [], []>} : vector<16x256xbf16>, vector<256x128xbf16>, vector<16x128xf32> -> vector<16x128xf32>
      %c0_153 = arith.constant 0 : index
      %c0_154 = arith.constant 0 : index
      %321 = vector.load %arg6[%c0_153, %c0_154] : memref<1x128xf32, #tpu.memory_space<vmem>>, vector<1x128xf32>
      %322 = vector.broadcast %321 : vector<1x128xf32> to vector<16x128xf32>
      %323 = arith.addf %320, %322 : vector<16x128xf32>
      %324 = arith.truncf %323 : vector<16x128xf32> to vector<16x128xbf16>
      %c0_155 = arith.constant 0 : index
      %c0_156 = arith.constant 0 : index
      %325 = vector.load %arg27[%c0_155, %c0_156] : memref<16x128xbf16, #tpu.memory_space<vmem>>, vector<16x128xbf16>
      tpu.vector_store %arg27[%c0_155, %c0_156], %324 {strides = array<i32>} : memref<16x128xbf16, #tpu.memory_space<vmem>>, vector<16x128xbf16>,
    } else {
    }
    return
  }
  func.func @transform_0(%arg0: i32) -> (i32, i32) {
    %c0_i32 = arith.constant 0 : i32
    %c0_i32_0 = arith.constant 0 : i32
    %c0_i32_1 = arith.constant 0 : i32
    return %c0_i32, %c0_i32_0 : i32, i32
  }
  func.func @transform_1(%arg0: i32) -> (i32, i32) {
    %c0_i32 = arith.constant 0 : i32
    %c0_i32_0 = arith.constant 0 : i32
    %c0_i32_1 = arith.constant 0 : i32
    return %c0_i32, %c0_i32_0 : i32, i32
  }
  func.func @transform_2(%arg0: i32) -> (i32, i32) {
    %c0_i32 = arith.constant 0 : i32
    %c0_i32_0 = arith.constant 0 : i32
    %c0_i32_1 = arith.constant 0 : i32
    return %c0_i32, %c0_i32_0 : i32, i32
  }
  func.func @transform_3(%arg0: i32) -> (i32, i32) {
    %c0_i32 = arith.constant 0 : i32
    %c0_i32_0 = arith.constant 0 : i32
    %c0_i32_1 = arith.constant 0 : i32
    return %c0_i32, %c0_i32_0 : i32, i32
  }
  func.func @transform_4(%arg0: i32) -> (i32, i32) {
    %c0_i32 = arith.constant 0 : i32
    %c0_i32_0 = arith.constant 0 : i32
    %c0_i32_1 = arith.constant 0 : i32
    return %c0_i32, %c0_i32_0 : i32, i32
  }
  func.func @transform_5(%arg0: i32) -> (i32, i32) {
    %c0_i32 = arith.constant 0 : i32
    %c0_i32_0 = arith.constant 0 : i32
    %c0_i32_1 = arith.constant 0 : i32
    return %c0_i32, %c0_i32_0 : i32, i32
  }
  func.func @transform_6(%arg0: i32) -> (i32, i32, i32) {
    %c0_i32 = arith.constant 0 : i32
    %c0_i32_0 = arith.constant 0 : i32
    %c0_i32_1 = arith.constant 0 : i32
    return %arg0, %c0_i32, %c0_i32_0 : i32, i32, i32
  }
  func.func @transform_7(%arg0: i32) -> (i32, i32, i32) {
    %c0_i32 = arith.constant 0 : i32
    %c0_i32_0 = arith.constant 0 : i32
    %c0_i32_1 = arith.constant 0 : i32
    return %arg0, %c0_i32, %c0_i32_0 : i32, i32, i32
  }
  func.func @transform_8(%arg0: i32) -> (i32, i32, i32) {
    %c0_i32 = arith.constant 0 : i32
    %c0_i32_0 = arith.constant 0 : i32
    %c0_i32_1 = arith.constant 0 : i32
    return %arg0, %c0_i32, %c0_i32_0 : i32, i32, i32
  }
  func.func @transform_9(%arg0: i32) -> (i32, i32, i32) {
    %c0_i32 = arith.constant 0 : i32
    %c0_i32_0 = arith.constant 0 : i32
    %c0_i32_1 = arith.constant 0 : i32
    return %arg0, %c0_i32, %c0_i32_0 : i32, i32, i32
  }
  func.func @transform_10(%arg0: i32) -> (i32, i32, i32) {
    %c0_i32 = arith.constant 0 : i32
    %c0_i32_0 = arith.constant 0 : i32
    %c0_i32_1 = arith.constant 0 : i32
    return %arg0, %c0_i32, %c0_i32_0 : i32, i32, i32
  }
  func.func @transform_11(%arg0: i32) -> (i32, i32, i32) {
    %c0_i32 = arith.constant 0 : i32
    %c0_i32_0 = arith.constant 0 : i32
    %c0_i32_1 = arith.constant 0 : i32
    return %arg0, %c0_i32, %c0_i32_0 : i32, i32, i32
  }
  func.func @transform_12(%arg0: i32) -> (i32, i32, i32) {
    %c0_i32 = arith.constant 0 : i32
    %c0_i32_0 = arith.constant 0 : i32
    %c0_i32_1 = arith.constant 0 : i32
    return %arg0, %c0_i32, %c0_i32_0 : i32, i32, i32
  }
  func.func @transform_13(%arg0: i32) -> (i32, i32, i32) {
    %c0_i32 = arith.constant 0 : i32
    %c0_i32_0 = arith.constant 0 : i32
    %c0_i32_1 = arith.constant 0 : i32
    return %arg0, %c0_i32, %c0_i32_0 : i32, i32, i32
  }
  func.func @transform_14(%arg0: i32) -> (i32, i32, i32) {
    %c0_i32 = arith.constant 0 : i32
    %c0_i32_0 = arith.constant 0 : i32
    %c0_i32_1 = arith.constant 0 : i32
    return %arg0, %c0_i32, %c0_i32_0 : i32, i32, i32
  }
  func.func @transform_15(%arg0: i32) -> (i32, i32, i32) {
    %c0_i32 = arith.constant 0 : i32
    %c0_i32_0 = arith.constant 0 : i32
    %c0_i32_1 = arith.constant 0 : i32
    return %arg0, %c0_i32, %c0_i32_0 : i32, i32, i32
  }
  func.func @transform_16(%arg0: i32) -> (i32, i32, i32) {
    %c0_i32 = arith.constant 0 : i32
    %c0_i32_0 = arith.constant 0 : i32
    %c0_i32_1 = arith.constant 0 : i32
    return %arg0, %c0_i32, %c0_i32_0 : i32, i32, i32
  }
  func.func @transform_17(%arg0: i32) -> (i32, i32, i32) {
    %c0_i32 = arith.constant 0 : i32
    %c0_i32_0 = arith.constant 0 : i32
    %c0_i32_1 = arith.constant 0 : i32
    return %arg0, %c0_i32, %c0_i32_0 : i32, i32, i32
  }
  func.func @transform_18(%arg0: i32) -> (i32, i32, i32) {
    %c0_i32 = arith.constant 0 : i32
    %c0_i32_0 = arith.constant 0 : i32
    %c0_i32_1 = arith.constant 0 : i32
    return %arg0, %c0_i32, %c0_i32_0 : i32, i32, i32
  }
  func.func @transform_19(%arg0: i32) -> (i32, i32, i32) {
    %c0_i32 = arith.constant 0 : i32
    %c0_i32_0 = arith.constant 0 : i32
    %c0_i32_1 = arith.constant 0 : i32
    return %arg0, %c0_i32, %c0_i32_0 : i32, i32, i32
  }
  func.func @transform_20(%arg0: i32) -> (i32, i32, i32) {
    %c0_i32 = arith.constant 0 : i32
    %c0_i32_0 = arith.constant 0 : i32
    %c0_i32_1 = arith.constant 0 : i32
    return %arg0, %c0_i32, %c0_i32_0 : i32, i32, i32
  }
  func.func @transform_21(%arg0: i32) -> (i32, i32, i32) {
    %c0_i32 = arith.constant 0 : i32
    %c0_i32_0 = arith.constant 0 : i32
    %c0_i32_1 = arith.constant 0 : i32
    return %arg0, %c0_i32, %c0_i32_0 : i32, i32, i32
  }
  func.func @transform_22(%arg0: i32) -> (i32, i32, i32) {
    %c0_i32 = arith.constant 0 : i32
    %c0_i32_0 = arith.constant 0 : i32
    %c0_i32_1 = arith.constant 0 : i32
    return %arg0, %c0_i32, %c0_i32_0 : i32, i32, i32
  }
  func.func @transform_23(%arg0: i32) -> (i32, i32, i32) {
    %c0_i32 = arith.constant 0 : i32
    %c0_i32_0 = arith.constant 0 : i32
    %c0_i32_1 = arith.constant 0 : i32
    return %arg0, %c0_i32, %c0_i32_0 : i32, i32, i32
  }
  func.func @transform_24(%arg0: i32) -> (i32, i32, i32) {
    %c0_i32 = arith.constant 0 : i32
    %c0_i32_0 = arith.constant 0 : i32
    %c0_i32_1 = arith.constant 0 : i32
    return %arg0, %c0_i32, %c0_i32_0 : i32, i32, i32
  }
  func.func @transform_25(%arg0: i32) -> (i32, i32, i32) {
    %c0_i32 = arith.constant 0 : i32
    %c0_i32_0 = arith.constant 0 : i32
    %c0_i32_1 = arith.constant 0 : i32
    return %arg0, %c0_i32, %c0_i32_0 : i32, i32, i32
  }
  func.func @transform_26(%arg0: i32) -> (i32, i32) {
    %c0_i32 = arith.constant 0 : i32
    %c0_i32_0 = arith.constant 0 : i32
    %c0_i32_1 = arith.constant 0 : i32
    return %c0_i32, %c0_i32_0 : i32, i32
  }
}

module attributes {stable_mosaic.version = 11 : i64} {
  func.func @_ib_stub_kernel(%arg0: i32, %arg1: memref<16x256xbf16, #tpu.memory_space<vmem>>, %arg2: memref<256x256xbf16, #tpu.memory_space<vmem>>, %arg3: memref<1x256xf32, #tpu.memory_space<vmem>>, %arg4: memref<8x256xbf16, #tpu.memory_space<vmem>>, %arg5: memref<16x256xbf16, #tpu.memory_space<vmem>>) attributes {dimension_semantics = [#tpu.dimension_semantics<arbitrary>], iteration_bounds = array<i64: 1>, scalar_prefetch = 0 : i64, scratch_operands = 0 : i64, tpu.core_type = #tpu.core_type<tc>, window_params = [{pipeline_mode = #tpu.pipeline_mode<synchronous>, transform_indices = @transform_0, window_bounds = array<i64: 16, 256>}, {pipeline_mode = #tpu.pipeline_mode<synchronous>, transform_indices = @transform_1, window_bounds = array<i64: 256, 256>}, {pipeline_mode = #tpu.pipeline_mode<synchronous>, transform_indices = @transform_2, window_bounds = array<i64: 1, 256>}, {pipeline_mode = #tpu.pipeline_mode<synchronous>, transform_indices = @transform_3, window_bounds = array<i64: 8, 256>}, {pipeline_mode = #tpu.pipeline_mode<synchronous>, transform_indices = @transform_4, window_bounds = array<i64: 16, 256>}]} {
    %c0 = arith.constant 0 : index
    %c0_0 = arith.constant 0 : index
    %0 = vector.load %arg1[%c0, %c0_0] : memref<16x256xbf16, #tpu.memory_space<vmem>>, vector<16x256xbf16>
    %c0_1 = arith.constant 0 : index
    %c0_2 = arith.constant 0 : index
    %1 = vector.load %arg2[%c0_1, %c0_2] : memref<256x256xbf16, #tpu.memory_space<vmem>>, vector<256x256xbf16>
    %cst = arith.constant dense<0.000000e+00> : vector<16x256xf32>
    %2 = tpu.matmul %0, %1, %cst {dimension_numbers = #tpu.dot_dimension_numbers<[1], [0], [0], [1], [0, 0, 1, 1], [], []>} : vector<16x256xbf16>, vector<256x256xbf16>, vector<16x256xf32> -> vector<16x256xf32>
    %c0_3 = arith.constant 0 : index
    %c0_4 = arith.constant 0 : index
    %3 = vector.load %arg3[%c0_3, %c0_4] : memref<1x256xf32, #tpu.memory_space<vmem>>, vector<1x256xf32>
    %4 = vector.broadcast %3 : vector<1x256xf32> to vector<16x256xf32>
    %5 = arith.addf %2, %4 : vector<16x256xf32>
    %c0_5 = arith.constant 0 : index
    %c0_6 = arith.constant 0 : index
    %6 = vector.load %arg4[%c0_5, %c0_6] : memref<8x256xbf16, #tpu.memory_space<vmem>>, vector<8x256xbf16>
    %7 = arith.extf %6 : vector<8x256xbf16> to vector<8x256xf32>
    %8 = vector.extract_strided_slice %5 {offsets = [0, 0], sizes = [8, 256], strides = [1, 1]} : vector<16x256xf32> to vector<8x256xf32>
    %9 = arith.addf %8, %7 : vector<8x256xf32>
    %10 = arith.truncf %9 : vector<8x256xf32> to vector<8x256xbf16>
    %c0_7 = arith.constant 0 : index
    %c0_8 = arith.constant 0 : index
    %11 = vector.load %arg5[%c0_7, %c0_8] : memref<16x256xbf16, #tpu.memory_space<vmem>>, vector<8x256xbf16>
    tpu.vector_store %arg5[%c0_7, %c0_8], %10 {strides = array<i32>} : memref<16x256xbf16, #tpu.memory_space<vmem>>, vector<8x256xbf16>,
    %12 = vector.extract_strided_slice %5 {offsets = [8, 0], sizes = [8, 256], strides = [1, 1]} : vector<16x256xf32> to vector<8x256xf32>
    %13 = arith.addf %12, %7 : vector<8x256xf32>
    %14 = arith.truncf %13 : vector<8x256xf32> to vector<8x256xbf16>
    %c8 = arith.constant 8 : index
    %c0_9 = arith.constant 0 : index
    %15 = vector.load %arg5[%c8, %c0_9] : memref<16x256xbf16, #tpu.memory_space<vmem>>, vector<8x256xbf16>
    tpu.vector_store %arg5[%c8, %c0_9], %14 {strides = array<i32>} : memref<16x256xbf16, #tpu.memory_space<vmem>>, vector<8x256xbf16>,
    return
  }
  func.func @transform_0(%arg0: i32) -> (i32, i32) {
    %c0_i32 = arith.constant 0 : i32
    %c0_i32_0 = arith.constant 0 : i32
    %c0_i32_1 = arith.constant 0 : i32
    return %c0_i32, %c0_i32_0 : i32, i32
  }
  func.func @transform_1(%arg0: i32) -> (i32, i32) {
    %c0_i32 = arith.constant 0 : i32
    %c0_i32_0 = arith.constant 0 : i32
    %c0_i32_1 = arith.constant 0 : i32
    return %c0_i32, %c0_i32_0 : i32, i32
  }
  func.func @transform_2(%arg0: i32) -> (i32, i32) {
    %c0_i32 = arith.constant 0 : i32
    %c0_i32_0 = arith.constant 0 : i32
    %c0_i32_1 = arith.constant 0 : i32
    return %c0_i32, %c0_i32_0 : i32, i32
  }
  func.func @transform_3(%arg0: i32) -> (i32, i32) {
    %c0_i32 = arith.constant 0 : i32
    %c0_i32_0 = arith.constant 0 : i32
    %c0_i32_1 = arith.constant 0 : i32
    return %c0_i32, %c0_i32_0 : i32, i32
  }
  func.func @transform_4(%arg0: i32) -> (i32, i32) {
    %c0_i32 = arith.constant 0 : i32
    %c0_i32_0 = arith.constant 0 : i32
    %c0_i32_1 = arith.constant 0 : i32
    return %c0_i32, %c0_i32_0 : i32, i32
  }
}

</mosaic_0001>

<bundles_post_ra>
// kernel: audio_encoder_forward.2
= control target key start
LH: loop header
LB: loop body
LE: loop exit
PB: predicated region body
PF: predicated region fallthrough
CT: control target
= control target key end

     0   :  { %9 = vsyncpa [#allocation3], 0  ;;  %s434_s15 = smov [#allocation2]   ;;  %s483_s0 = inlined_call_operand.vmem [shape: bf16[16,256], index: 0, kind: input, shape index: {}]   ;;  %s484_s1 = inlined_call_operand.hbm [shape: bf16[256,256], index: 1, kind: input, shape index: {}]   ;;  %s485_s2 = inlined_call_operand.vmem [shape: f32[1,256], index: 2, kind: input, shape index: {}]   ;;  %s486_s3 = inlined_call_operand.vmem [shape: bf16[8,256], index: 3, kind: input, shape index: {}]   ;;  %s487_s4 = inlined_call_operand.vmem [shape: bf16[16,256], index: 4, kind: output, shape index: {}]  }
   0x1   :  { %s17_s16 = sshll.u32 %s434_s15, 4  ;;  %s18_s16 = int_to_ptr.vmem [resolvable:$true] %s17_s16 }
   0x2   :  { %s420_s17 = scalar_lea.vmem %s18_s16, 4096  ;;  %p425_p1 = scmp.lt.s32.totalorder %s18_s16, %s18_s16 }
   0x3   :  { %p421_p0 = scmp.ne.s32.totalorder %s18_s16, %s420_s17  ;;  %p426_p2 = scmp.lt.s32.totalorder %s420_s17, %s420_s17 }
   0x5   :  { %p427_p3 = por %p426_p2, %p425_p1 }
   0x7   :  { %p428_p4 = pnand %p427_p3, %p421_p0 }
   0x9   :  { %431 = shalt.err (!%p428_p4)
}
   0xa   :  { %s435_s18 = smov 128   ;;  %s436_s19 = smov 8  }
   0xb   :  { %23 = dma.hbm_to_vmem [thread:$0]  %s484_s1, 4096, %s18_s16, [#allocation3], %s435_s18, %s435_s18, %s436_s19  }
   0xc   :  { %432 = dma.done.wait [#allocation3], 4096  }
   0xd   :  { %433 = vsyncadd [#allocation3], 4294963200  ;;  %v361_v0 = vld [vmem:[#allocation2 + $0x74] ss:$8 sps:$4 sm:$0xff]   ;;  %v363_v1 = vld [vmem:[#allocation2 + $0x70] ss:$8 sps:$4 sm:$0xff]   ;;  %v67_v34 = vlaneseq }
   0xe   :  { %247 = vmatprep.subr.bf16.mxu0 %v361_v0  ;;  %v364_v2 = vld [vmem:[#allocation2 + $0x64] ss:$8 sps:$4 sm:$0xff]   ;;  %v366_v3 = vld [vmem:[#allocation2 + $0x60] ss:$8 sps:$4 sm:$0xff]   ;;  %v367_v4 = vld [vmem:[#allocation2 + $0x54] ss:$8 sps:$4 sm:$0xff]  }
   0xf   :  { %248 = vmatpush1.bf16.msra.mxu0 %v363_v1  ;;  %v369_v5 = vld [vmem:[#allocation2 + $0x50] ss:$8 sps:$4 sm:$0xff]   ;;  %v370_v6 = vld [vmem:[#allocation2 + $0x44] ss:$8 sps:$4 sm:$0xff]   ;;  %v372_v7 = vld [vmem:[#allocation2 + $0x40] ss:$8 sps:$4 sm:$0xff]  }
  0x10   :  { %249 = vmatprep.subr.bf16.mxu0 %v364_v2  ;;  %v373_v8 = vld [vmem:[#allocation2 + $0x34] ss:$8 sps:$4 sm:$0xff]   ;;  %v375_v9 = vld [vmem:[#allocation2 + $0x30] ss:$8 sps:$4 sm:$0xff]   ;;  %v376_v10 = vld [vmem:[#allocation2 + $0x24] ss:$8 sps:$4 sm:$0xff]  }
  0x11   :  { %v378_v11 = vld [vmem:[#allocation2 + $0x20] ss:$8 sps:$4 sm:$0xff]   ;;  %v379_v12 = vld [vmem:[#allocation2 + $0x14] ss:$8 sps:$4 sm:$0xff]   ;;  %v411_v13 = vld [vmem:[%s483_s0 + $0x4] ss:$8 sps:$4 sm:$0xff]  }
  0x12   :  { %v381_v14 = vld [vmem:[#allocation2 + $0x10] ss:$8 sps:$4 sm:$0xff]   ;;  %v382_v15 = vld [vmem:[#allocation2 + $0x4] ss:$8 sps:$4 sm:$0xff]   ;;  %279 = vmatprep.mubr.bf16.mxu0 %v411_v13  ;;  %v384_v16 = vld [vmem:[#allocation2] ss:$8 sps:$4 sm:$0xff]  }
  0x13   :  { %250 = vmatpush1.bf16.msra.mxu0 %v366_v3  ;;  %v385_v17 = vld [vmem:[#allocation2 + $0xf4] ss:$8 sps:$4 sm:$0xff]   ;;  %v387_v18 = vld [vmem:[#allocation2 + $0xf0] ss:$8 sps:$4 sm:$0xff]   ;;  %v388_v19 = vld [vmem:[#allocation2 + $0xe4] ss:$8 sps:$4 sm:$0xff]  }
  0x14   :  { %251 = vmatprep.subr.bf16.mxu0 %v367_v4  ;;  %v390_v20 = vld [vmem:[#allocation2 + $0xe0] ss:$8 sps:$4 sm:$0xff]   ;;  %v391_v21 = vld [vmem:[#allocation2 + $0xd4] ss:$8 sps:$4 sm:$0xff]   ;;  %v393_v22 = vld [vmem:[#allocation2 + $0xd0] ss:$8 sps:$4 sm:$0xff]  }
  0x15   :  { %v394_v23 = vld [vmem:[#allocation2 + $0xc4] ss:$8 sps:$4 sm:$0xff]   ;;  %v396_v24 = vld [vmem:[#allocation2 + $0xc0] ss:$8 sps:$4 sm:$0xff]   ;;  %v397_v25 = vld [vmem:[#allocation2 + $0xb4] ss:$8 sps:$4 sm:$0xff]  }
  0x16   :  { %v399_v26 = vld [vmem:[#allocation2 + $0xb0] ss:$8 sps:$4 sm:$0xff]   ;;  %v400_v27 = vld [vmem:[#allocation2 + $0xa4] ss:$8 sps:$4 sm:$0xff]   ;;  %v402_v28 = vld [vmem:[#allocation2 + $0xa0] ss:$8 sps:$4 sm:$0xff]  }
  0x17   :  { %252 = vmatpush1.bf16.msra.mxu0 %v369_v5  ;;  %v403_v29 = vld [vmem:[#allocation2 + $0x94] ss:$8 sps:$4 sm:$0xff]   ;;  %v405_v30 = vld [vmem:[#allocation2 + $0x90] ss:$8 sps:$4 sm:$0xff]   ;;  %v406_v31 = vld [vmem:[#allocation2 + $0x84] ss:$8 sps:$4 sm:$0xff]  }
  0x18   :  { %253 = vmatprep.subr.bf16.mxu0 %v370_v6  ;;  %v408_v32 = vld [vmem:[#allocation2 + $0x80] ss:$8 sps:$4 sm:$0xff]   ;;  %v68_v35 = vshrl.u32 %v67_v34, 7 }
  0x19   :  { %v409_v33 = vld [vmem:[%s483_s0] ss:$8 sps:$4 sm:$0xff]  }
  0x1a   :  { %v69_v36 = vsub.s32 0, %v68_v35  ;;  %v65_v37 = vld [vmem:[%s485_s2] sm:$0x3]  ;;  %v73_v38 = vsub.s32 1, %v68_v35 }
  0x1b   :  { %254 = vmatpush1.bf16.msra.mxu0 %v372_v7  ;;  %v290_v40 = vld [vmem:[%s486_s3] sm:$0xff] }
  0x1c   :  { %255 = vmatprep.subr.bf16.mxu0 %v373_v8  ;;  %v70_v39 = vrot.slane %v65_v37, %v69_v36  ;;  %v74_v41 = vrot.slane %v65_v37, %v73_v38  ;;  %v291_v44 = vunpack.c.l.bf16 %v290_v40  ;;  %v292_v45 = vunpack.c.h.bf16 %v290_v40 }
  0x1f   :  { %256 = vmatpush1.bf16.msra.mxu0 %v375_v9 }
  0x20   :  { %257 = vmatprep.subr.bf16.mxu0 %v376_v10 }
  0x23   :  { %258 = vmatpush1.bf16.msra.mxu0 %v378_v11 }
  0x24   :  { %259 = vmatprep.subr.bf16.mxu0 %v379_v12 }
  0x27   :  { %260 = vmatpush1.bf16.msra.mxu0 %v381_v14 }
  0x28   :  { %261 = vmatprep.subr.bf16.mxu0 %v382_v15 }
  0x2b   :  { %262 = vmatpush1.bf16.msra.mxu0 %v384_v16 }
  0x2c   :  { %263 = vmatprep.subr.bf16.mxu0 %v385_v17 }
  0x2f   :  { %264 = vmatpush2.bf16.msra.mxu0 %v387_v18 }
  0x30   :  { %265 = vmatprep.subr.bf16.mxu0 %v388_v19 }
  0x33   :  { %266 = vmatpush2.bf16.msra.mxu0 %v390_v20 }
  0x34   :  { %267 = vmatprep.subr.bf16.mxu0 %v391_v21 }
  0x37   :  { %268 = vmatpush2.bf16.msra.mxu0 %v393_v22 }
  0x38   :  { %269 = vmatprep.subr.bf16.mxu0 %v394_v23 }
  0x3b   :  { %270 = vmatpush2.bf16.msra.mxu0 %v396_v24 }
  0x3c   :  { %271 = vmatprep.subr.bf16.mxu0 %v397_v25 }
  0x3f   :  { %272 = vmatpush2.bf16.msra.mxu0 %v399_v26 }
  0x40   :  { %273 = vmatprep.subr.bf16.mxu0 %v400_v27 }
  0x43   :  { %274 = vmatpush2.bf16.msra.mxu0 %v402_v28 }
  0x44   :  { %275 = vmatprep.subr.bf16.mxu0 %v403_v29 }
  0x47   :  { %276 = vmatpush2.bf16.msra.mxu0 %v405_v30 }
  0x48   :  { %277 = vmatprep.subr.bf16.mxu0 %v406_v31 }
  0x4b   :  { %278 = vmatpush2.bf16.msra.mxu0 %v408_v32 }
  0x4e   :  { %280 = vmatmul.mubr.bf16.vlgmr.msra.gmra.mxu0 %v409_v33 }
 0x10e   :  { %v281_v42 = vpop.f32.mrf.mxu0 }
 0x10f   :  { %v282_v43 = vadd.f32 %v281_v42, %v70_v39 }
 0x110   :  { %v283_v46 = vpop.f32.mrf.mxu0 }
 0x111   :  { %v284_v47 = vadd.f32 %v283_v46, %v74_v41  ;;  %v293_v49 = vadd.f32 %v291_v44, %v282_v43 }
 0x112   :  { %v285_v48 = vpop.f32.mrf.mxu0 }
 0x113   :  { %v294_v50 = vadd.f32 %v292_v45, %v284_v47  ;;  %v286_v51 = vadd.f32 %v285_v48, %v70_v39 }
 0x114   :  { %v287_v52 = vpop.f32.mrf.mxu0 }
 0x115   :  { %v356_v53 = vpack.c.bf16 %v294_v50, %v293_v49  ;;  %v288_v54 = vadd.f32 %v287_v52, %v74_v41  ;;  %v304_v55 = vadd.f32 %v291_v44, %v286_v51 }
 0x117   :  { %303 = vst [vmem:[%s487_s4] sm:$0xff] %v356_v53  ;;  %v305_v56 = vadd.f32 %v292_v45, %v288_v54 }
 0x119   :  { %v357_v57 = vpack.c.bf16 %v305_v56, %v304_v55 }
 0x11b   :  { %314 = vst [vmem:[%s487_s4 + $0x8] sm:$0xff] %v357_v57 }
 0x11c   :  { %319 = vsyncpa [#allocation3], 1 }

// kernel: audio_encoder_forward.3
= control target key start
LH: loop header
LB: loop body
LE: loop exit
PB: predicated region body
PF: predicated region fallthrough
CT: control target
= control target key end

     0   :  { %s8969_s0 = inlined_call_operand.vmem [shape: bf16[16,256], index: 0, kind: input, shape index: {}]   ;;  %s8970_s1 = inlined_call_operand.vmem [shape: bf16[8,256], index: 1, kind: input, shape index: {}]   ;;  %s8971_s2 = inlined_call_operand.vmem [shape: f32[1,256], index: 2, kind: input, shape index: {}]   ;;  %s8972_s3 = inlined_call_operand.vmem [shape: f32[1,256], index: 3, kind: input, shape index: {}]   ;;  %s8973_s4 = inlined_call_operand.vmem [shape: bf16[256,128], index: 4, kind: input, shape index: {}]   ;;  %s8974_s5 = inlined_call_operand.vmem [shape: f32[1,128], index: 5, kind: input, shape index: {}]   ;;  %s8975_s6 = inlined_call_operand.hbm [shape: bf16[2,256,768], index: 6, kind: input, shape index: {}]   ;;  %s8976_s7 = inlined_call_operand.vmem [shape: f32[2,1,768], index: 7, kind: input, shape index: {}]   ;;  %s8977_s8 = inlined_call_operand.vmem [shape: bf16[2,256,256], index: 8, kind: input, shape index: {}]   ;;  %s8978_s9 = inlined_call_operand.vmem [shape: f32[2,1,256], index: 9, kind: input, shape index: {}]   ;;  %s8979_s10 = inlined_call_operand.vmem [shape: f32[2,1,256], index: 10, kind: input, shape index: {}]   ;;  %s8980_s11 = inlined_call_operand.vmem [shape: f32[2,1,256], index: 11, kind: input, shape index: {}]   ;;  %s8981_s12 = inlined_call_operand.hbm [shape: bf16[2,256,256], index: 12, kind: input, shape index: {}]   ;;  %s8982_s13 = inlined_call_operand.vmem [shape: f32[2,1,256], index: 13, kind: input, shape index: {}]   ;;  %s8983_s14 = inlined_call_operand.hbm [shape: bf16[2,256,512], index: 14, kind: input, shape index: {}]   ;;  %s8984_s15 = inlined_call_operand.vmem [shape: f32[2,1,512], index: 15, kind: input, shape index: {}]   ;;  %s8985_s16 = inlined_call_operand.hbm [shape: bf16[2,256,256], index: 16, kind: input, shape index: {}]   ;;  %s8986_s17 = inlined_call_operand.vmem [shape: f32[2,1,256], index: 17, kind: input, shape index: {}]   ;;  %s8987_s18 = inlined_call_operand.vmem [shape: f32[2,1,256], index: 18, kind: input, shape index: {}]   ;;  %s8988_s19 = inlined_call_operand.vmem [shape: f32[2,1,256], index: 19, kind: input, shape index: {}]   ;;  %s8989_s20 = inlined_call_operand.hbm [shape: bf16[2,256,512], index: 20, kind: input, shape index: {}]   ;;  %s8990_s21 = inlined_call_operand.vmem [shape: f32[2,1,512], index: 21, kind: input, shape index: {}]   ;;  %s8991_s22 = inlined_call_operand.hbm [shape: bf16[2,512,256], index: 22, kind: input, shape index: {}]   ;;  %s8992_s23 = inlined_call_operand.vmem [shape: f32[2,1,256], index: 23, kind: input, shape index: {}]   ;;  %s8993_s24 = inlined_call_operand.vmem [shape: f32[2,1,256], index: 24, kind: input, shape index: {}]   ;;  %s8994_s25 = inlined_call_operand.vmem [shape: f32[2,1,256], index: 25, kind: input, shape index: {}]   ;;  %s8995_s26 = inlined_call_operand.hbm [shape: bf16[16,128], index: 26, kind: output, shape index: {}]  }
   0x1   :  { %9016 = sst [smem:[#allocation28_spill]] %s8969_s0 }
   0x2   :  { %9017 = sst [smem:[#allocation29_spill]] %s8970_s1 }
   0x3   :  { %9018 = sst [smem:[#allocation30_spill]] %s8971_s2 }
   0x4   :  { %9019 = sst [smem:[#allocation31_spill]] %s8972_s3 }
   0x5   :  { %9020 = sst [smem:[#allocation32_spill]] %s8973_s4 }
   0x6   :  { %9021 = sst [smem:[#allocation33_spill]] %s8974_s5 }
   0x7   :  { %9022 = sst [smem:[#allocation34_spill]] %s8975_s6 }
   0x8   :  { %9023 = sst [smem:[#allocation35_spill]] %s8976_s7 }
   0x9   :  { %9024 = sst [smem:[#allocation36_spill]] %s8977_s8 }
   0xa   :  { %9025 = sst [smem:[#allocation37_spill]] %s8978_s9 }
   0xb   :  { %9026 = sst [smem:[#allocation38_spill]] %s8979_s10 }
   0xc   :  { %9027 = sst [smem:[#allocation39_spill]] %s8981_s12 }
   0xd   :  { %9028 = sst [smem:[#allocation40_spill]] %s8982_s13 }
   0xe   :  { %9029 = sst [smem:[#allocation41_spill]] %s8983_s14 }
   0xf   :  { %9030 = sst [smem:[#allocation42_spill]] %s8984_s15 }
  0x10   :  { %9031 = sst [smem:[#allocation43_spill]] %s8985_s16 }
  0x11   :  { %9032 = sst [smem:[#allocation44_spill]] %s8986_s17 }
  0x12   :  { %9033 = sst [smem:[#allocation45_spill]] %s8987_s18 }
  0x13   :  { %9034 = sst [smem:[#allocation46_spill]] %s8988_s19 }
  0x14   :  { %9035 = sst [smem:[#allocation47_spill]] %s8989_s20 }
  0x15   :  { %9036 = sst [smem:[#allocation48_spill]] %s8990_s21 }
  0x16   :  { %9037 = sst [smem:[#allocation49_spill]] %s8991_s22 }
  0x17   :  { %9038 = sst [smem:[#allocation50_spill]] %s8992_s23 }
  0x18   :  { %9039 = sst [smem:[#allocation51_spill]] %s8993_s24 }
  0x19   :  { %9040 = sst [smem:[#allocation52_spill]] %s8994_s25 }
  0x1a   :  { %9041 = sst [smem:[#allocation53_spill]] %s8995_s26 }
  0x1b   :  { %31 = vsyncpa [#allocation5], 0 }
  0x1c   :  { %33 = vsyncpa [#allocation5 + $0x1], 0 }
  0x1d   :  { %34 = vsyncpa [#allocation8], 0 }
  0x1e   :  { %36 = vsyncpa [#allocation8 + $0x1], 0 }
  0x1f   :  { %37 = vsyncpa [#allocation11], 0 }
  0x20   :  { %39 = vsyncpa [#allocation11 + $0x1], 0 }
  0x21   :  { %40 = vsyncpa [#allocation14], 0 }
  0x22   :  { %42 = vsyncpa [#allocation14 + $0x1], 0 }
  0x23   :  { %43 = vsyncpa [#allocation6], 0  ;;  %s7720_s27 = smov 0   ;;  %s7722_s3 = smov 0  }
  0x24   :  { %s7724_s7 = smov 0   ;;  %s7726_s28 = smov 0  }
  0x25 LB: > { %9042 = sst [smem:[#allocation21_spill]] %s7558_s3  ;;  %s7739_s8 = sadd.s32 4294967295, %s7566_s28   ;;  %s7566_s28 = sphi %s7726_s28, %s9104_s28   ;;  %s7562_s7 = sphi %s7724_s7, %s9107_s7   ;;  %s7558_s3 = sphi %s7722_s3, %s9106_s3   ;;  %s7554_s27 = sphi %s7720_s27, %s9105_s27  }
  0x26   : > { %9043 = sst [smem:[#allocation22_spill]] %s7562_s7  ;;  %s7742_s4 = sadd.s32 1, %s7566_s28  }
  0x27   : > { %9044 = sst [smem:[#allocation23_spill]] %s7742_s4  ;;  %s179_s29 = ssub.s32 %s7566_s28, %s7742_s4 }
  0x28   : > { %s182_s0 = sadd.s32 1, %s7562_s7  ;;  %p180_p0 = scmp.eq.s32.totalorder %s179_s29, 0 }
  0x29   : > { %p189_p1 = scmp.ne.s32.totalorder %s7562_s7, %s7558_s3  ;;  %p190_p2 = scmp.eq.s32.totalorder %s7566_s28, 0 }
  0x2a   : > { %p195_p3 = scmp.ne.s32.totalorder %s7558_s3, %s7554_s27  ;;  %p196_p5 = scmp.eq.s32.totalorder %s7739_s8, 0 }
  0x2b   : > { %s7752_s9 = scalar_select %p180_p0, %s7562_s7, %s182_s0  }
  0x2c   : > { %p191_p4 = por %p190_p2, %p189_p1  ;;  %p6611_p6 = scmp.lt.s32.totalorder %s7566_s28, 2 }
  0x2d   : > { %9045 = sst [smem:[#allocation24_spill]] %s7752_s9  ;;  %p7756_p7 = por %p196_p5, %p195_p3 }
  0x2e   : > { %s7761_s2 = sand.u32 1, %s7562_s7   ;;  %p7763_p8 = pnand %p6611_p6, %p191_p4 }
  0x2f   : > { %s9046_s30 = scalar_select %p7756_p7, 1, 0 }
  0x30   : > { %s9004_s10 = sand.u32 1, %s7566_s28   ;;  %s9002_s6 = sshll.u32 %s7761_s2, 8 }
  0x31   : > { %s9003_s1 = sshll.u32 %s7566_s28, 12  ;;  %s813_s27 = scalar_lea.vmem [#allocation7], %s9002_s6 }
  0x32   : > { %s820_s29 = sshll.u32 %s813_s27, 4  ;;  %s9048_s12 = sld [smem:[#allocation39_spill]]  ;;  %s7779_s29 = int_to_ptr.vmem [resolvable:$true] %s820_s29 }
  0x33   : > { %s7783_s7 = scalar_lea.sflag [#allocation8], %s9004_s10  ;;  %p7789_p10 = pneg %p7763_p8 }
  0x38   : > { %s7777_s4 = scalar_lea.hbm %s9048_s12, %s9003_s1  ;;  %s7329_s0 = scalar_lea.hbm %s9048_s12, 8192 }
  0x39   : > { %s7324_s26 = scalar_lea.hbm %s7777_s4, 4096  ;;  %p7330_p13 = scmp.lt.s32.totalorder %s7777_s4, %s9048_s12 }
  0x3a   : > { %p7325_p9 = scmp.ne.s32.totalorder %s7777_s4, %s7324_s26  ;;  %p7331_p0 = scmp.lt.s32.totalorder %s7329_s0, %s7324_s26 }
  0x3c   : > { %p7327_p11 = pnand %p7789_p10, %p7325_p9  ;;  %p7332_p1 = por %p7331_p0, %p7330_p13 }
  0x3e   : > { %p7328_p12 = pneg %p7327_p11 }
  0x40   : > { %p7333_p2 = pnand %p7332_p1, %p7328_p12 }
  0x42   : > { %7336 = shalt.err (!%p7333_p2)
}
  0x43   : > { %s7337_s10 = scalar_lea.vmem %s7779_s29, 4096  ;;  %s7568_s24 = smov [#allocation7]  }
  0x44   : > { %p7338_p3 = scmp.ne.s32.totalorder %s7779_s29, %s7337_s10  ;;  %s7342_s9 = sshll.u32 %s7568_s24, 4  ;;  %s7343_s9 = int_to_ptr.vmem [resolvable:$false] %s7342_s9 }
  0x45   : > { %s7344_s27 = scalar_lea.vmem %s7343_s9, 8192  ;;  %p7345_p6 = scmp.lt.s32.totalorder %s7779_s29, %s7343_s9 }
  0x46   : > { %p7340_p4 = pnand %p7338_p3, %p7789_p10  ;;  %p7346_p9 = scmp.lt.s32.totalorder %s7344_s27, %s7337_s10 }
  0x48   : > { %p7341_p5 = pneg %p7340_p4  ;;  %p7347_p11 = por %p7346_p9, %p7345_p6 }
  0x4a   : > { %p7348_p7 = pnand %p7347_p11, %p7341_p5 }
  0x4c   : > { %7351 = shalt.err (!%p7348_p7)
}
  0x4d   : > { %s9006_s25 = smov 128   ;;  %s9008_s24 = smov 8  }
  0x4e   : > { %6598 = dma.hbm_to_vmem [thread:$0]  (!%p7763_p8), %s7777_s4, 4096, %s7779_s29, %s7783_s7, %s9006_s25, %s9006_s25, %s9008_s24  }
  0x4f   : > { %p5966_p12 = scmp.ge.s32.totalorder %s7566_s28, 1  ;;  %p975_p7 = scmp.lt.s32.totalorder %s7566_s28, 3 }
  0x50   : > { %s9051_s10 = sshll.u32 %s7566_s28, 12  ;;  %s9052_s16 = sld [smem:[#allocation43_spill]] }
  0x51   : > { %p7817_p13 = pnand %p5966_p12, %p975_p7  ;;  %s9053_s27 = sshll.u32 %s7761_s2, 8 }
  0x52   : > { %s869_s12 = scalar_lea.vmem [#allocation10], %s9053_s27  ;;  %s6572_s4 = smul.u32 768, %s7761_s2 }
  0x53   : > { %s9050_s26 = scalar_select %p7817_p13, 1, 0 }
  0x54   : > { %s876_s23 = sshll.u32 %s869_s12, 4  ;;  %s9054_s29 = sand.u32 1, %s7566_s28   ;;  %s7830_s23 = int_to_ptr.vmem [resolvable:$true] %s876_s23 }
  0x55   : > { %s7835_s25 = scalar_lea.sflag [#allocation11], %s9054_s29 }
  0x56   : > { %s7826_s9 = scalar_lea.hbm %s9052_s16, %s9051_s10  ;;  %s7357_s0 = scalar_lea.hbm %s9052_s16, 8192 }
  0x57   : > { %s7352_s24 = scalar_lea.hbm %s7826_s9, 4096  ;;  %p7358_p3 = scmp.lt.s32.totalorder %s7826_s9, %s9052_s16 }
  0x58   : > { %p7353_p0 = scmp.ne.s32.totalorder %s7826_s9, %s7352_s24  ;;  %p7359_p4 = scmp.lt.s32.totalorder %s7357_s0, %s7352_s24 }
  0x5a   : > { %p7355_p1 = pnand %p7353_p0, %p7789_p10  ;;  %p7360_p5 = por %p7359_p4, %p7358_p3 }
  0x5c   : > { %p7356_p2 = pneg %p7355_p1 }
  0x5e   : > { %p7361_p6 = pnand %p7360_p5, %p7356_p2 }
  0x60   : > { %7364 = shalt.err (!%p7361_p6)
}
  0x61   : > { %s7365_s12 = scalar_lea.vmem %s7830_s23, 4096  ;;  %s7571_s27 = smov [#allocation10]  }
  0x62   : > { %p7366_p9 = scmp.ne.s32.totalorder %s7830_s23, %s7365_s12  ;;  %s7370_s29 = sshll.u32 %s7571_s27, 4  ;;  %s7371_s29 = int_to_ptr.vmem [resolvable:$false] %s7370_s29 }
  0x63   : > { %s7372_s1 = scalar_lea.vmem %s7371_s29, 8192  ;;  %p7373_p7 = scmp.lt.s32.totalorder %s7830_s23, %s7371_s29 }
  0x64   : > { %p7368_p11 = pnand %p7366_p9, %p7789_p10  ;;  %p7374_p0 = scmp.lt.s32.totalorder %s7372_s1, %s7365_s12 }
  0x66   : > { %p7369_p12 = pneg %p7368_p11  ;;  %p7375_p1 = por %p7374_p0, %p7373_p7 }
  0x68   : > { %p7376_p13 = pnand %p7375_p1, %p7369_p12 }
  0x6a   : > { %7379 = shalt.err (!%p7376_p13)
}
  0x6b   : > { %s9055_s19 = smov 8   ;;  %s9056_s21 = smov 128  }
  0x6c   : > { %6604 = dma.hbm_to_vmem [thread:$0]  (!%p7763_p8), %s7826_s9, 4096, %s7830_s23, %s7835_s25, %s9056_s21, %s9056_s21, %s9055_s19  }
  0x6d   : > { %s6573_s24 = smul.u32 12288, %s7566_s28  ;;  %s756_s10 = scalar_lea.vmem [#allocation4], %s6572_s4 }
  0x6e   : > { %s763_s0 = sshll.u32 %s756_s10, 4  ;;  %s9057_s29 = sld [smem:[#allocation34_spill]]  ;;  %s7869_s0 = int_to_ptr.vmem [resolvable:$true] %s763_s0 }
  0x6f   : > { %s7872_s16 = sshll.u32 %s7761_s2, 9  ;;  %s753_s18 = scalar_lea.sflag [#allocation5], %s7761_s2 }
  0x74   : > { %s7867_s1 = scalar_lea.hbm %s9057_s29, %s6573_s24  ;;  %s7385_s4 = scalar_lea.hbm %s9057_s29, 24576 }
  0x75   : > { %s7380_s17 = scalar_lea.hbm %s7867_s1, 12288  ;;  %p7386_p4 = scmp.lt.s32.totalorder %s7867_s1, %s9057_s29 }
  0x76   : > { %p7381_p13 = scmp.ne.s32.totalorder %s7867_s1, %s7380_s17  ;;  %p7387_p5 = scmp.lt.s32.totalorder %s7385_s4, %s7380_s17 }
  0x78   : > { %p7383_p2 = pnand %p7381_p13, %p7789_p10  ;;  %p7388_p6 = por %p7387_p5, %p7386_p4 }
  0x7a   : > { %p7384_p3 = pneg %p7383_p2 }
  0x7c   : > { %p7389_p9 = pnand %p7388_p6, %p7384_p3 }
  0x7e   : > { %7392 = shalt.err (!%p7389_p9)
}
  0x7f   : > { %s7393_s12 = scalar_lea.vmem %s7869_s0, 12288  ;;  %s7572_s27 = smov [#allocation4]  }
  0x80   : > { %p7394_p11 = scmp.ne.s32.totalorder %s7869_s0, %s7393_s12  ;;  %s7398_s23 = sshll.u32 %s7572_s27, 4  ;;  %s7399_s23 = int_to_ptr.vmem [resolvable:$false] %s7398_s23 }
  0x81   : > { %s7400_s9 = scalar_lea.vmem %s7399_s23, 24576  ;;  %p7401_p0 = scmp.lt.s32.totalorder %s7869_s0, %s7399_s23 }
  0x82   : > { %p7396_p12 = pnand %p7394_p11, %p7789_p10  ;;  %p7402_p1 = scmp.lt.s32.totalorder %s7400_s9, %s7393_s12 }
  0x84   : > { %p7397_p7 = pneg %p7396_p12  ;;  %p7403_p13 = por %p7402_p1, %p7401_p0 }
  0x86   : > { %p7404_p2 = pnand %p7403_p13, %p7397_p7 }
  0x88   : > { %7407 = shalt.err (!%p7404_p2)
}
  0x89   : > { %s7573_s17 = smov 384   ;;  %s7574_s4 = smov 24  }
  0x8a   : > { %6595 = dma.hbm_to_vmem [thread:$0]  (!%p7763_p8), %s7867_s1, 12288, %s7869_s0, %s753_s18, %s7573_s17, %s7573_s17, %s7574_s4  }
  0x8b   : > { %s7898_s10 = sshll.u32 %s7566_s28, 13  ;;  %s9058_s14 = sld [smem:[#allocation41_spill]] }
  0x8c   : > { %s841_s23 = scalar_lea.vmem [#allocation9], %s7872_s16 }
  0x8d   : > { %s848_s9 = sshll.u32 %s841_s23, 4  ;;  %s7907_s9 = int_to_ptr.vmem [resolvable:$true] %s848_s9 }
  0x91   : > { %s7904_s27 = scalar_lea.hbm %s9058_s14, %s7898_s10  ;;  %s7413_s0 = scalar_lea.hbm %s9058_s14, 16384 }
  0x92   : > { %s7408_s29 = scalar_lea.hbm %s7904_s27, 8192  ;;  %p7414_p6 = scmp.lt.s32.totalorder %s7904_s27, %s9058_s14 }
  0x93   : > { %p7409_p3 = scmp.ne.s32.totalorder %s7904_s27, %s7408_s29  ;;  %p7415_p9 = scmp.lt.s32.totalorder %s7413_s0, %s7408_s29 }
  0x95   : > { %p7411_p4 = pnand %p7409_p3, %p7789_p10  ;;  %p7416_p11 = por %p7415_p9, %p7414_p6 }
  0x97   : > { %p7412_p5 = pneg %p7411_p4 }
  0x99   : > { %p7417_p12 = pnand %p7416_p11, %p7412_p5 }
  0x9b   : > { %7420 = shalt.err (!%p7417_p12)
}
  0x9c   : > { %s7421_s4 = scalar_lea.vmem %s7907_s9, 8192  ;;  %s7575_s24 = smov [#allocation9]  }
  0x9d   : > { %p7422_p7 = scmp.ne.s32.totalorder %s7907_s9, %s7421_s4  ;;  %s7426_s12 = sshll.u32 %s7575_s24, 4  ;;  %s7427_s12 = int_to_ptr.vmem [resolvable:$false] %s7426_s12 }
  0x9e   : > { %s7428_s23 = scalar_lea.vmem %s7427_s12, 16384  ;;  %p7429_p13 = scmp.lt.s32.totalorder %s7907_s9, %s7427_s12 }
  0x9f   : > { %p7424_p0 = pnand %p7422_p7, %p7789_p10  ;;  %p7430_p2 = scmp.lt.s32.totalorder %s7428_s23, %s7421_s4 }
  0xa1   : > { %p7425_p1 = pneg %p7424_p0  ;;  %p7431_p3 = por %p7430_p2, %p7429_p13 }
  0xa3   : > { %p7432_p4 = pnand %p7431_p3, %p7425_p1 }
  0xa5   : > { %7435 = shalt.err (!%p7432_p4)
}
  0xa6   : > { %s9011_s29 = smov 256   ;;  %s7577_s18 = smov 16  }
  0xa7   : > { %6601 = dma.hbm_to_vmem [thread:$0]  (!%p7763_p8), %s7904_s27, 8192, %s7907_s9, %s7783_s7, %s9011_s29, %s9011_s29, %s7577_s18  }
  0xa8   : > { %s9059_s20 = sld [smem:[#allocation47_spill]]  ;;  %s911_s17 = scalar_lea.vmem [#allocation12], %s7872_s16 }
  0xa9   : > { %s918_s4 = sshll.u32 %s911_s17, 4  ;;  %s919_s4 = int_to_ptr.vmem [resolvable:$true] %s918_s4 }
  0xae   : > { %s7937_s1 = scalar_lea.hbm %s9059_s20, %s7898_s10  ;;  %s7441_s7 = scalar_lea.hbm %s9059_s20, 16384 }
  0xaf   : > { %s7436_s24 = scalar_lea.hbm %s7937_s1, 8192  ;;  %p7442_p11 = scmp.lt.s32.totalorder %s7937_s1, %s9059_s20 }
  0xb0   : > { %p7437_p5 = scmp.ne.s32.totalorder %s7937_s1, %s7436_s24  ;;  %p7443_p12 = scmp.lt.s32.totalorder %s7441_s7, %s7436_s24 }
  0xb2   : > { %p7439_p6 = pnand %p7437_p5, %p7789_p10  ;;  %p7444_p7 = por %p7443_p12, %p7442_p11 }
  0xb4   : > { %p7440_p9 = pneg %p7439_p6 }
  0xb6   : > { %p7445_p0 = pnand %p7444_p7, %p7440_p9 }
  0xb8   : > { %7448 = shalt.err (!%p7445_p0)
}
  0xb9   : > { %s7449_s28 = scalar_lea.vmem %s919_s4, 8192  ;;  %s7578_s0 = smov [#allocation12]  }
  0xba   : > { %p7450_p1 = scmp.ne.s32.totalorder %s919_s4, %s7449_s28  ;;  %s7454_s17 = sshll.u32 %s7578_s0, 4  ;;  %s7455_s17 = int_to_ptr.vmem [resolvable:$false] %s7454_s17 }
  0xbb   : > { %s7456_s29 = scalar_lea.vmem %s7455_s17, 16384  ;;  %p7457_p3 = scmp.lt.s32.totalorder %s919_s4, %s7455_s17 }
  0xbc   : > { %p7452_p13 = pnand %p7450_p1, %p7789_p10  ;;  %p7458_p4 = scmp.lt.s32.totalorder %s7456_s29, %s7449_s28 }
  0xbe   : > { %p7453_p2 = pneg %p7452_p13  ;;  %p7459_p5 = por %p7458_p4, %p7457_p3 }
  0xc0   : > { %p7460_p6 = pnand %p7459_p5, %p7453_p2 }
  0xc2   : > { %7463 = shalt.err (!%p7460_p6)
}
  0xc3   : > { %s9060_s24 = smov 256   ;;  %s9061_s22 = sld [smem:[#allocation49_spill]] }
  0xc4   : > { %6607 = dma.hbm_to_vmem [thread:$0]  (!%p7763_p8), %s7937_s1, 8192, %s919_s4, %s7835_s25, %s9060_s24, %s9060_s24, %s7577_s18  }
  0xc5   : > { %s939_s29 = scalar_lea.vmem [#allocation13], %s7872_s16  ;;  %s936_s9 = scalar_lea.sflag [#allocation14], %s7761_s2 }
  0xc6   : > { %s946_s27 = sshll.u32 %s939_s29, 4  ;;  %s7967_s27 = int_to_ptr.vmem [resolvable:$true] %s946_s27 }
  0xc9   : > { %s7964_s7 = scalar_lea.hbm %s9061_s22, %s7898_s10  ;;  %s7469_s18 = scalar_lea.hbm %s9061_s22, 16384 }
  0xca   : > { %s7464_s28 = scalar_lea.hbm %s7964_s7, 8192  ;;  %p7470_p7 = scmp.lt.s32.totalorder %s7964_s7, %s9061_s22 }
  0xcb   : > { %p7465_p9 = scmp.ne.s32.totalorder %s7964_s7, %s7464_s28  ;;  %p7471_p0 = scmp.lt.s32.totalorder %s7469_s18, %s7464_s28 }
  0xcd   : > { %p7467_p11 = pnand %p7465_p9, %p7789_p10  ;;  %p7472_p1 = por %p7471_p0, %p7470_p7 }
  0xcf   : > { %p7468_p12 = pneg %p7467_p11 }
  0xd1   : > { %p7473_p13 = pnand %p7472_p1, %p7468_p12 }
  0xd3   : > { %7476 = shalt.err (!%p7473_p13)
}
  0xd4   : > { %s7477_s16 = scalar_lea.vmem %s7967_s27, 8192  ;;  %s7579_s2 = smov [#allocation13]  }
  0xd5   : > { %p7478_p2 = scmp.ne.s32.totalorder %s7967_s27, %s7477_s16  ;;  %s7482_s4 = sshll.u32 %s7579_s2, 4  ;;  %s7483_s4 = int_to_ptr.vmem [resolvable:$false] %s7482_s4 }
  0xd6   : > { %s7484_s17 = scalar_lea.vmem %s7483_s4, 16384  ;;  %p7485_p5 = scmp.lt.s32.totalorder %s7967_s27, %s7483_s4 }
  0xd7   : > { %p7480_p3 = pnand %p7478_p2, %p7789_p10  ;;  %p7486_p6 = scmp.lt.s32.totalorder %s7484_s17, %s7477_s16 }
  0xd9   : > { %p7481_p4 = pneg %p7480_p3  ;;  %p7487_p9 = por %p7486_p6, %p7485_p5 }
  0xdb   : > { %p7488_p11 = pnand %p7487_p9, %p7481_p4 }
  0xdd   : > { %7491 = shalt.err (!%p7488_p11)
}
  0xde   : > { %6610 = dma.hbm_to_vmem [thread:$0]  (!%p7763_p8), %s7964_s7, 8192, %s7967_s27, %s936_s9, %s9056_s21, %s9056_s21, %s9055_s19  }
  0xdf   : > { %p9062_p10 = scmp.ne.s32.totalorder %s9050_s26, 0 }
  0xe1   : > { %979 = sbr.rel (%p9062_p10) target bundleno = 6389 (0x18f5), region = 124 }
  0xe6   : > { %s981_s6 = sand.u32 1, %s7558_s3   ;;  %p9063_p12 = scmp.ne.s32.totalorder %s9046_s30, 0 }
  0xe7   : > { %s6574_s24 = smul.u32 768, %s981_s6  ;;  %s982_s12 = scalar_lea.sflag [#allocation5], %s981_s6 }
  0xe9   : > { %s7996_s23 = scalar_lea.vmem [#allocation4], %s6574_s24 }
  0xea   : > { %7533 = dma.done.wait (%p9063_p12), %s982_s12, 12288  }
  0xeb   : > { %7535 = vsyncadd (%p9063_p12), %s982_s12, 4294955008  ;;  %s990_s5 = sand.u32 1, %s7739_s8   ;;  %s5967_s29 = sshll.u32 %s981_s6, 8 }
  0xec   : > { %s991_s19 = scalar_lea.sflag [#allocation8], %s990_s5  ;;  %s8003_s21 = scalar_lea.vmem [#allocation7], %s5967_s29 }
  0xed   : > { %7537 = dma.done.wait (%p9063_p12), %s991_s19, 12288  }
  0xee   : > { %7539 = vsyncadd (%p9063_p12), %s991_s19, 4294955008  ;;  %s5968_s26 = sshll.u32 %s981_s6, 9  ;;  %s1009_s27 = scalar_lea.sflag [#allocation11], %s990_s5 }
  0xef   : > { %s8009_s7 = scalar_lea.vmem [#allocation9], %s5968_s26  ;;  %s8011_s9 = scalar_lea.vmem [#allocation10], %s5967_s29 }
  0xf0   : > { %9064 = sst [smem:[#allocation25_spill]] %s8011_s9 }
  0xf1   : > { %7541 = dma.done.wait (%p9063_p12), %s1009_s27, 12288  }
  0xf2   : > { %7543 = vsyncadd (%p9063_p12), %s1009_s27, 4294955008  ;;  %s8017_s28 = scalar_lea.vmem [#allocation12], %s5968_s26  ;;  %s1027_s0 = scalar_lea.sflag [#allocation14], %s981_s6 }
  0xf3   : > { %9065 = sst [smem:[#allocation26_spill]] %s8017_s28  ;;  %s8019_s25 = scalar_lea.vmem [#allocation13], %s5968_s26 }
  0xf4   : > { %9066 = sst [smem:[#allocation27_spill]] %s8019_s25 }
  0xf5   : > { %7545 = dma.done.wait (%p9063_p12), %s1027_s0, 8192  }
  0xf6   : > { %7547 = vsyncadd (%p9063_p12), %s1027_s0, 4294959104  ;;  %p1176_p8 = scmp.lt.s32.totalorder %s7739_s8, 1  ;;  %s9067_s4 = sld [smem:[#allocation36_spill]] }
  0xf7   : > { %s9068_s5 = sld [smem:[#allocation35_spill]]  ;;  %p5986_p7 = scmp.ne.s32.totalorder %s7739_s8, 0 }
  0xf8   : > { %s1177_s18 = scalar_select %p1176_p8, %s7739_s8, 1 }
  0xf9   : > { %s9072_s15 = sld [smem:[#allocation42_spill]] }
  0xfa   : > { %s6575_s1 = smul.u32 6, %s1177_s18  ;;  %s6414_s10 = sshll.u32 %s1177_s18, 8 }
  0xfb   : > { %s8032_s24 = sshll.u32 %s1177_s18, 1  ;;  %s5978_s3 = sshll.u32 %s1177_s18, 2 }
  0xfc   : > { %s8030_s17 = scalar_lea.vmem %s9067_s4, %s6414_s10  ;;  %s9074_s16 = sld [smem:[#allocation45_spill]] }
  0xfd   : > { %s8037_s30 = scalar_lea.vmem %s9068_s5, %s6575_s1  ;;  %s9075_s12 = sld [smem:[#allocation46_spill]] }
  0xfe   : > { %s9076_s18 = sld [smem:[#allocation48_spill]] }
  0xff   : > { %s8058_s5 = scalar_lea.vmem %s9072_s15, %s5978_s3  ;;  %s9077_s15 = sld [smem:[#allocation50_spill]] }
 0x100   : > { %s9078_s19 = sld [smem:[#allocation51_spill]] }
 0x101   : > { %s9079_s10 = sld [smem:[#allocation52_spill]] }
 0x102   : > { %s1212_s2 = scalar_lea.vmem %s9074_s16, %s8032_s24  ;;  %s9080_s6 = sld [smem:[#allocation29_spill]] (!%p5986_p7) }
 0x103   : > { %s1216_s28 = scalar_lea.vmem %s9075_s12, %s8032_s24  ;;  %1237 = sbr.rel (%p5986_p7) target bundleno = 579 (0x243), region = 152 }
 0x104   : > { %s8075_s22 = scalar_lea.vmem %s9076_s18, %s5978_s3  ;;  %s9081_s3 = sld [smem:[#allocation30_spill]] (!%p5986_p7) }
 0x105   : > { %s1224_s9 = scalar_lea.vmem %s9077_s15, %s8032_s24  ;;  %s9082_s20 = sld [smem:[#allocation31_spill]] (!%p5986_p7) }
 0x106   : > { %s1228_s26 = scalar_lea.vmem %s9078_s19, %s8032_s24 }
 0x107   : > { %s1232_s16 = scalar_lea.vmem %s9079_s10, %s8032_s24 }
 0x108   : > { %v1238_v0 = vld [vmem:[%s9080_s6] sm:$0xff]  ;;  %v1261_v14 = vlaneseq }
 0x109   : > { %v1239_v1 = vunpack.c.l.bf16 %v1238_v0  ;;  %v1240_v2 = vunpack.c.h.bf16 %v1238_v0 }
 0x10a   : > { %v1262_v15 = vshrl.u32 %v1261_v14, 7  ;;  %v1241_v18 = vld [vmem:[%s9081_s3] sm:$0x3] }
 0x10b   : > { %v1243_v3 = vadd.f32 %v1240_v2, %v1239_v1  ;;  %v1242_v19 = vld [vmem:[%s9082_s20] sm:$0x3] }
 0x10c   : > { %v1263_v16 = vsub.s32 0, %v1262_v15  ;;  %v1267_v17 = vsub.s32 1, %v1262_v15 }
 0x10d   : > { %1244 = vadd.xlane.f32.xlu0 %v1243_v3 }
 0x10e   : > { %v1264_v20 = vrot.slane %v1241_v18, %v1263_v16  ;;  %v1268_v21 = vrot.slane %v1241_v18, %v1267_v17  ;;  %v1277_v23 = vrot.slane %v1242_v19, %v1263_v16  ;;  %v1281_v24 = vrot.slane %v1242_v19, %v1267_v17 }
 0x196   : > { %v1245_v4 = vpop.xlane.xlu0 %1244 }
 0x197   : > { %v1247_v5 = vmul.f32 0.00390625, %v1245_v4 }
 0x199   : > { %v1248_v6 = vsub.f32 %v1239_v1, %v1247_v5  ;;  %v1249_v7 = vsub.f32 %v1240_v2, %v1247_v5 }
 0x19b   : > { %v1250_v8 = vmul.f32 %v1248_v6, %v1248_v6  ;;  %v1251_v9 = vmul.f32 %v1249_v7, %v1249_v7 }
 0x19d   : > { %v1252_v10 = vadd.f32 %v1251_v9, %v1250_v8 }
 0x19f   : > { %1253 = vadd.xlane.f32.xlu0 %v1252_v10 }
 0x228   : > { %v1254_v11 = vpop.xlane.xlu0 %1253 }
 0x229   : > { %v1255_v12 = vmul.f32 0.00390625, %v1254_v11 }
 0x22b   : > { %v1256_v13 = vadd.f32 1e-12, %v1255_v12 }
 0x22d   : > { %6657 = vrsqrt.f32 %v1256_v13 }
 0x23a   : > { %v6658_v22 = vpop.eup %6657 }
 0x23b   : > { %v1258_v25 = vmul.f32 %v6658_v22, %v1248_v6  ;;  %v1259_v26 = vmul.f32 %v6658_v22, %v1249_v7 }
 0x23d   : > { %v1271_v27 = vmul.f32 %v1264_v20, %v1258_v25  ;;  %v1272_v28 = vmul.f32 %v1268_v21, %v1259_v26 }
 0x23f   : > { %v1284_v29 = vadd.f32 %v1277_v23, %v1271_v27  ;;  %v1285_v30 = vadd.f32 %v1281_v24, %v1272_v28 }
 0x241   : > { %1286 = vst [vmem:[#allocation2 + $0x10] sm:$0xff] %v1284_v29  ;;  %1287 = vst [vmem:[#allocation2] sm:$0xff] %v1285_v30 }
 0x242   : > { %1288 = vst [vmem:[#allocation2 + $0x18] sm:$0xff] %v1284_v29  ;;  %1289 = vst [vmem:[#allocation2 + $0x8] sm:$0xff] %v1285_v30 }
 0x243 PF: > { %v6659_v31 = vld [vmem:[%s7996_s23 + $0x15c] ss:$24 sps:$4 sm:$0xff]   ;;  %v6661_v32 = vld [vmem:[%s7996_s23 + $0x158] ss:$24 sps:$4 sm:$0xff]   ;;  %v6665_v35 = vld [vmem:[%s7996_s23 + $0x12c] ss:$24 sps:$4 sm:$0xff]   ;;  %s9088_s15 = scalar_lea.vmem %s8980_s11, %s8032_s24 }
 0x244   : > { %1947 = vmatprep.subr.bf16.mxu1 %v6659_v31  ;;  %v6662_v33 = vld [vmem:[%s7996_s23 + $0x154] ss:$24 sps:$4 sm:$0xff]   ;;  %v6664_v34 = vld [vmem:[%s7996_s23 + $0x150] ss:$24 sps:$4 sm:$0xff]   ;;  %v6668_v37 = vld [vmem:[%s7996_s23 + $0x124] ss:$24 sps:$4 sm:$0xff]  }
 0x245   : > { %1948 = vmatpush1.bf16.msra.mxu1 %v6661_v32  ;;  %v6667_v36 = vld [vmem:[%s7996_s23 + $0x128] ss:$24 sps:$4 sm:$0xff]   ;;  %1904 = vmatprep.subr.bf16.mxu0 %v6662_v33  ;;  %v6671_v39 = vld [vmem:[%s7996_s23 + $0xfc] ss:$24 sps:$4 sm:$0xff]   ;;  %v6673_v40 = vld [vmem:[%s7996_s23 + $0xf8] ss:$24 sps:$4 sm:$0xff]  }
 0x246   : > { %1905 = vmatpush1.bf16.msra.mxu0 %v6664_v34  ;;  %1949 = vmatprep.subr.bf16.mxu1 %v6665_v35  ;;  %v6670_v38 = vld [vmem:[%s7996_s23 + $0x120] ss:$24 sps:$4 sm:$0xff]   ;;  %v6674_v41 = vld [vmem:[%s7996_s23 + $0xf4] ss:$24 sps:$4 sm:$0xff]   ;;  %v6676_v43 = vld [vmem:[%s7996_s23 + $0xf0] ss:$24 sps:$4 sm:$0xff]  }
 0x247   : > { %1906 = vmatprep.subr.bf16.mxu0 %v6668_v37  ;;  %v6677_v42 = vld [vmem:[%s7996_s23 + $0xcc] ss:$24 sps:$4 sm:$0xff]   ;;  %v6679_v45 = vld [vmem:[%s7996_s23 + $0xc8] ss:$24 sps:$4 sm:$0xff]   ;;  %v6683_v46 = vld [vmem:[%s7996_s23 + $0x9c] ss:$24 sps:$4 sm:$0xff]  }
 0x248   : > { %v6680_v44 = vld [vmem:[%s7996_s23 + $0xc4] ss:$24 sps:$4 sm:$0xff]   ;;  %v6682_v47 = vld [vmem:[%s7996_s23 + $0xc0] ss:$24 sps:$4 sm:$0xff]   ;;  %v6686_v48 = vld [vmem:[%s7996_s23 + $0x94] ss:$24 sps:$4 sm:$0xff]  }
 0x249   : > { %1950 = vmatpush1.bf16.msra.mxu1 %v6667_v36  ;;  %v6685_v49 = vld [vmem:[%s7996_s23 + $0x98] ss:$24 sps:$4 sm:$0xff]   ;;  %v6689_v50 = vld [vmem:[%s7996_s23 + $0x6c] ss:$24 sps:$4 sm:$0xff]   ;;  %v6691_v53 = vld [vmem:[%s7996_s23 + $0x68] ss:$24 sps:$4 sm:$0xff]  }
 0x24a   : > { %1951 = vmatprep.subr.bf16.mxu1 %v6671_v39  ;;  %1907 = vmatpush1.bf16.msra.mxu0 %v6670_v38  ;;  %v6688_v51 = vld [vmem:[%s7996_s23 + $0x90] ss:$24 sps:$4 sm:$0xff]   ;;  %v6692_v52 = vld [vmem:[%s7996_s23 + $0x64] ss:$24 sps:$4 sm:$0xff]   ;;  %v6694_v55 = vld [vmem:[%s7996_s23 + $0x60] ss:$24 sps:$4 sm:$0xff]  }
 0x24b   : > { %1908 = vmatprep.subr.bf16.mxu0 %v6674_v41  ;;  %v6695_v54 = vld [vmem:[%s7996_s23 + $0x3c] ss:$24 sps:$4 sm:$0xff]   ;;  %v6697_v57 = vld [vmem:[%s7996_s23 + $0x38] ss:$24 sps:$4 sm:$0xff]   ;;  %v6701_v58 = vld [vmem:[%s7996_s23 + $0xc] ss:$24 sps:$4 sm:$0xff]  }
 0x24c   : > { %v6698_v56 = vld [vmem:[%s7996_s23 + $0x34] ss:$24 sps:$4 sm:$0xff]   ;;  %v6700_v59 = vld [vmem:[%s7996_s23 + $0x30] ss:$24 sps:$4 sm:$0xff]   ;;  %v6704_v60 = vld [vmem:[%s7996_s23 + $0x4] ss:$24 sps:$4 sm:$0xff]  }
 0x24d   : > { %1952 = vmatpush1.bf16.msra.mxu1 %v6673_v40  ;;  %v6703_v61 = vld [vmem:[%s7996_s23 + $0x8] ss:$24 sps:$4 sm:$0xff]   ;;  %v6707_v62 = vld [vmem:[%s7996_s23 + $0x2dc] ss:$24 sps:$4 sm:$0xff]   ;;  %v6709_v1 = vld [vmem:[%s7996_s23 + $0x2d8] ss:$24 sps:$4 sm:$0xff]  }
 0x24e   : > { %1953 = vmatprep.subr.bf16.mxu1 %v6677_v42  ;;  %1909 = vmatpush1.bf16.msra.mxu0 %v6676_v43  ;;  %v6706_v63 = vld [vmem:[%s7996_s23] ss:$24 sps:$4 sm:$0xff]   ;;  %v6710_v0 = vld [vmem:[%s7996_s23 + $0x2d4] ss:$24 sps:$4 sm:$0xff]   ;;  %v6712_v3 = vld [vmem:[%s7996_s23 + $0x2d0] ss:$24 sps:$4 sm:$0xff]  }
 0x24f   : > { %1910 = vmatprep.subr.bf16.mxu0 %v6680_v44  ;;  %v6713_v2 = vld [vmem:[%s7996_s23 + $0x2ac] ss:$24 sps:$4 sm:$0xff]   ;;  %v6715_v5 = vld [vmem:[%s7996_s23 + $0x2a8] ss:$24 sps:$4 sm:$0xff]   ;;  %v6719_v6 = vld [vmem:[%s7996_s23 + $0x27c] ss:$24 sps:$4 sm:$0xff]  }
 0x250   : > { %v6716_v4 = vld [vmem:[%s7996_s23 + $0x2a4] ss:$24 sps:$4 sm:$0xff]   ;;  %v6718_v7 = vld [vmem:[%s7996_s23 + $0x2a0] ss:$24 sps:$4 sm:$0xff]   ;;  %v6722_v8 = vld [vmem:[%s7996_s23 + $0x274] ss:$24 sps:$4 sm:$0xff]  }
 0x251   : > { %1954 = vmatpush1.bf16.msra.mxu1 %v6679_v45  ;;  %v6721_v9 = vld [vmem:[%s7996_s23 + $0x278] ss:$24 sps:$4 sm:$0xff]   ;;  %v6725_v10 = vld [vmem:[%s7996_s23 + $0x24c] ss:$24 sps:$4 sm:$0xff]   ;;  %v6727_v12 = vld [vmem:[%s7996_s23 + $0x248] ss:$24 sps:$4 sm:$0xff]  }
 0x252   : > { %1955 = vmatprep.subr.bf16.mxu1 %v6683_v46  ;;  %1911 = vmatpush1.bf16.msra.mxu0 %v6682_v47  ;;  %v6724_v11 = vld [vmem:[%s7996_s23 + $0x270] ss:$24 sps:$4 sm:$0xff]   ;;  %v6728_v13 = vld [vmem:[%s7996_s23 + $0x244] ss:$24 sps:$4 sm:$0xff]   ;;  %v6730_v15 = vld [vmem:[%s7996_s23 + $0x240] ss:$24 sps:$4 sm:$0xff]  }
 0x253   : > { %1912 = vmatprep.subr.bf16.mxu0 %v6686_v48  ;;  %v1291_v14 = vld [vmem:[#allocation2] sm:$0xff]  ;;  %v1293_v17 = vld [vmem:[#allocation2 + $0x8] sm:$0xff]  ;;  %v6737_v21 = vld [vmem:[%s7996_s23 + $0x1ec] ss:$24 sps:$4 sm:$0xff]   ;;  %v7580_v37 = vmov 0.0   ;;  %vm7581_vm0 = vmmov 0  }
 0x254   : > { %v6731_v16 = vld [vmem:[%s7996_s23 + $0x21c] ss:$24 sps:$4 sm:$0xff]   ;;  %v1295_v19 = vpack.c.bf16 %v1293_v17, %v1291_v14  ;;  %v6733_v20 = vld [vmem:[%s7996_s23 + $0x218] ss:$24 sps:$4 sm:$0xff]   ;;  %v6739_v24 = vld [vmem:[%s7996_s23 + $0x1e8] ss:$24 sps:$4 sm:$0xff]  }
 0x255   : > { %1956 = vmatpush1.bf16.msra.mxu1 %v6685_v49  ;;  %v6734_v18 = vld [vmem:[%s7996_s23 + $0x214] ss:$24 sps:$4 sm:$0xff]   ;;  %v6736_v22 = vld [vmem:[%s7996_s23 + $0x210] ss:$24 sps:$4 sm:$0xff]   ;;  %v6740_v23 = vld [vmem:[%s7996_s23 + $0x1e4] ss:$24 sps:$4 sm:$0xff]  }
 0x256   : > { %1957 = vmatprep.subr.bf16.mxu1 %v6689_v50  ;;  %1913 = vmatpush1.bf16.msra.mxu0 %v6688_v51  ;;  %v6743_v25 = vld [vmem:[%s7996_s23 + $0x1bc] ss:$24 sps:$4 sm:$0xff]   ;;  %v6742_v26 = vld [vmem:[%s7996_s23 + $0x1e0] ss:$24 sps:$4 sm:$0xff]   ;;  %v6749_v29 = vld [vmem:[%s7996_s23 + $0x18c] ss:$24 sps:$4 sm:$0xff]  }
 0x257   : > { %1914 = vmatprep.subr.bf16.mxu0 %v6692_v52  ;;  %1979 = vmatprep.mubr.bf16.mxu1 %v1295_v19  ;;  %v6746_v27 = vld [vmem:[%s7996_s23 + $0x1b4] ss:$24 sps:$4 sm:$0xff]   ;;  %v6745_v28 = vld [vmem:[%s7996_s23 + $0x1b8] ss:$24 sps:$4 sm:$0xff]   ;;  %v6752_v31 = vld [vmem:[%s7996_s23 + $0x184] ss:$24 sps:$4 sm:$0xff]  }
 0x258   : > { %1936 = vmatprep.mubr.bf16.mxu0 %v1295_v19  ;;  %v6748_v30 = vld [vmem:[%s7996_s23 + $0x1b0] ss:$24 sps:$4 sm:$0xff]   ;;  %v1290_v33 = vld [vmem:[#allocation2 + $0x10] sm:$0xff]  ;;  %v6760_v40 = vld [vmem:[%s7996_s23 + $0x134] ss:$24 sps:$4 sm:$0xff]   ;;  %vm2080_vm1 = vcmask 64512  }
 0x259   : > { %1958 = vmatpush1.bf16.msra.mxu1 %v6691_v53  ;;  %v6751_v32 = vld [vmem:[%s7996_s23 + $0x188] ss:$24 sps:$4 sm:$0xff]   ;;  %v6757_v39 = vld [vmem:[%s7996_s23 + $0x164] ss:$24 sps:$4 sm:$0xff]   ;;  %v6766_v44 = vld [vmem:[%s7996_s23 + $0xd4] ss:$24 sps:$4 sm:$0xff]  }
 0x25a   : > { %1959 = vmatprep.subr.bf16.mxu1 %v6695_v54  ;;  %1915 = vmatpush1.bf16.msra.mxu0 %v6694_v55  ;;  %v1292_v34 = vld [vmem:[#allocation2 + $0x18] sm:$0xff]  ;;  %v6754_v35 = vld [vmem:[%s7996_s23 + $0x180] ss:$24 sps:$4 sm:$0xff]   ;;  %v6763_v42 = vld [vmem:[%s7996_s23 + $0x104] ss:$24 sps:$4 sm:$0xff]   ;;  %vm2094_vm2 = vcmask 1043456  }
 0x25b   : > { %1916 = vmatprep.subr.bf16.mxu0 %v6698_v56  ;;  %v8163_v36 = vpack.c.bf16 %v1292_v34, %v1290_v33  ;;  %v6755_v38 = vld [vmem:[%s7996_s23 + $0x160] ss:$24 sps:$4 sm:$0xff]   ;;  %v6758_v41 = vld [vmem:[%s7996_s23 + $0x130] ss:$24 sps:$4 sm:$0xff]   ;;  %v6769_v46 = vld [vmem:[%s7996_s23 + $0xa4] ss:$24 sps:$4 sm:$0xff]  }
 0x25c   : > { %v6761_v43 = vld [vmem:[%s7996_s23 + $0x100] ss:$24 sps:$4 sm:$0xff]   ;;  %v6764_v45 = vld [vmem:[%s7996_s23 + $0xd0] ss:$24 sps:$4 sm:$0xff]   ;;  %v6772_v48 = vld [vmem:[%s7996_s23 + $0x74] ss:$24 sps:$4 sm:$0xff]  }
 0x25d   : > { %1960 = vmatpush1.bf16.msra.mxu1 %v6697_v57  ;;  %v6767_v47 = vld [vmem:[%s7996_s23 + $0xa0] ss:$24 sps:$4 sm:$0xff]   ;;  %v6770_v49 = vld [vmem:[%s7996_s23 + $0x70] ss:$24 sps:$4 sm:$0xff]   ;;  %v6775_v50 = vld [vmem:[%s7996_s23 + $0x44] ss:$24 sps:$4 sm:$0xff]  }
 0x25e   : > { %1961 = vmatprep.subr.bf16.mxu1 %v6701_v58  ;;  %1917 = vmatpush1.bf16.msra.mxu0 %v6700_v59  ;;  %v6773_v51 = vld [vmem:[%s7996_s23 + $0x40] ss:$24 sps:$4 sm:$0xff]   ;;  %v6778_v52 = vld [vmem:[%s7996_s23 + $0x14] ss:$24 sps:$4 sm:$0xff]   ;;  %v6776_v53 = vld [vmem:[%s7996_s23 + $0x10] ss:$24 sps:$4 sm:$0xff]  }
 0x25f   : > { %1918 = vmatprep.subr.bf16.mxu0 %v6704_v60  ;;  %v6781_v54 = vld [vmem:[%s7996_s23 + $0x2e4] ss:$24 sps:$4 sm:$0xff]   ;;  %v6779_v55 = vld [vmem:[%s7996_s23 + $0x2e0] ss:$24 sps:$4 sm:$0xff]   ;;  %v6784_v56 = vld [vmem:[%s7996_s23 + $0x2b4] ss:$24 sps:$4 sm:$0xff]  }
 0x260   : > { %v6782_v57 = vld [vmem:[%s7996_s23 + $0x2b0] ss:$24 sps:$4 sm:$0xff]   ;;  %v6787_v58 = vld [vmem:[%s7996_s23 + $0x284] ss:$24 sps:$4 sm:$0xff]   ;;  %v6785_v59 = vld [vmem:[%s7996_s23 + $0x280] ss:$24 sps:$4 sm:$0xff]  }
 0x261   : > { %1962 = vmatpush1.bf16.msra.mxu1 %v6703_v61  ;;  %v6790_v60 = vld [vmem:[%s7996_s23 + $0x254] ss:$24 sps:$4 sm:$0xff]   ;;  %v6788_v61 = vld [vmem:[%s7996_s23 + $0x250] ss:$24 sps:$4 sm:$0xff]   ;;  %s9085_s29 = sld [smem:[#allocation28_spill]]  ;;  %p6385_p0 = scmp.ne.s32.totalorder %s7739_s8, 1 }
 0x262   : > { %1963 = vmatprep.subr.bf16.mxu1 %v6707_v62  ;;  %1919 = vmatpush1.bf16.msra.mxu0 %v6706_v63  ;;  %v6793_v62 = vld [vmem:[%s7996_s23 + $0x224] ss:$24 sps:$4 sm:$0xff]   ;;  %v6791_v63 = vld [vmem:[%s7996_s23 + $0x220] ss:$24 sps:$4 sm:$0xff]   ;;  %s9086_s4 = sld [smem:[#allocation38_spill]] }
 0x263   : > { %1920 = vmatprep.subr.bf16.mxu0 %v6710_v0  ;;  %v6796_v0 = vld [vmem:[%s7996_s23 + $0x1f4] ss:$24 sps:$4 sm:$0xff]   ;;  %s9089_s3 = sld [smem:[#allocation40_spill]] }
 0x264   : > { %s9091_s14 = sld [smem:[#allocation25_spill]] }
 0x265   : > { %1964 = vmatpush2.bf16.msra.mxu1 %v6709_v1  ;;  %v6794_v1 = vld [vmem:[%s7996_s23 + $0x1f0] ss:$24 sps:$4 sm:$0xff]   ;;  %s9095_s25 = sld [smem:[#allocation27_spill]] }
 0x266   : > { %1965 = vmatprep.subr.bf16.mxu1 %v6713_v2  ;;  %1921 = vmatpush2.bf16.msra.mxu0 %v6712_v3  ;;  %v6799_v2 = vld [vmem:[%s7996_s23 + $0x1c4] ss:$24 sps:$4 sm:$0xff]   ;;  %v6797_v3 = vld [vmem:[%s7996_s23 + $0x1c0] ss:$24 sps:$4 sm:$0xff]  }
 0x267   : > { %1922 = vmatprep.subr.bf16.mxu0 %v6716_v4  ;;  %v6802_v4 = vld [vmem:[%s7996_s23 + $0x194] ss:$24 sps:$4 sm:$0xff]  }
 0x268   : > { %s9087_s6 = scalar_lea.vmem %s9086_s4, %s8032_s24 }
 0x269   : > { %1966 = vmatpush2.bf16.msra.mxu1 %v6715_v5  ;;  %v6800_v5 = vld [vmem:[%s7996_s23 + $0x190] ss:$24 sps:$4 sm:$0xff]   ;;  %s9090_s27 = scalar_lea.vmem %s9089_s3, %s8032_s24  ;;  %s9102_s23 = sld [smem:[#allocation33_spill]] (!%p6385_p0) }
 0x26a   : > { %1967 = vmatprep.subr.bf16.mxu1 %v6719_v6  ;;  %1923 = vmatpush2.bf16.msra.mxu0 %v6718_v7  ;;  %v1394_v6 = vlaneseq }
 0x26b   : > { %1924 = vmatprep.subr.bf16.mxu0 %v6722_v8 }
 0x26c   : > { %v1395_v7 = vshrl.u32 %v1394_v6, 7 }
 0x26d   : > { %1968 = vmatpush2.bf16.msra.mxu1 %v6721_v9  ;;  %v1392_v9 = vld [vmem:[%s8037_s30] sm:$0x3f]  ;;  %s9092_s30 = sld [smem:[#allocation44_spill]] }
 0x26e   : > { %1969 = vmatprep.subr.bf16.mxu1 %v6725_v10  ;;  %1925 = vmatpush2.bf16.msra.mxu0 %v6724_v11  ;;  %v8203_v8 = vsub.s32 2, %v1395_v7  ;;  %v1412_v33 = vsub.s32 4, %v1395_v7 }
 0x26f   : > { %1926 = vmatprep.subr.bf16.mxu0 %v6728_v13 }
 0x270   : > { %v1405_v11 = vrot.slane %v1392_v9, %v8203_v8 }
 0x271   : > { %1970 = vmatpush2.bf16.msra.mxu1 %v6727_v12  ;;  %v8207_v12 = vsub.s32 0, %v1395_v7 }
 0x272   : > { %1971 = vmatprep.subr.bf16.mxu1 %v6731_v16  ;;  %1927 = vmatpush2.bf16.msra.mxu0 %v6730_v15 }
 0x273   : > { %1928 = vmatprep.subr.bf16.mxu0 %v6734_v18 }
 0x275   : > { %1972 = vmatpush2.bf16.msra.mxu1 %v6733_v20 }
 0x276   : > { %1973 = vmatprep.subr.bf16.mxu1 %v6737_v21  ;;  %1929 = vmatpush2.bf16.msra.mxu0 %v6736_v22 }
 0x277   : > { %1930 = vmatprep.subr.bf16.mxu0 %v6740_v23 }
 0x279   : > { %1974 = vmatpush2.bf16.msra.mxu1 %v6739_v24 }
 0x27a   : > { %1975 = vmatprep.subr.bf16.mxu1 %v6743_v25  ;;  %1931 = vmatpush2.bf16.msra.mxu0 %v6742_v26 }
 0x27b   : > { %1932 = vmatprep.subr.bf16.mxu0 %v6746_v27 }
 0x27d   : > { %1976 = vmatpush2.bf16.msra.mxu1 %v6745_v28 }
 0x27e   : > { %1977 = vmatprep.subr.bf16.mxu1 %v6749_v29  ;;  %1933 = vmatpush2.bf16.msra.mxu0 %v6748_v30 }
 0x27f   : > { %1934 = vmatprep.subr.bf16.mxu0 %v6752_v31 }
 0x281   : > { %1978 = vmatpush2.bf16.msra.mxu1 %v6751_v32 }
 0x282   : > { %1935 = vmatpush2.bf16.msra.mxu0 %v6754_v35  ;;  %6476 = vmatprep.subr.bf16.mxu1 %v7580_v37  ;;  %v1413_v35 = vrot.slane %v1392_v9, %v1412_v33 }
 0x283   : > { %1990 = vmatprep.subr.bf16.mxu0 %v6757_v39 }
 0x284   : > { %1980 = vmatmul.mubr.bf16.vlgmr.msra.gmra.mxu1 %v8163_v36 }
 0x285   : > { %1937 = vmatmul.mubr.bf16.vlgmr.msra.gmra.mxu0 %v8163_v36  ;;  %6478 = vmatprep.mubr.msk.bf16.mxu1 %vm7581_vm0, %v7580_v37 }
 0x286   : > { %2022 = vmatprep.mubr.bf16.mxu0 %v1295_v19  ;;  %1991 = vmatpush1.bf16.msra.mxu0 %v6755_v38  ;;  %v1397_v19 = vrot.slane %v1392_v9, %v8207_v12 }
 0x287   : > { %1992 = vmatprep.subr.bf16.mxu0 %v6760_v40 }
 0x28a   : > { %1993 = vmatpush1.bf16.msra.mxu0 %v6758_v41 }
 0x28b   : > { %1994 = vmatprep.subr.bf16.mxu0 %v6763_v42 }
 0x28e   : > { %1995 = vmatpush1.bf16.msra.mxu0 %v6761_v43 }
 0x28f   : > { %1996 = vmatprep.subr.bf16.mxu0 %v6766_v44 }
 0x292   : > { %1997 = vmatpush1.bf16.msra.mxu0 %v6764_v45 }
 0x293   : > { %1998 = vmatprep.subr.bf16.mxu0 %v6769_v46  ;;  %v8225_v46 = vsub.s32 3, %v1395_v7 }
 0x296   : > { %1999 = vmatpush1.bf16.msra.mxu0 %v6767_v47  ;;  %v1416_v47 = vsub.s32 5, %v1395_v7 }
 0x297   : > { %2000 = vmatprep.subr.bf16.mxu0 %v6772_v48  ;;  %v1409_v48 = vrot.slane %v1392_v9, %v8225_v46 }
 0x29a   : > { %2001 = vmatpush1.bf16.msra.mxu0 %v6770_v49  ;;  %v8228_v49 = vsub.s32 1, %v1395_v7 }
 0x29b   : > { %2002 = vmatprep.subr.bf16.mxu0 %v6775_v50 }
 0x29e   : > { %2003 = vmatpush1.bf16.msra.mxu0 %v6773_v51  ;;  %v1417_v51 = vrot.slane %v1392_v9, %v1416_v47 }
 0x29f   : > { %2004 = vmatprep.subr.bf16.mxu0 %v6778_v52 }
 0x2a2   : > { %2005 = vmatpush1.bf16.msra.mxu0 %v6776_v53 }
 0x2a3   : > { %2006 = vmatprep.subr.bf16.mxu0 %v6781_v54 }
 0x2a6   : > { %2007 = vmatpush2.bf16.msra.mxu0 %v6779_v55  ;;  %v1401_v55 = vrot.slane %v1392_v9, %v8228_v49 }
 0x2a7   : > { %2008 = vmatprep.subr.bf16.mxu0 %v6784_v56 }
 0x2aa   : > { %2009 = vmatpush2.bf16.msra.mxu0 %v6782_v57 }
 0x2ab   : > { %2010 = vmatprep.subr.bf16.mxu0 %v6787_v58 }
 0x2ae   : > { %2011 = vmatpush2.bf16.msra.mxu0 %v6785_v59 }
 0x2af   : > { %2012 = vmatprep.subr.bf16.mxu0 %v6790_v60 }
 0x2b2   : > { %2013 = vmatpush2.bf16.msra.mxu0 %v6788_v61 }
 0x2b3   : > { %2014 = vmatprep.subr.bf16.mxu0 %v6793_v62 }
 0x2b6   : > { %2015 = vmatpush2.bf16.msra.mxu0 %v6791_v63 }
 0x2b7   : > { %2016 = vmatprep.subr.bf16.mxu0 %v6796_v0 }
 0x2ba   : > { %2017 = vmatpush2.bf16.msra.mxu0 %v6794_v1 }
 0x2bb   : > { %2018 = vmatprep.subr.bf16.mxu0 %v6799_v2 }
 0x2be   : > { %2019 = vmatpush2.bf16.msra.mxu0 %v6797_v3 }
 0x2bf   : > { %2020 = vmatprep.subr.bf16.mxu0 %v6802_v4 }
 0x2c2   : > { %2021 = vmatpush2.bf16.msra.mxu0 %v6800_v5 }
 0x2c5   : > { %2023 = vmatmul.mubr.bf16.vlgmr.msra.gmra.mxu0 %v8163_v36 }
 0x344   : > { %v1981_v10 = vpop.f32.mrf.mxu1 }
 0x345   : > { %v1938_v13 = vpop.f32.mrf.mxu0  ;;  %v1982_v16 = vadd.f32 %v1981_v10, %v1405_v11 }
 0x346   : > { %v1983_v14 = vpop.f32.mrf.mxu1  ;;  %v1939_v22 = vadd.f32 %v1938_v13, %v1397_v19 }
 0x347   : > { %v1940_v17 = vpop.f32.mrf.mxu0  ;;  %v1984_v53 = vadd.f32 %v1983_v14, %v1409_v48 }
 0x348   : > { %v1985_v15 = vpop.f32.mrf.mxu1  ;;  %v1941_v60 = vadd.f32 %v1940_v17, %v1401_v55 }
 0x349   : > { %v1986_v18 = vadd.f32 %v1985_v15, %v1405_v11  ;;  %v1942_v21 = vpop.f32.mrf.mxu0 }
 0x34a   : > { %v1943_v23 = vadd.f32 %v1942_v21, %v1397_v19  ;;  %v1987_v25 = vpop.f32.mrf.mxu1 }
 0x34b   : > { %v8210_v20 = vpack.c.bf16 %v1986_v18, %v1982_v16  ;;  %v1944_v32 = vpop.f32.mrf.mxu0  ;;  %v1988_v50 = vadd.f32 %v1987_v25, %v1409_v48 }
 0x34c   : > { %v8214_v24 = vpack.c.bf16 %v1943_v23, %v1939_v22  ;;  %v1945_v61 = vadd.f32 %v1944_v32, %v1401_v55 }
 0x34d   : > { %6477 = vmatpush3.bf16.xpose.msra.mxu1 %v8210_v20  ;;  %v8231_v57 = vpack.c.bf16 %v1988_v50, %v1984_v53  ;;  %v2247_v22 = vrot.slane %v8210_v20, 4 }
 0x34e   : > { %6482 = vmatprep.subr.bf16.mxu1 %v7580_v37  ;;  %v8240_v63 = vpack.c.bf16 %v1945_v61, %v1941_v60 }
 0x350   : > { %v2353_v47 = vrot.slane %v8240_v63, 4 }
 0x354   : > { %6479 = vmatmul.mubr.bf16.vlgmr.msra.gmra.mxu1 %v8214_v24 }
 0x355   : > { %6484 = vmatprep.mubr.msk.bf16.mxu1 %vm7581_vm0, %v7580_v37 }
 0x385   : > { %v2024_v34 = vpop.f32.mrf.mxu0 }
 0x386   : > { %v2025_v38 = vadd.f32 %v2024_v34, %v1413_v35 }
 0x387   : > { %v2026_v36 = vpop.f32.mrf.mxu0 }
 0x388   : > { %v2027_v58 = vadd.f32 %v2026_v36, %v1417_v51 }
 0x389   : > { %v2028_v39 = vpop.f32.mrf.mxu0 }
 0x38a   : > { %v2029_v40 = vadd.f32 %v2028_v39, %v1413_v35 }
 0x38b   : > { %v2030_v54 = vpop.f32.mrf.mxu0 }
 0x38c   : > { %v8220_v41 = vpack.c.bf16 %v2029_v40, %v2025_v38  ;;  %v2031_v59 = vadd.f32 %v2030_v54, %v1417_v51 }
 0x38e   : > { %v2096_v42 = vsel %vm2094_vm2, %v8220_v41, 0  ;;  %v8238_v62 = vpack.c.bf16 %v2031_v59, %v2027_v58 }
 0x38f   : > { %6483 = vmatpush3.bf16.msra.mxu1 %v2096_v42 }
 0x390   : > { %6488 = vmatprep.subr.bf16.mxu1 %v7580_v37  ;;  %v2197_v0 = vsel %vm2094_vm2, %v8238_v62, 0 }
 0x414   : > { %v2073_v26 = vpop.f32.mrf.mxu1 }
 0x415   : > { %v2079_v27 = vmul.f32 0.088388346, %v2073_v26  ;;  %v2301_v26 = vrot.slane %v8220_v41, 4 }
 0x416   : > { %v6480_v28 = vpop.f32.mrf.mxu1 }
 0x417   : > { %v2081_v29 = vsel %vm2080_vm1, %v2079_v27, -inf  ;;  %v2306_v28 = vsel %vm2094_vm2, %v2301_v26, 0  ;;  %v6818_v26 = vld [vmem:[%s8030_s17 + $0x20] ss:$8 sps:$4 sm:$0xff]  }
 0x418   : > { %2082 = vmax.xlane.f32.xlu0 %v2081_v29  ;;  %v2076_v30 = vpop.f32.mrf.mxu1 }
 0x41a   : > { %v6481_v31 = vpop.f32.mrf.mxu1 }
 0x4a1   : > { %v2083_v43 = vpop.xlane.xlu0 %2082 }
 0x4a2   : > { %v2084_v44 = vsub.f32 %v2079_v27, %v2083_v43  ;;  %v2244_v27 = vrot.slane %v8214_v24, 4 }
 0x4a4   : > { %v2085_v45 = vmul.f32 1.442695, %v2084_v44  ;;  %v2356_v44 = vrot.slane %v8231_v57, 4 }
 0x4a6   : > { %7244 = vpow2.f32 %v2085_v45  ;;  %v2410_v45 = vrot.slane %v8238_v62, 4 }
 0x4a8   : > { %v2415_v48 = vsel %vm2094_vm2, %v2410_v45, 0  ;;  %v6848_v45 = vld [vmem:[%s8030_s17 + $0x80] ss:$8 sps:$4 sm:$0xff]  }
 0x4b3   : > { %v7245_v52 = vpop.eup %7244 }
 0x4b4   : > { %v2090_v56 = vpack.c.bf16 %v7245_v52, %v7245_v52  ;;  %v2087_v13 = vsel %vm2080_vm1, %v7245_v52, 0.0 }
 0x4b6   : > { %6485 = vmatmul.mubr.msk.bf16.vlgmr.msra.gmra.mxu1 %vm2080_vm1, %v2090_v56 }
 0x4b7   : > { %6489 = vmatpush3.bf16.xpose.msra.mxu1 %v8231_v57  ;;  %6490 = vmatprep.mubr.msk.bf16.mxu1 %vm7581_vm0, %v7580_v37 }
 0x4b8   : > { %6494 = vmatprep.subr.bf16.mxu1 %v7580_v37 }
 0x4be   : > { %6491 = vmatmul.mubr.bf16.vlgmr.msra.gmra.mxu1 %v8240_v63 }
 0x4bf   : > { %6495 = vmatpush3.bf16.msra.mxu1 %v2197_v0  ;;  %6496 = vmatprep.mubr.msk.bf16.mxu1 %vm7581_vm0, %v7580_v37 }
 0x4c0   : > { %6500 = vmatprep.subr.bf16.mxu1 %v7580_v37 }
 0x576   : > { %v2132_v1 = vpop.f32.mrf.mxu1 }
 0x578   : > { %v6486_v2 = vpop.f32.mrf.mxu1 }
 0x57a   : > { %v2135_v3 = vpop.f32.mrf.mxu1 }
 0x57c   : > { %v6487_v4 = vpop.f32.mrf.mxu1 }
 0x57e   : > { %v2176_v5 = vpop.f32.mrf.mxu1 }
 0x57f   : > { %v2182_v6 = vmul.f32 0.088388346, %v2176_v5 }
 0x580   : > { %v6492_v7 = vpop.f32.mrf.mxu1 }
 0x581   : > { %v2183_v9 = vsel %vm2080_vm1, %v2182_v6, -inf }
 0x582   : > { %2184 = vmax.xlane.f32.xlu0 %v2183_v9  ;;  %v2179_v10 = vpop.f32.mrf.mxu1 }
 0x584   : > { %v6493_v11 = vpop.f32.mrf.mxu1 }
 0x586   : > { %2088 = vadd.xlane.f32.xlu0 %v2087_v13  ;;  %v6803_v13 = vld [vmem:[%s8030_s17 + $0x70] ss:$8 sps:$4 sm:$0xff]  }
 0x60b   : > { %v2185_v14 = vpop.xlane.xlu0 %2184 }
 0x60c   : > { %v2186_v15 = vsub.f32 %v2182_v6, %v2185_v14  ;;  %v6805_v14 = vld [vmem:[%s8030_s17 + $0x74] ss:$8 sps:$4 sm:$0xff]  }
 0x60d   : > { %2677 = vmatprep.subr.bf16.mxu0 %v6805_v14  ;;  %v7307_v14 = vld [vmem:[#allocation2 + $0x8] sm:$0xff] }
 0x60e   : > { %v2187_v16 = vmul.f32 1.442695, %v2186_v15  ;;  %v6808_v15 = vld [vmem:[%s8030_s17 + $0x64] ss:$8 sps:$4 sm:$0xff]   ;;  %2678 = vmatpush1.bf16.msra.mxu0 %v6803_v13 }
 0x60f   : > { %v2089_v17 = vpop.xlane.xlu0 %2088  ;;  %2679 = vmatprep.subr.bf16.mxu0 %v6808_v15 }
 0x610   : > { %7246 = vpow2.f32 %v2187_v16  ;;  %v6806_v16 = vld [vmem:[%s8030_s17 + $0x60] ss:$8 sps:$4 sm:$0xff]  }
 0x611   : > { %7248 = vrcp.f32 %v2089_v17  ;;  %v6811_v17 = vld [vmem:[%s8030_s17 + $0x54] ss:$8 sps:$4 sm:$0xff]  }
 0x612   : > { %2680 = vmatpush1.bf16.msra.mxu0 %v6806_v16 }
 0x613   : > { %2681 = vmatprep.subr.bf16.mxu0 %v6811_v17  ;;  %v6854_v17 = vld [vmem:[%s8009_s7 + $0xe0] ss:$16 sps:$4 sm:$0xff]  }
 0x61d   : > { %v8250_v18 = vpop.eup %7246 }
 0x61e   : > { %v7249_v19 = vpop.eup %7248  ;;  %v2192_v21 = vpack.c.bf16 %v8250_v18, %v8250_v18  ;;  %v2189_v0 = vsel %vm2080_vm1, %v8250_v18, 0.0  ;;  %v6809_v18 = vld [vmem:[%s8030_s17 + $0x50] ss:$8 sps:$4 sm:$0xff]  }
 0x61f   : > { %v2139_v23 = vmul.f32 %v7249_v19, %v2132_v1  ;;  %v6814_v19 = vld [vmem:[%s8030_s17 + $0x44] ss:$8 sps:$4 sm:$0xff]   ;;  %2682 = vmatpush1.bf16.msra.mxu0 %v6809_v18 }
 0x620   : > { %6497 = vmatmul.mubr.msk.bf16.vlgmr.msra.gmra.mxu1 %vm2080_vm1, %v2192_v21  ;;  %v6812_v21 = vld [vmem:[%s8030_s17 + $0x40] ss:$8 sps:$4 sm:$0xff]   ;;  %2683 = vmatprep.subr.bf16.mxu0 %v6814_v19  ;;  %v6856_v18 = vld [vmem:[%s8009_s7 + $0xe4] ss:$16 sps:$4 sm:$0xff]  }
 0x621   : > { %v2140_v25 = vpack.c.bf16 %v2139_v23, %v2139_v23  ;;  %6501 = vmatpush3.bf16.xpose.msra.mxu1 %v2247_v22  ;;  %6502 = vmatprep.mubr.msk.bf16.mxu1 %vm7581_vm0, %v7580_v37  ;;  %v6817_v22 = vld [vmem:[%s8030_s17 + $0x34] ss:$8 sps:$4 sm:$0xff]   ;;  %v6815_v23 = vld [vmem:[%s8030_s17 + $0x30] ss:$8 sps:$4 sm:$0xff]  }
 0x622   : > { %6506 = vmatprep.subr.bf16.mxu1 %v7580_v37  ;;  %v6859_v19 = vld [vmem:[%s8009_s7 + $0xc4] ss:$16 sps:$4 sm:$0xff]  }
 0x623   : > { %2141 = vst [vmem:[#allocation3] sm:$0xf] %v2140_v25  ;;  %2684 = vmatpush1.bf16.msra.mxu0 %v6812_v21  ;;  %v6820_v25 = vld [vmem:[%s8030_s17 + $0x24] ss:$8 sps:$4 sm:$0xff]   ;;  %v6866_v21 = vld [vmem:[%s8003_s21 + $0x70] ss:$8 sps:$4 sm:$0xff]  }
 0x624   : > { %2685 = vmatprep.subr.bf16.mxu0 %v6817_v22  ;;  %v6857_v22 = vld [vmem:[%s8009_s7 + $0xc0] ss:$16 sps:$4 sm:$0xff]  }
 0x627   : > { %2686 = vmatpush1.bf16.msra.mxu0 %v6815_v23  ;;  %v6868_v23 = vld [vmem:[%s8003_s21 + $0x74] ss:$8 sps:$4 sm:$0xff]  }
 0x628   : > { %6503 = vmatmul.mubr.bf16.vlgmr.msra.gmra.mxu1 %v2244_v27  ;;  %2687 = vmatprep.subr.bf16.mxu0 %v6820_v25  ;;  %v6823_v27 = vld [vmem:[%s8030_s17 + $0x14] ss:$8 sps:$4 sm:$0xff]  }
 0x629   : > { %6507 = vmatpush3.bf16.msra.mxu1 %v2306_v28  ;;  %6508 = vmatprep.mubr.msk.bf16.mxu1 %vm7581_vm0, %v7580_v37  ;;  %v6821_v28 = vld [vmem:[%s8030_s17 + $0x10] ss:$8 sps:$4 sm:$0xff]   ;;  %v6862_v25 = vld [vmem:[%s8009_s7 + $0xa4] ss:$16 sps:$4 sm:$0xff]  }
 0x62a   : > { %6512 = vmatprep.subr.bf16.mxu1 %v7580_v37 }
 0x62b   : > { %2688 = vmatpush1.bf16.msra.mxu0 %v6818_v26  ;;  %v6874_v26 = vld [vmem:[%s8003_s21 + $0x64] ss:$8 sps:$4 sm:$0xff]  }
 0x62c   : > { %2689 = vmatprep.subr.bf16.mxu0 %v6823_v27  ;;  %v6872_v27 = vld [vmem:[%s8003_s21 + $0x60] ss:$8 sps:$4 sm:$0xff]  }
 0x62f   : > { %2690 = vmatpush1.bf16.msra.mxu0 %v6821_v28  ;;  %v6860_v28 = vld [vmem:[%s8009_s7 + $0xa0] ss:$16 sps:$4 sm:$0xff]  }
 0x6e0   : > { %v2233_v20 = vpop.f32.mrf.mxu1 }
 0x6e2   : > { %v6498_v29 = vpop.f32.mrf.mxu1 }
 0x6e3   : > { %v6824_v29 = vld [vmem:[%s8030_s17] ss:$8 sps:$4 sm:$0xff]  }
 0x6e4   : > { %v2236_v30 = vpop.f32.mrf.mxu1 }
 0x6e5   : > { %v6829_v30 = vld [vmem:[%s8030_s17 + $0xf4] ss:$8 sps:$4 sm:$0xff]  }
 0x6e6   : > { %v6499_v31 = vpop.f32.mrf.mxu1 }
 0x6e7   : > { %v6827_v31 = vld [vmem:[%s8030_s17 + $0xf0] ss:$8 sps:$4 sm:$0xff]  }
 0x6e8   : > { %v2283_v32 = vpop.f32.mrf.mxu1 }
 0x6e9   : > { %v2289_v33 = vmul.f32 0.088388346, %v2283_v32  ;;  %v6832_v32 = vld [vmem:[%s8030_s17 + $0xe4] ss:$8 sps:$4 sm:$0xff]  }
 0x6ea   : > { %v6504_v34 = vpop.f32.mrf.mxu1 }
 0x6eb   : > { %v2290_v35 = vsel %vm2080_vm1, %v2289_v33, -inf  ;;  %v6835_v34 = vld [vmem:[%s8030_s17 + $0xd4] ss:$8 sps:$4 sm:$0xff]  }
 0x6ec   : > { %2291 = vmax.xlane.f32.xlu1 %v2290_v35  ;;  %v2286_v24 = vpop.f32.mrf.mxu1  ;;  %v6833_v35 = vld [vmem:[%s8030_s17 + $0xd0] ss:$8 sps:$4 sm:$0xff]  }
 0x6ed   : > { %v6838_v24 = vld [vmem:[%s8030_s17 + $0xc4] ss:$8 sps:$4 sm:$0xff]  }
 0x6ee   : > { %v6505_v36 = vpop.f32.mrf.mxu1 }
 0x6ef   : > { %v6836_v36 = vld [vmem:[%s8030_s17 + $0xc0] ss:$8 sps:$4 sm:$0xff]  }
 0x775   : > { %v2292_v38 = vpop.xlane.xlu1 %2291 }
 0x776   : > { %v2293_v39 = vsub.f32 %v2289_v33, %v2292_v38  ;;  %v6830_v33 = vld [vmem:[%s8030_s17 + $0xe0] ss:$8 sps:$4 sm:$0xff]   ;;  %v6841_v38 = vld [vmem:[%s8030_s17 + $0xb4] ss:$8 sps:$4 sm:$0xff]  }
 0x778   : > { %v2294_v40 = vmul.f32 1.442695, %v2293_v39  ;;  %v6839_v39 = vld [vmem:[%s8030_s17 + $0xb0] ss:$8 sps:$4 sm:$0xff]  }
 0x77a   : > { %7250 = vpow2.f32 %v2294_v40  ;;  %v6844_v40 = vld [vmem:[%s8030_s17 + $0xa4] ss:$8 sps:$4 sm:$0xff]  }
 0x787   : > { %v7251_v41 = vpop.eup %7250 }
 0x788   : > { %v2296_v42 = vsel %vm2080_vm1, %v7251_v41, 0.0  ;;  %v2299_v43 = vpack.c.bf16 %v7251_v41, %v7251_v41  ;;  %v6842_v41 = vld [vmem:[%s8030_s17 + $0xa0] ss:$8 sps:$4 sm:$0xff]  }
 0x789   : > { %2297 = vadd.xlane.f32.xlu0 %v2296_v42  ;;  %v6845_v42 = vld [vmem:[%s8030_s17 + $0x90] ss:$8 sps:$4 sm:$0xff]  }
 0x78a   : > { %6509 = vmatmul.mubr.msk.bf16.vlgmr.msra.gmra.mxu1 %vm2080_vm1, %v2299_v43  ;;  %v6847_v43 = vld [vmem:[%s8030_s17 + $0x94] ss:$8 sps:$4 sm:$0xff]  }
 0x78b   : > { %6513 = vmatpush3.bf16.xpose.msra.mxu1 %v2356_v44  ;;  %6514 = vmatprep.mubr.msk.bf16.mxu1 %vm7581_vm0, %v7580_v37  ;;  %v6850_v44 = vld [vmem:[%s8030_s17 + $0x84] ss:$8 sps:$4 sm:$0xff]  }
 0x78c   : > { %6518 = vmatprep.subr.bf16.mxu1 %v7580_v37 }
 0x792   : > { %6515 = vmatmul.mubr.bf16.vlgmr.msra.gmra.mxu1 %v2353_v47 }
 0x793   : > { %6519 = vmatpush3.bf16.msra.mxu1 %v2415_v48  ;;  %6520 = vmatprep.mubr.msk.bf16.mxu1 %vm7581_vm0, %v7580_v37 }
 0x794   : > { %2995 = vmatprep.subr.bf16.mxu1 %v6868_v23  ;;  %v6931_v23 = vld [vmem:[%s8009_s7 + $0x124] ss:$16 sps:$4 sm:$0xff]  }
 0x812   : > { %v2298_v50 = vpop.xlane.xlu0 %2297 }
 0x813   : > { %7252 = vrcp.f32 %v2298_v50 }
 0x820   : > { %v7253_v51 = vpop.eup %7252 }
 0x84a   : > { %v2342_v52 = vpop.f32.mrf.mxu1 }
 0x84b   : > { %v2349_v53 = vmul.f32 %v7253_v51, %v2342_v52 }
 0x84c   : > { %v6510_v54 = vpop.f32.mrf.mxu1 }
 0x84d   : > { %v2350_v55 = vpack.c.bf16 %v2349_v53, %v2349_v53 }
 0x84e   : > { %v2345_v56 = vpop.f32.mrf.mxu1 }
 0x84f   : > { %2351 = vst [vmem:[#allocation3 + $0x8] sm:$0xf] %v2350_v55 }
 0x850   : > { %v6511_v57 = vpop.f32.mrf.mxu1 }
 0x852   : > { %v2392_v58 = vpop.f32.mrf.mxu1 }
 0x853   : > { %v2398_v59 = vmul.f32 0.088388346, %v2392_v58 }
 0x854   : > { %v6516_v60 = vpop.f32.mrf.mxu1 }
 0x855   : > { %v2399_v61 = vsel %vm2080_vm1, %v2398_v59, -inf }
 0x856   : > { %2400 = vmax.xlane.f32.xlu1 %v2399_v61  ;;  %v2395_v62 = vpop.f32.mrf.mxu1  ;;  %v6853_v57 = vld [vmem:[#allocation3] ss:$8 sps:$4 sm:$0xff]  }
 0x858   : > { %v6517_v63 = vpop.f32.mrf.mxu1 }
 0x85a   : > { %2190 = vadd.xlane.f32.xlu1 %v2189_v0 }
 0x8df   : > { %v2401_v1 = vpop.xlane.xlu1 %2400 }
 0x8e0   : > { %v2402_v2 = vsub.f32 %v2398_v59, %v2401_v1 }
 0x8e2   : > { %v2403_v3 = vmul.f32 1.442695, %v2402_v2  ;;  %v7304_v2 = vld [vmem:[#allocation2 + $0x10] sm:$0xff] }
 0x8e3   : > { %v2191_v4 = vpop.xlane.xlu1 %2190 }
 0x8e4   : > { %7254 = vpow2.f32 %v2403_v3 }
 0x8e5   : > { %7256 = vrcp.f32 %v2191_v4  ;;  %v7305_v4 = vld [vmem:[#allocation2] sm:$0xff] }
 0x8f1   : > { %v7255_v5 = vpop.eup %7254 }
 0x8f2   : > { %v7257_v6 = vpop.eup %7256  ;;  %v2405_v7 = vsel %vm2080_vm1, %v7255_v5, 0.0  ;;  %v2408_v9 = vpack.c.bf16 %v7255_v5, %v7255_v5 }
 0x8f3   : > { %v2240_v10 = vmul.f32 %v7257_v6, %v2233_v20  ;;  %2406 = vadd.xlane.f32.xlu1 %v2405_v7  ;;  %v6826_v20 = vld [vmem:[%s8030_s17 + $0x4] ss:$8 sps:$4 sm:$0xff]   ;;  %s9083_s17 = sld [smem:[#allocation37_spill]] }
 0x8f4   : > { %6521 = vmatmul.mubr.msk.bf16.vlgmr.msra.gmra.mxu1 %vm2080_vm1, %v2408_v9  ;;  %2691 = vmatprep.subr.bf16.mxu0 %v6826_v20  ;;  %v6880_v20 = vld [vmem:[%s8003_s21 + $0x54] ss:$8 sps:$4 sm:$0xff]  }
 0x8f5   : > { %v2241_v11 = vpack.c.bf16 %v2240_v10, %v2240_v10  ;;  %2692 = vmatpush1.bf16.msra.mxu0 %v6824_v29  ;;  %2996 = vmatpush1.bf16.msra.mxu1 %v6866_v21  ;;  %v6865_v29 = vld [vmem:[%s8009_s7 + $0x84] ss:$16 sps:$4 sm:$0xff]   ;;  %v6926_v21 = vld [vmem:[%s8003_s21 + $0xd0] ss:$8 sps:$4 sm:$0xff]  }
 0x8f6   : > { %2693 = vmatprep.subr.bf16.mxu0 %v6829_v30  ;;  %2997 = vmatprep.subr.bf16.mxu1 %v6874_v26  ;;  %v6878_v30 = vld [vmem:[%s8003_s21 + $0x50] ss:$8 sps:$4 sm:$0xff]  }
 0x8f7   : > { %2242 = vst [vmem:[#allocation3 + $0x4] sm:$0xf] %v2241_v11  ;;  %v7306_v11 = vld [vmem:[#allocation2 + $0x18] sm:$0xff]  ;;  %v6929_v26 = vld [vmem:[%s8009_s7 + $0x120] ss:$16 sps:$4 sm:$0xff]  }
 0x8f9   : > { %2694 = vmatpush2.bf16.msra.mxu0 %v6827_v31  ;;  %s9084_s18 = scalar_lea.vmem %s9083_s17, %s8032_s24  ;;  %2998 = vmatpush1.bf16.msra.mxu1 %v6872_v27  ;;  %v6863_v31 = vld [vmem:[%s8009_s7 + $0x80] ss:$16 sps:$4 sm:$0xff]   ;;  %s9093_s17 = scalar_lea.vmem %s9092_s30, %s8032_s24 }
 0x8fa   : > { %2695 = vmatprep.subr.bf16.mxu0 %v6832_v32  ;;  %v2495_v58 = vld [vmem:[%s9084_s18] sm:$0x3]  ;;  %2999 = vmatprep.subr.bf16.mxu1 %v6880_v20  ;;  %v6886_v32 = vld [vmem:[%s8003_s21 + $0x44] ss:$8 sps:$4 sm:$0xff]   ;;  %v6932_v27 = vld [vmem:[%s8003_s21 + $0xc0] ss:$8 sps:$4 sm:$0xff]  }
 0x8fb   : > { %v2500_v59 = vrot.slane %v2495_v58, %v8207_v12  ;;  %v2504_v60 = vrot.slane %v2495_v58, %v8228_v49  ;;  %v6907_v58 = vld [vmem:[%s8009_s7 + $0x1a4] ss:$16 sps:$4 sm:$0xff]   ;;  %s9094_s18 = sld [smem:[#allocation26_spill]] }
 0x8fc   : > { %v8411_v20 = vld [vmem:[%s9085_s29 + $0x4] ss:$8 sps:$4 sm:$0xff]  }
 0x8fd   : > { %2696 = vmatpush2.bf16.msra.mxu0 %v6830_v33  ;;  %v6871_v33 = vld [vmem:[%s8009_s7 + $0x64] ss:$16 sps:$4 sm:$0xff]   ;;  %3000 = vmatpush1.bf16.msra.mxu1 %v6878_v30  ;;  %v6935_v30 = vld [vmem:[%s8009_s7 + $0x100] ss:$16 sps:$4 sm:$0xff]  }
 0x8fe   : > { %2697 = vmatprep.subr.bf16.mxu0 %v6835_v34  ;;  %v6884_v34 = vld [vmem:[%s8003_s21 + $0x40] ss:$8 sps:$4 sm:$0xff]   ;;  %3001 = vmatprep.subr.bf16.mxu1 %v6886_v32  ;;  %v6946_v32 = vld [vmem:[%s8003_s21 + $0xa4] ss:$8 sps:$4 sm:$0xff]  }
 0x901   : > { %2698 = vmatpush2.bf16.msra.mxu0 %v6833_v35  ;;  %v6869_v35 = vld [vmem:[%s8009_s7 + $0x60] ss:$16 sps:$4 sm:$0xff]   ;;  %3002 = vmatpush1.bf16.msra.mxu1 %v6884_v34 }
 0x902   : > { %2699 = vmatprep.subr.bf16.mxu0 %v6838_v24  ;;  %v6892_v24 = vld [vmem:[%s8003_s21 + $0x34] ss:$8 sps:$4 sm:$0xff]   ;;  %v6944_v34 = vld [vmem:[%s8003_s21 + $0xa0] ss:$8 sps:$4 sm:$0xff]  }
 0x903   : > { %3003 = vmatprep.subr.bf16.mxu1 %v6892_v24  ;;  %v6947_v24 = vld [vmem:[%s8003_s21 + $0x90] ss:$8 sps:$4 sm:$0xff]  }
 0x905   : > { %2700 = vmatpush2.bf16.msra.mxu0 %v6836_v36  ;;  %v6877_v36 = vld [vmem:[%s8009_s7 + $0x44] ss:$16 sps:$4 sm:$0xff]  }
 0x906   : > { %2701 = vmatprep.subr.bf16.mxu0 %v6841_v38  ;;  %v6890_v38 = vld [vmem:[%s8003_s21 + $0x30] ss:$8 sps:$4 sm:$0xff]  }
 0x907   : > { %3004 = vmatpush1.bf16.msra.mxu1 %v6890_v38  ;;  %v6950_v38 = vld [vmem:[%s8003_s21 + $0x80] ss:$8 sps:$4 sm:$0xff]  }
 0x909   : > { %2702 = vmatpush2.bf16.msra.mxu0 %v6839_v39  ;;  %v6875_v39 = vld [vmem:[%s8009_s7 + $0x40] ss:$16 sps:$4 sm:$0xff]  }
 0x90a   : > { %2703 = vmatprep.subr.bf16.mxu0 %v6844_v40  ;;  %v6898_v40 = vld [vmem:[%s8003_s21 + $0x24] ss:$8 sps:$4 sm:$0xff]  }
 0x90b   : > { %3005 = vmatprep.subr.bf16.mxu1 %v6898_v40 }
 0x90d   : > { %2704 = vmatpush2.bf16.msra.mxu0 %v6842_v41  ;;  %v6883_v41 = vld [vmem:[%s8009_s7 + $0x24] ss:$16 sps:$4 sm:$0xff]  }
 0x90e   : > { %2705 = vmatprep.subr.bf16.mxu0 %v6847_v43  ;;  %v6881_v43 = vld [vmem:[%s8009_s7 + $0x20] ss:$16 sps:$4 sm:$0xff]  }
 0x911   : > { %2706 = vmatpush2.bf16.msra.mxu0 %v6845_v42  ;;  %v6896_v42 = vld [vmem:[%s8003_s21 + $0x20] ss:$8 sps:$4 sm:$0xff]  }
 0x912   : > { %2707 = vmatprep.subr.bf16.mxu0 %v6850_v44  ;;  %v6904_v44 = vld [vmem:[%s8003_s21 + $0x14] ss:$8 sps:$4 sm:$0xff]   ;;  %3006 = vmatpush1.bf16.msra.mxu1 %v6896_v42 }
 0x913   : > { %3007 = vmatprep.subr.bf16.mxu1 %v6904_v44 }
 0x915   : > { %2708 = vmatpush2.bf16.msra.mxu0 %v6848_v45  ;;  %v6889_v45 = vld [vmem:[%s8009_s7 + $0x4] ss:$16 sps:$4 sm:$0xff]  }
 0x916   : > { %3458 = vmatprep.subr.bf16.mxu0 %v6856_v18  ;;  %v6923_v18 = vld [vmem:[%s8009_s7 + $0x140] ss:$16 sps:$4 sm:$0xff]  }
 0x97c   : > { %v2407_v47 = vpop.xlane.xlu1 %2406 }
 0x97d   : > { %7258 = vrcp.f32 %v2407_v47  ;;  %v6902_v47 = vld [vmem:[%s8003_s21 + $0x10] ss:$8 sps:$4 sm:$0xff]  }
 0x97e   : > { %3008 = vmatpush1.bf16.msra.mxu1 %v6902_v47  ;;  %v2724_v47 = vld [vmem:[%s9087_s6] sm:$0x3] }
 0x98a   : > { %v7259_v48 = vpop.eup %7258 }
 0x9b4   : > { %v2451_v50 = vpop.f32.mrf.mxu1 }
 0x9b5   : > { %v2458_v51 = vmul.f32 %v7259_v48, %v2451_v50  ;;  %v6887_v48 = vld [vmem:[%s8009_s7] ss:$16 sps:$4 sm:$0xff]   ;;  %v6910_v50 = vld [vmem:[%s8003_s21 + $0x4] ss:$8 sps:$4 sm:$0xff]  }
 0x9b6   : > { %v6522_v52 = vpop.f32.mrf.mxu1  ;;  %3009 = vmatprep.subr.bf16.mxu1 %v6910_v50  ;;  %v2725_v50 = vld [vmem:[%s9088_s15] sm:$0x3] }
 0x9b7   : > { %v2459_v53 = vpack.c.bf16 %v2458_v51, %v2458_v51  ;;  %v6895_v51 = vld [vmem:[%s8009_s7 + $0x1e4] ss:$16 sps:$4 sm:$0xff]   ;;  %v6908_v52 = vld [vmem:[%s8003_s21] ss:$8 sps:$4 sm:$0xff]  }
 0x9b8   : > { %v2454_v54 = vpop.f32.mrf.mxu1  ;;  %3010 = vmatpush1.bf16.msra.mxu1 %v6908_v52  ;;  %v2763_v52 = vrot.slane %v2724_v47, %v8207_v12 }
 0x9b9   : > { %2460 = vst [vmem:[#allocation3 + $0xc] sm:$0xf] %v2459_v53  ;;  %v6893_v53 = vld [vmem:[%s8009_s7 + $0x1e0] ss:$16 sps:$4 sm:$0xff]   ;;  %v6916_v54 = vld [vmem:[%s8003_s21 + $0xf4] ss:$8 sps:$4 sm:$0xff]  }
 0x9ba   : > { %v6523_v55 = vpop.f32.mrf.mxu1  ;;  %3011 = vmatprep.subr.bf16.mxu1 %v6916_v54 }
 0x9bb   : > { %v6901_v55 = vld [vmem:[%s8009_s7 + $0x1c4] ss:$16 sps:$4 sm:$0xff]  }
 0x9c0   : > { %v6851_v56 = vld [vmem:[#allocation3 + $0x4] ss:$8 sps:$4 sm:$0xff]  }
 0x9c1   : > { %2709 = vmatprep.mubr.bf16.mxu0 %v6851_v56  ;;  %v6914_v56 = vld [vmem:[%s8003_s21 + $0xf0] ss:$8 sps:$4 sm:$0xff]  }
 0x9c2   : > { %2710 = vmatmul.mubr.bf16.vlgmr.msra.gmra.mxu0 %v6853_v57  ;;  %v6899_v57 = vld [vmem:[%s8009_s7 + $0x1c0] ss:$16 sps:$4 sm:$0xff]   ;;  %3012 = vmatpush2.bf16.msra.mxu1 %v6914_v56  ;;  %v2778_v56 = vrot.slane %v2725_v50, %v8207_v12 }
 0x9c3   : > { %3459 = vmatpush1.bf16.msra.mxu0 %v6854_v17  ;;  %v6922_v17 = vld [vmem:[%s8003_s21 + $0xe4] ss:$8 sps:$4 sm:$0xff]   ;;  %3490 = vmatprep.mubr.bf16.mxu0 %v8411_v20 }
 0x9c4   : > { %3460 = vmatprep.subr.bf16.mxu0 %v6859_v19  ;;  %3013 = vmatprep.subr.bf16.mxu1 %v6922_v17  ;;  %v6925_v19 = vld [vmem:[%s8009_s7 + $0x144] ss:$16 sps:$4 sm:$0xff]   ;;  %v6970_v17 = vld [vmem:[%s8009_s7 + $0x4c] ss:$16 sps:$4 sm:$0xff]  }
 0x9c7   : > { %3461 = vmatpush1.bf16.msra.mxu0 %v6857_v22  ;;  %v6928_v22 = vld [vmem:[%s8003_s21 + $0xd4] ss:$8 sps:$4 sm:$0xff]  }
 0x9c8   : > { %3462 = vmatprep.subr.bf16.mxu0 %v6862_v25  ;;  %v6934_v25 = vld [vmem:[%s8003_s21 + $0xc4] ss:$8 sps:$4 sm:$0xff]  }
 0x9cb   : > { %3463 = vmatpush1.bf16.msra.mxu0 %v6860_v28  ;;  %v6937_v28 = vld [vmem:[%s8009_s7 + $0x104] ss:$16 sps:$4 sm:$0xff]  }
 0x9cc   : > { %3464 = vmatprep.subr.bf16.mxu0 %v6865_v29  ;;  %v6940_v29 = vld [vmem:[%s8003_s21 + $0xb4] ss:$8 sps:$4 sm:$0xff]  }
 0x9cf   : > { %3465 = vmatpush1.bf16.msra.mxu0 %v6863_v31  ;;  %v6938_v31 = vld [vmem:[%s8003_s21 + $0xb0] ss:$8 sps:$4 sm:$0xff]  }
 0x9d0   : > { %3466 = vmatprep.subr.bf16.mxu0 %v6871_v33  ;;  %v8421_v33 = vld [vmem:[%s9085_s29] ss:$8 sps:$4 sm:$0xff]  }
 0x9d3   : > { %3467 = vmatpush1.bf16.msra.mxu0 %v6869_v35  ;;  %v6949_v35 = vld [vmem:[%s8003_s21 + $0x94] ss:$8 sps:$4 sm:$0xff]  }
 0x9d4   : > { %3468 = vmatprep.subr.bf16.mxu0 %v6877_v36  ;;  %v6952_v36 = vld [vmem:[%s8003_s21 + $0x84] ss:$8 sps:$4 sm:$0xff]  }
 0x9d7   : > { %3469 = vmatpush1.bf16.msra.mxu0 %v6875_v39  ;;  %v6955_v39 = vld [vmem:[%s8009_s7 + $0xec] ss:$16 sps:$4 sm:$0xff]  }
 0x9d8   : > { %3470 = vmatprep.subr.bf16.mxu0 %v6883_v41 }
 0x9db   : > { %3471 = vmatpush1.bf16.msra.mxu0 %v6881_v43 }
 0x9dc   : > { %3472 = vmatprep.subr.bf16.mxu0 %v6889_v45 }
 0x9df   : > { %3473 = vmatpush1.bf16.msra.mxu0 %v6887_v48 }
 0x9e0   : > { %3474 = vmatprep.subr.bf16.mxu0 %v6895_v51 }
 0x9e3   : > { %3475 = vmatpush2.bf16.msra.mxu0 %v6893_v53  ;;  %v2767_v53 = vrot.slane %v2724_v47, %v8228_v49 }
 0x9e4   : > { %3476 = vmatprep.subr.bf16.mxu0 %v6901_v55 }
 0x9e7   : > { %3477 = vmatpush2.bf16.msra.mxu0 %v6899_v57  ;;  %v2782_v57 = vrot.slane %v2725_v50, %v8228_v49 }
 0x9e8   : > { %3478 = vmatprep.subr.bf16.mxu0 %v6907_v58 }
 0xa82   : > { %v2711_v61 = vpop.f32.mrf.mxu0 }
 0xa83   : > { %v2712_v62 = vadd.f32 %v2711_v61, %v2500_v59  ;;  %v6911_v61 = vld [vmem:[%s8009_s7 + $0x180] ss:$16 sps:$4 sm:$0xff]  }
 0xa84   : > { %v2713_v63 = vpop.f32.mrf.mxu0 }
 0xa85   : > { %v2714_v0 = vadd.f32 %v2713_v63, %v2504_v60  ;;  %v8321_v3 = vadd.f32 %v7304_v2, %v2712_v62 }
 0xa86   : > { %v2715_v1 = vpop.f32.mrf.mxu0 }
 0xa87   : > { %v8323_v5 = vadd.f32 %v7305_v4, %v2714_v0  ;;  %v2716_v6 = vadd.f32 %v2715_v1, %v2500_v59  ;;  %v6905_v59 = vld [vmem:[%s8009_s7 + $0x1a0] ss:$16 sps:$4 sm:$0xff]  }
 0xa88   : > { %v2717_v7 = vpop.f32.mrf.mxu0  ;;  %3479 = vmatpush2.bf16.msra.mxu0 %v6905_v59 }
 0xa89   : > { %v2718_v9 = vadd.f32 %v2717_v7, %v2504_v60  ;;  %v2726_v10 = vadd.f32 %v8323_v5, %v8321_v3  ;;  %v8327_v13 = vadd.f32 %v7306_v11, %v2716_v6  ;;  %v6913_v60 = vld [vmem:[%s8009_s7 + $0x184] ss:$16 sps:$4 sm:$0xff]  }
 0xa8a   : > { %3480 = vmatprep.subr.bf16.mxu0 %v6913_v60 }
 0xa8b   : > { %v8329_v15 = vadd.f32 %v7307_v14, %v2718_v9  ;;  %2727 = vadd.xlane.f32.xlu0 %v2726_v10 }
 0xa8c   : > { %3481 = vmatpush2.bf16.msra.mxu0 %v6911_v61 }
 0xa8d   : > { %v2729_v16 = vadd.f32 %v8329_v15, %v8327_v13 }
 0xa8f   : > { %2730 = vadd.xlane.f32.xlu1 %v2729_v16  ;;  %v6919_v16 = vld [vmem:[%s8009_s7 + $0x164] ss:$16 sps:$4 sm:$0xff]  }
 0xa90   : > { %3482 = vmatprep.subr.bf16.mxu0 %v6919_v16  ;;  %v6967_v16 = vld [vmem:[%s8009_s7 + $0x6c] ss:$16 sps:$4 sm:$0xff]  }
 0xb14   : > { %v2728_v62 = vpop.xlane.xlu0 %2727 }
 0xb15   : > { %v2733_v63 = vmul.f32 0.00390625, %v2728_v62 }
 0xb17   : > { %v8376_v0 = vsub.f32 %v8321_v3, %v2733_v63  ;;  %v8379_v1 = vsub.f32 %v8323_v5, %v2733_v63 }
 0xb18   : > { %v2731_v2 = vpop.xlane.xlu1 %2730 }
 0xb19   : > { %v2734_v4 = vmul.f32 0.00390625, %v2731_v2  ;;  %v2739_v6 = vmul.f32 %v8376_v0, %v8376_v0  ;;  %v2740_v7 = vmul.f32 %v8379_v1, %v8379_v1 }
 0xb1b   : > { %v8386_v9 = vsub.f32 %v8327_v13, %v2734_v4  ;;  %v8389_v3 = vsub.f32 %v8329_v15, %v2734_v4  ;;  %v2743_v10 = vadd.f32 %v2740_v7, %v2739_v6  ;;  %v6917_v13 = vld [vmem:[%s8009_s7 + $0x160] ss:$16 sps:$4 sm:$0xff]  }
 0xb1c   : > { %v6920_v15 = vld [vmem:[%s8003_s21 + $0xe0] ss:$8 sps:$4 sm:$0xff]   ;;  %3483 = vmatpush2.bf16.msra.mxu0 %v6917_v13 }
 0xb1d   : > { %2744 = vadd.xlane.f32.xlu0 %v2743_v10  ;;  %v2741_v5 = vmul.f32 %v8386_v9, %v8386_v9  ;;  %v2742_v11 = vmul.f32 %v8389_v3, %v8389_v3  ;;  %3014 = vmatpush2.bf16.msra.mxu1 %v6920_v15  ;;  %v6956_v10 = vld [vmem:[%s8009_s7 + $0xc8] ss:$16 sps:$4 sm:$0xff]  }
 0xb1e   : > { %3484 = vmatprep.subr.bf16.mxu0 %v6925_v19  ;;  %3015 = vmatprep.subr.bf16.mxu1 %v6928_v22  ;;  %v6962_v13 = vld [vmem:[%s8009_s7 + $0x88] ss:$16 sps:$4 sm:$0xff]   ;;  %v6973_v19 = vld [vmem:[%s8009_s7 + $0x2c] ss:$16 sps:$4 sm:$0xff]  }
 0xb1f   : > { %v2746_v14 = vadd.f32 %v2742_v11, %v2741_v5  ;;  %v6961_v5 = vld [vmem:[%s8009_s7 + $0xac] ss:$16 sps:$4 sm:$0xff]   ;;  %v6959_v11 = vld [vmem:[%s8009_s7 + $0xa8] ss:$16 sps:$4 sm:$0xff]  }
 0xb20   : > { %3485 = vmatpush2.bf16.msra.mxu0 %v6923_v18  ;;  %v6965_v15 = vld [vmem:[%s8009_s7 + $0x68] ss:$16 sps:$4 sm:$0xff]   ;;  %v6976_v22 = vld [vmem:[%s8009_s7 + $0xc] ss:$16 sps:$4 sm:$0xff]  }
 0xb21   : > { %2747 = vadd.xlane.f32.xlu1 %v2746_v14  ;;  %3016 = vmatpush2.bf16.msra.mxu1 %v6926_v21  ;;  %v6964_v14 = vld [vmem:[%s8009_s7 + $0x8c] ss:$16 sps:$4 sm:$0xff]   ;;  %v6968_v18 = vld [vmem:[%s8009_s7 + $0x48] ss:$16 sps:$4 sm:$0xff]  }
 0xb22   : > { %3486 = vmatprep.subr.bf16.mxu0 %v6931_v23  ;;  %3017 = vmatprep.subr.bf16.mxu1 %v6934_v25  ;;  %v6971_v21 = vld [vmem:[%s8009_s7 + $0x28] ss:$16 sps:$4 sm:$0xff]   ;;  %v6979_v25 = vld [vmem:[%s8009_s7 + $0x1ec] ss:$16 sps:$4 sm:$0xff]  }
 0xb23   : > { %v6974_v23 = vld [vmem:[%s8009_s7 + $0x8] ss:$16 sps:$4 sm:$0xff]  }
 0xb24   : > { %3487 = vmatpush2.bf16.msra.mxu0 %v6929_v26  ;;  %v6977_v26 = vld [vmem:[%s8009_s7 + $0x1e8] ss:$16 sps:$4 sm:$0xff]  }
 0xb25   : > { %3018 = vmatpush2.bf16.msra.mxu1 %v6932_v27  ;;  %3488 = vmatprep.subr.bf16.mxu0 %v6937_v28  ;;  %v6982_v27 = vld [vmem:[%s8009_s7 + $0x1cc] ss:$16 sps:$4 sm:$0xff]   ;;  %v6980_v28 = vld [vmem:[%s8009_s7 + $0x1c8] ss:$16 sps:$4 sm:$0xff]  }
 0xb26   : > { %3019 = vmatprep.subr.bf16.mxu1 %v6940_v29  ;;  %v6983_v29 = vld [vmem:[%s8009_s7 + $0x1a8] ss:$16 sps:$4 sm:$0xff]  }
 0xb28   : > { %3489 = vmatpush2.bf16.msra.mxu0 %v6935_v30  ;;  %v6988_v30 = vld [vmem:[%s8009_s7 + $0x18c] ss:$16 sps:$4 sm:$0xff]  }
 0xb29   : > { %3020 = vmatpush2.bf16.msra.mxu1 %v6938_v31  ;;  %v6986_v31 = vld [vmem:[%s8009_s7 + $0x188] ss:$16 sps:$4 sm:$0xff]  }
 0xb2a   : > { %3021 = vmatprep.subr.bf16.mxu1 %v6946_v32  ;;  %v6991_v32 = vld [vmem:[%s8009_s7 + $0x16c] ss:$16 sps:$4 sm:$0xff]  }
 0xb2b   : > { %3491 = vmatmul.mubr.bf16.vlgmr.msra.gmra.mxu0 %v8421_v33 }
 0xb2d   : > { %3022 = vmatpush2.bf16.msra.mxu1 %v6944_v34  ;;  %v6989_v34 = vld [vmem:[%s8009_s7 + $0x168] ss:$16 sps:$4 sm:$0xff]  }
 0xb2e   : > { %3023 = vmatprep.subr.bf16.mxu1 %v6949_v35  ;;  %v6994_v35 = vld [vmem:[%s8009_s7 + $0x14c] ss:$16 sps:$4 sm:$0xff]  }
 0xb31   : > { %3024 = vmatpush2.bf16.msra.mxu1 %v6947_v24  ;;  %v6992_v24 = vld [vmem:[%s8009_s7 + $0x148] ss:$16 sps:$4 sm:$0xff]  }
 0xb32   : > { %3025 = vmatprep.subr.bf16.mxu1 %v6952_v36  ;;  %v6997_v36 = vld [vmem:[%s8009_s7 + $0x12c] ss:$16 sps:$4 sm:$0xff]  }
 0xb35   : > { %3026 = vmatpush2.bf16.msra.mxu1 %v6950_v38  ;;  %v3106_v38 = vld [vmem:[%s8058_s5] sm:$0xf] }
 0xb36   : > { %3501 = vmatprep.subr.bf16.mxu1 %v6955_v39  ;;  %v6995_v39 = vld [vmem:[%s8009_s7 + $0x128] ss:$16 sps:$4 sm:$0xff]  }
 0xba6   : > { %v2745_v40 = vpop.xlane.xlu0 %2744 }
 0xba7   : > { %v2749_v41 = vmul.f32 0.00390625, %v2745_v40  ;;  %v3111_v40 = vrot.slane %v3106_v38, %v8207_v12 }
 0xba9   : > { %v2751_v42 = vadd.f32 1e-12, %v2749_v41  ;;  %v7000_v41 = vld [vmem:[%s8009_s7 + $0x10c] ss:$16 sps:$4 sm:$0xff]  }
 0xbaa   : > { %v2748_v43 = vpop.xlane.xlu1 %2747 }
 0xbab   : > { %7260 = vrsqrt.f32 %v2751_v42  ;;  %v2750_v44 = vmul.f32 0.00390625, %v2748_v43 }
 0xbad   : > { %v2752_v45 = vadd.f32 1e-12, %v2750_v44  ;;  %v6998_v44 = vld [vmem:[%s8009_s7 + $0x108] ss:$16 sps:$4 sm:$0xff]  }
 0xbaf   : > { %7262 = vrsqrt.f32 %v2752_v45 }
 0xbb8   : > { %v7261_v48 = vpop.eup %7260 }
 0xbb9   : > { %v2756_v51 = vmul.f32 %v7261_v48, %v8379_v1  ;;  %v2755_v54 = vmul.f32 %v7261_v48, %v8376_v0 }
 0xbbb   : > { %v2771_v59 = vmul.f32 %v2767_v53, %v2756_v51  ;;  %v2770_v61 = vmul.f32 %v2763_v52, %v2755_v54  ;;  %v2823_v51 = vld [vmem:[%s9090_s27] sm:$0x3] }
 0xbbc   : > { %v7263_v55 = vpop.eup %7262 }
 0xbbd   : > { %v2758_v58 = vmul.f32 %v7263_v55, %v8389_v3  ;;  %v2757_v60 = vmul.f32 %v7263_v55, %v8386_v9  ;;  %v8448_v1 = vadd.f32 %v2782_v57, %v2771_v59  ;;  %v8452_v2 = vadd.f32 %v2778_v56, %v2770_v61  ;;  %v6953_v9 = vld [vmem:[%s8009_s7 + $0xe8] ss:$16 sps:$4 sm:$0xff]   ;;  %v6958_v3 = vld [vmem:[%s8009_s7 + $0xcc] ss:$16 sps:$4 sm:$0xff]  }
 0xbbe   : > { %v2832_v55 = vrot.slane %v2823_v51, %v8228_v49 }
 0xbbf   : > { %v2773_v62 = vmul.f32 %v2767_v53, %v2758_v58  ;;  %v2772_v63 = vmul.f32 %v2763_v52, %v2757_v60  ;;  %v2828_v53 = vrot.slane %v2823_v51, %v8207_v12 }
 0xbc1   : > { %v8450_v0 = vadd.f32 %v2782_v57, %v2773_v62  ;;  %v8454_v4 = vadd.f32 %v2778_v56, %v2772_v63  ;;  %v3119_v63 = vrot.slane %v3106_v38, %v8203_v8 }
 0xbc3   : > { %v2790_v6 = vpack.c.bf16 %v8450_v0, %v8448_v1  ;;  %v2789_v7 = vpack.c.bf16 %v8454_v4, %v8452_v2 }
 0xbc5   : > { %3027 = vmatprep.mubr.bf16.mxu1 %v2790_v6 }
 0xbc6   : > { %3028 = vmatmul.mubr.bf16.vlgmr.msra.gmra.mxu1 %v2789_v7 }
 0xbc7   : > { %3502 = vmatpush1.bf16.msra.mxu1 %v6953_v9  ;;  %3533 = vmatprep.mubr.bf16.mxu1 %v8411_v20  ;;  %v6985_v20 = vld [vmem:[%s8009_s7 + $0x1ac] ss:$16 sps:$4 sm:$0xff]  }
 0xbc8   : > { %3503 = vmatprep.subr.bf16.mxu1 %v6958_v3 }
 0xbcb   : > { %3504 = vmatpush1.bf16.msra.mxu1 %v6956_v10 }
 0xbcc   : > { %3505 = vmatprep.subr.bf16.mxu1 %v6961_v5 }
 0xbcf   : > { %3506 = vmatpush1.bf16.msra.mxu1 %v6959_v11 }
 0xbd0   : > { %3507 = vmatprep.subr.bf16.mxu1 %v6964_v14 }
 0xbd3   : > { %3508 = vmatpush1.bf16.msra.mxu1 %v6962_v13 }
 0xbd4   : > { %3509 = vmatprep.subr.bf16.mxu1 %v6967_v16 }
 0xbd7   : > { %3510 = vmatpush1.bf16.msra.mxu1 %v6965_v15 }
 0xbd8   : > { %3511 = vmatprep.subr.bf16.mxu1 %v6970_v17 }
 0xbdb   : > { %3512 = vmatpush1.bf16.msra.mxu1 %v6968_v18 }
 0xbdc   : > { %3513 = vmatprep.subr.bf16.mxu1 %v6973_v19 }
 0xbdf   : > { %3514 = vmatpush1.bf16.msra.mxu1 %v6971_v21 }
 0xbe0   : > { %3515 = vmatprep.subr.bf16.mxu1 %v6976_v22 }
 0xbe3   : > { %3516 = vmatpush1.bf16.msra.mxu1 %v6974_v23 }
 0xbe4   : > { %3517 = vmatprep.subr.bf16.mxu1 %v6979_v25  ;;  %v3115_v25 = vrot.slane %v3106_v38, %v8228_v49 }
 0xbe7   : > { %3518 = vmatpush2.bf16.msra.mxu1 %v6977_v26 }
 0xbe8   : > { %3519 = vmatprep.subr.bf16.mxu1 %v6982_v27 }
 0xbeb   : > { %3520 = vmatpush2.bf16.msra.mxu1 %v6980_v28  ;;  %v3492_v42 = vpop.f32.mrf.mxu0 }
 0xbec   : > { %3521 = vmatprep.subr.bf16.mxu1 %v6985_v20  ;;  %v3493_v45 = vadd.f32 %v3492_v42, %v3111_v40  ;;  %v3123_v20 = vrot.slane %v3106_v38, %v8225_v46 }
 0xbed   : > { %v3494_v43 = vpop.f32.mrf.mxu0 }
 0xbee   : > { %v3495_v27 = vadd.f32 %v3494_v43, %v3115_v25 }
 0xbef   : > { %3522 = vmatpush2.bf16.msra.mxu1 %v6983_v29  ;;  %v3496_v47 = vpop.f32.mrf.mxu0 }
 0xbf0   : > { %3523 = vmatprep.subr.bf16.mxu1 %v6988_v30  ;;  %v3497_v48 = vadd.f32 %v3496_v47, %v3111_v40 }
 0xbf1   : > { %v3498_v26 = vpop.f32.mrf.mxu0 }
 0xbf2   : > { %v8494_v50 = vpack.c.bf16 %v3497_v48, %v3493_v45  ;;  %v3499_v28 = vadd.f32 %v3498_v26, %v3115_v25 }
 0xbf3   : > { %3524 = vmatpush2.bf16.msra.mxu1 %v6986_v31 }
 0xbf4   : > { %3525 = vmatprep.subr.bf16.mxu1 %v6991_v32  ;;  %v8522_v31 = vpack.c.bf16 %v3499_v28, %v3495_v27 }
 0xbf7   : > { %3526 = vmatpush2.bf16.msra.mxu1 %v6989_v34 }
 0xbf8   : > { %3527 = vmatprep.subr.bf16.mxu1 %v6994_v35 }
 0xbfb   : > { %3528 = vmatpush2.bf16.msra.mxu1 %v6992_v24 }
 0xbfc   : > { %3529 = vmatprep.subr.bf16.mxu1 %v6997_v36 }
 0xbff   : > { %3530 = vmatpush2.bf16.msra.mxu1 %v6995_v39 }
 0xc00   : > { %3531 = vmatprep.subr.bf16.mxu1 %v7000_v41 }
 0xc03   : > { %3532 = vmatpush2.bf16.msra.mxu1 %v6998_v44 }
 0xc04   : > { %6524 = vmatprep.subr.bf16.mxu1 %v7580_v37 }
 0xc06   : > { %3534 = vmatmul.mubr.bf16.vlgmr.msra.gmra.mxu1 %v8421_v33 }
 0xc07   : > { %6525 = vmatpush3.bf16.xpose.msra.mxu1 %v8494_v50  ;;  %6526 = vmatprep.mubr.msk.bf16.mxu1 %vm7581_vm0, %v7580_v37 }
 0xc08   : > { %6530 = vmatprep.subr.bf16.mxu1 %v7580_v37 }
 0xc86   : > { %v3029_v52 = vpop.f32.mrf.mxu1 }
 0xc87   : > { %v3030_v33 = vadd.f32 %v3029_v52, %v2828_v53 }
 0xc88   : > { %v3031_v54 = vpop.f32.mrf.mxu1 }
 0xc89   : > { %v3032_v59 = vadd.f32 %v3031_v54, %v2832_v55 }
 0xc8a   : > { %v3033_v56 = vpop.f32.mrf.mxu1 }
 0xc8b   : > { %v3034_v57 = vadd.f32 %v3033_v56, %v2828_v53 }
 0xc8c   : > { %v3035_v58 = vpop.f32.mrf.mxu1 }
 0xc8d   : > { %v8509_v60 = vpack.c.bf16 %v3034_v57, %v3030_v33  ;;  %v3036_v61 = vadd.f32 %v3035_v58, %v2832_v55  ;;  %v3754_v55 = vrot.slane %v8494_v50, 4 }
 0xc8f   : > { %v8511_v62 = vpack.c.bf16 %v3036_v61, %v3032_v59  ;;  %6527 = vmatmul.mubr.bf16.vlgmr.msra.gmra.mxu1 %v8509_v60  ;;  %v3751_v33 = vrot.slane %v8509_v60, 4 }
 0xc90   : > { %6532 = vmatprep.mubr.msk.bf16.mxu1 %vm7581_vm0, %v7580_v37 }
 0xc91   : > { %v3860_v25 = vrot.slane %v8511_v62, 4 }
 0xcc6   : > { %v3535_v6 = vpop.f32.mrf.mxu1 }
 0xcc7   : > { %v3536_v9 = vadd.f32 %v3535_v6, %v3119_v63 }
 0xcc8   : > { %v3537_v7 = vpop.f32.mrf.mxu1 }
 0xcc9   : > { %v3538_v32 = vadd.f32 %v3537_v7, %v3123_v20 }
 0xcca   : > { %v3539_v3 = vpop.f32.mrf.mxu1 }
 0xccb   : > { %v3540_v10 = vadd.f32 %v3539_v3, %v3119_v63 }
 0xccc   : > { %v3541_v14 = vpop.f32.mrf.mxu1 }
 0xccd   : > { %v3546_v5 = vpack.c.bf16 %v3540_v10, %v3536_v9  ;;  %v3542_v34 = vadd.f32 %v3541_v14, %v3123_v20 }
 0xccf   : > { %v3603_v11 = vsel %vm2094_vm2, %v3546_v5, 0  ;;  %v8529_v35 = vpack.c.bf16 %v3542_v34, %v3538_v32  ;;  %v3808_v56 = vrot.slane %v3546_v5, 4 }
 0xcd0   : > { %6531 = vmatpush3.bf16.msra.mxu1 %v3603_v11 }
 0xcd1   : > { %6536 = vmatprep.subr.bf16.mxu1 %v7580_v37  ;;  %v3704_v24 = vsel %vm2094_vm2, %v8529_v35, 0  ;;  %v3813_v57 = vsel %vm2094_vm2, %v3808_v56, 0  ;;  %v7004_v56 = vld [vmem:[%s9091_s14 + $0x60] ss:$8 sps:$4 sm:$0xff]  }
 0xd4f   : > { %v3582_v13 = vpop.f32.mrf.mxu1 }
 0xd50   : > { %v3588_v16 = vmul.f32 0.088388346, %v3582_v13 }
 0xd51   : > { %v6528_v15 = vpop.f32.mrf.mxu1 }
 0xd52   : > { %v3589_v17 = vsel %vm2080_vm1, %v3588_v16, -inf }
 0xd53   : > { %3590 = vmax.xlane.f32.xlu0 %v3589_v17  ;;  %v3585_v18 = vpop.f32.mrf.mxu1 }
 0xd55   : > { %v6529_v19 = vpop.f32.mrf.mxu1 }
 0xd56   : > { %v3863_v19 = vrot.slane %v8522_v31, 4 }
 0xddc   : > { %v3591_v21 = vpop.xlane.xlu0 %3590 }
 0xddd   : > { %v3592_v22 = vsub.f32 %v3588_v16, %v3591_v21 }
 0xddf   : > { %v3593_v23 = vmul.f32 1.442695, %v3592_v22 }
 0xde1   : > { %7264 = vpow2.f32 %v3593_v23  ;;  %v3917_v23 = vrot.slane %v8529_v35, 4 }
 0xde3   : > { %v3922_v26 = vsel %vm2094_vm2, %v3917_v23, 0  ;;  %v7045_v23 = vld [vmem:[%s9091_s14 + $0x94] ss:$8 sps:$4 sm:$0xff]  }
 0xdee   : > { %v7265_v29 = vpop.eup %7264 }
 0xdef   : > { %v3598_v30 = vpack.c.bf16 %v7265_v29, %v7265_v29  ;;  %v3595_v10 = vsel %vm2080_vm1, %v7265_v29, 0.0 }
 0xdf1   : > { %6533 = vmatmul.mubr.msk.bf16.vlgmr.msra.gmra.mxu1 %vm2080_vm1, %v3598_v30 }
 0xdf2   : > { %6537 = vmatpush3.bf16.xpose.msra.mxu1 %v8522_v31  ;;  %6538 = vmatprep.mubr.msk.bf16.mxu1 %vm7581_vm0, %v7580_v37 }
 0xdf3   : > { %6542 = vmatprep.subr.bf16.mxu1 %v7580_v37 }
 0xdf9   : > { %6539 = vmatmul.mubr.bf16.vlgmr.msra.gmra.mxu1 %v8511_v62 }
 0xdfa   : > { %6543 = vmatpush3.bf16.msra.mxu1 %v3704_v24  ;;  %6544 = vmatprep.mubr.msk.bf16.mxu1 %vm7581_vm0, %v7580_v37 }
 0xdfb   : > { %6548 = vmatprep.subr.bf16.mxu1 %v7580_v37 }
 0xeb1   : > { %v3639_v36 = vpop.f32.mrf.mxu1 }
 0xeb3   : > { %v6534_v38 = vpop.f32.mrf.mxu1 }
 0xeb5   : > { %v3642_v39 = vpop.f32.mrf.mxu1 }
 0xeb7   : > { %v6535_v40 = vpop.f32.mrf.mxu1 }
 0xeb9   : > { %v3683_v41 = vpop.f32.mrf.mxu1 }
 0xeba   : > { %v3689_v42 = vmul.f32 0.088388346, %v3683_v41 }
 0xebb   : > { %v6540_v43 = vpop.f32.mrf.mxu1 }
 0xebc   : > { %v3690_v44 = vsel %vm2080_vm1, %v3689_v42, -inf }
 0xebd   : > { %3691 = vmax.xlane.f32.xlu1 %v3690_v44  ;;  %v3686_v45 = vpop.f32.mrf.mxu1 }
 0xebf   : > { %v6541_v47 = vpop.f32.mrf.mxu1 }
 0xf46   : > { %v3692_v48 = vpop.xlane.xlu1 %3691 }
 0xf47   : > { %v3693_v51 = vsub.f32 %v3689_v42, %v3692_v48 }
 0xf49   : > { %v3694_v52 = vmul.f32 1.442695, %v3693_v51 }
 0xf4b   : > { %7266 = vpow2.f32 %v3694_v52 }
 0xf58   : > { %v8538_v53 = vpop.eup %7266 }
 0xf59   : > { %v3699_v54 = vpack.c.bf16 %v8538_v53, %v8538_v53 }
 0xf5b   : > { %6545 = vmatmul.mubr.msk.bf16.vlgmr.msra.gmra.mxu1 %vm2080_vm1, %v3699_v54  ;;  %v7003_v54 = vld [vmem:[%s9091_s14 + $0x74] ss:$8 sps:$4 sm:$0xff]  }
 0xf5c   : > { %6549 = vmatpush3.bf16.xpose.msra.mxu1 %v3754_v55  ;;  %6550 = vmatprep.mubr.msk.bf16.mxu1 %vm7581_vm0, %v7580_v37  ;;  %v7006_v55 = vld [vmem:[%s9091_s14 + $0x64] ss:$8 sps:$4 sm:$0xff]  }
 0xf5d   : > { %6554 = vmatprep.subr.bf16.mxu1 %v7580_v37  ;;  %4184 = vmatprep.subr.bf16.mxu0 %v7003_v54 }
 0xf63   : > { %6551 = vmatmul.mubr.bf16.vlgmr.msra.gmra.mxu1 %v3751_v33  ;;  %v7009_v33 = vld [vmem:[%s9091_s14 + $0x54] ss:$8 sps:$4 sm:$0xff]  }
 0xf64   : > { %6555 = vmatpush3.bf16.msra.mxu1 %v3813_v57  ;;  %6556 = vmatprep.mubr.msk.bf16.mxu1 %vm7581_vm0, %v7580_v37  ;;  %v7007_v57 = vld [vmem:[%s9091_s14 + $0x50] ss:$8 sps:$4 sm:$0xff]  }
 0xf65   : > { %6560 = vmatprep.subr.bf16.mxu1 %v7580_v37 }
0x101b   : > { %v8552_v50 = vpop.f32.mrf.mxu1 }
0x101d   : > { %v6546_v58 = vpop.f32.mrf.mxu1 }
0x101e   : > { %v7010_v58 = vld [vmem:[%s9091_s14 + $0x40] ss:$8 sps:$4 sm:$0xff]  }
0x101f   : > { %v3743_v59 = vpop.f32.mrf.mxu1 }
0x1020   : > { %v7015_v59 = vld [vmem:[%s9091_s14 + $0x34] ss:$8 sps:$4 sm:$0xff]  }
0x1021   : > { %v6547_v61 = vpop.f32.mrf.mxu1 }
0x1022   : > { %v7013_v61 = vld [vmem:[%s9091_s14 + $0x30] ss:$8 sps:$4 sm:$0xff]  }
0x1023   : > { %v3790_v63 = vpop.f32.mrf.mxu1 }
0x1024   : > { %v3796_v6 = vmul.f32 0.088388346, %v3790_v63  ;;  %v7018_v63 = vld [vmem:[%s9091_s14 + $0x24] ss:$8 sps:$4 sm:$0xff]  }
0x1025   : > { %v6552_v7 = vpop.f32.mrf.mxu1 }
0x1026   : > { %v3797_v9 = vsel %vm2080_vm1, %v3796_v6, -inf  ;;  %v7021_v7 = vld [vmem:[%s9091_s14 + $0x14] ss:$8 sps:$4 sm:$0xff]  }
0x1027   : > { %3798 = vmax.xlane.f32.xlu0 %v3797_v9  ;;  %v3793_v60 = vpop.f32.mrf.mxu1  ;;  %v7019_v9 = vld [vmem:[%s9091_s14 + $0x10] ss:$8 sps:$4 sm:$0xff]  }
0x1028   : > { %v7024_v60 = vld [vmem:[%s9091_s14 + $0x4] ss:$8 sps:$4 sm:$0xff]  }
0x1029   : > { %v6553_v3 = vpop.f32.mrf.mxu1 }
0x102a   : > { %v7022_v3 = vld [vmem:[%s9091_s14] ss:$8 sps:$4 sm:$0xff]  }
0x102b   : > { %3596 = vadd.xlane.f32.xlu0 %v3595_v10  ;;  %v7027_v10 = vld [vmem:[%s9091_s14 + $0xf4] ss:$8 sps:$4 sm:$0xff]  }
0x10b0   : > { %v3799_v5 = vpop.xlane.xlu0 %3798 }
0x10b1   : > { %v3800_v11 = vsub.f32 %v3796_v6, %v3799_v5  ;;  %v7016_v6 = vld [vmem:[%s9091_s14 + $0x20] ss:$8 sps:$4 sm:$0xff]   ;;  %v7025_v5 = vld [vmem:[%s9091_s14 + $0xf0] ss:$8 sps:$4 sm:$0xff]  }
0x10b3   : > { %v3801_v14 = vmul.f32 1.442695, %v3800_v11  ;;  %v7030_v11 = vld [vmem:[%s9091_s14 + $0xe4] ss:$8 sps:$4 sm:$0xff]  }
0x10b4   : > { %v3597_v13 = vpop.xlane.xlu0 %3596 }
0x10b5   : > { %7268 = vpow2.f32 %v3801_v14  ;;  %v7028_v14 = vld [vmem:[%s9091_s14 + $0xe0] ss:$8 sps:$4 sm:$0xff]  }
0x10b6   : > { %7270 = vrcp.f32 %v3597_v13  ;;  %v7033_v13 = vld [vmem:[%s9091_s14 + $0xd4] ss:$8 sps:$4 sm:$0xff]  }
0x10c2   : > { %v7269_v16 = vpop.eup %7268 }
0x10c3   : > { %v7271_v15 = vpop.eup %7270  ;;  %v3803_v17 = vsel %vm2080_vm1, %v7269_v16, 0.0  ;;  %v3806_v18 = vpack.c.bf16 %v7269_v16, %v7269_v16  ;;  %v7031_v16 = vld [vmem:[%s9091_s14 + $0xd0] ss:$8 sps:$4 sm:$0xff]  }
0x10c4   : > { %v3646_v21 = vmul.f32 %v7271_v15, %v3639_v36  ;;  %3804 = vadd.xlane.f32.xlu0 %v3803_v17  ;;  %v7036_v15 = vld [vmem:[%s9091_s14 + $0xc4] ss:$8 sps:$4 sm:$0xff]   ;;  %v7034_v17 = vld [vmem:[%s9091_s14 + $0xc0] ss:$8 sps:$4 sm:$0xff]  }
0x10c5   : > { %6557 = vmatmul.mubr.msk.bf16.vlgmr.msra.gmra.mxu1 %vm2080_vm1, %v3806_v18  ;;  %v7037_v18 = vld [vmem:[%s9091_s14 + $0xb0] ss:$8 sps:$4 sm:$0xff]  }
0x10c6   : > { %v3647_v22 = vpack.c.bf16 %v3646_v21, %v3646_v21  ;;  %6561 = vmatpush3.bf16.xpose.msra.mxu1 %v3863_v19  ;;  %6562 = vmatprep.mubr.msk.bf16.mxu1 %vm7581_vm0, %v7580_v37  ;;  %v7039_v19 = vld [vmem:[%s9091_s14 + $0xb4] ss:$8 sps:$4 sm:$0xff]   ;;  %v7042_v21 = vld [vmem:[%s9091_s14 + $0xa4] ss:$8 sps:$4 sm:$0xff]  }
0x10c7   : > { %6566 = vmatprep.subr.bf16.mxu1 %v7580_v37 }
0x10c8   : > { %3648 = vst [vmem:[#allocation3] sm:$0xf] %v3647_v22  ;;  %v7040_v22 = vld [vmem:[%s9091_s14 + $0xa0] ss:$8 sps:$4 sm:$0xff]  }
0x10cd   : > { %6563 = vmatmul.mubr.bf16.vlgmr.msra.gmra.mxu1 %v3860_v25  ;;  %v7043_v25 = vld [vmem:[%s9091_s14 + $0x90] ss:$8 sps:$4 sm:$0xff]  }
0x10ce   : > { %6567 = vmatpush3.bf16.msra.mxu1 %v3922_v26  ;;  %6568 = vmatprep.mubr.msk.bf16.mxu1 %vm7581_vm0, %v7580_v37  ;;  %v3696_v37 = vsel %vm2080_vm1, %v8538_v53, 0.0  ;;  %v7001_v53 = vld [vmem:[%s9091_s14 + $0x70] ss:$8 sps:$4 sm:$0xff]   ;;  %v7048_v26 = vld [vmem:[%s9091_s14 + $0x84] ss:$8 sps:$4 sm:$0xff]  }
0x10cf   : > { %4185 = vmatpush1.bf16.msra.mxu0 %v7001_v53 }
0x10d0   : > { %4186 = vmatprep.subr.bf16.mxu0 %v7006_v55  ;;  %v7054_v55 = vld [vmem:[%s9094_s18 + $0xe4] ss:$16 sps:$4 sm:$0xff]  }
0x10d1   : > { %4703 = vmatprep.subr.bf16.mxu1 %v7054_v55  ;;  %v7121_v55 = vld [vmem:[%s9094_s18 + $0x188] ss:$16 sps:$4 sm:$0xff]  }
0x10d3   : > { %4187 = vmatpush1.bf16.msra.mxu0 %v7004_v56  ;;  %v7055_v56 = vld [vmem:[%s9094_s18 + $0xe8] ss:$16 sps:$4 sm:$0xff]  }
0x10d4   : > { %4188 = vmatprep.subr.bf16.mxu0 %v7009_v33  ;;  %v7057_v33 = vld [vmem:[%s9094_s18 + $0xec] ss:$16 sps:$4 sm:$0xff]  }
0x10d7   : > { %4189 = vmatpush1.bf16.msra.mxu0 %v7007_v57  ;;  %v7060_v57 = vld [vmem:[%s9094_s18 + $0xc4] ss:$16 sps:$4 sm:$0xff]  }
0x114d   : > { %v3805_v27 = vpop.xlane.xlu0 %3804 }
0x114e   : > { %7272 = vrcp.f32 %v3805_v27  ;;  %v7046_v27 = vld [vmem:[%s9091_s14 + $0x80] ss:$8 sps:$4 sm:$0xff]  }
0x115b   : > { %v7273_v28 = vpop.eup %7272 }
0x1185   : > { %v3849_v20 = vpop.f32.mrf.mxu1 }
0x1186   : > { %v3856_v29 = vmul.f32 %v7273_v28, %v3849_v20 }
0x1187   : > { %v6558_v30 = vpop.f32.mrf.mxu1 }
0x1188   : > { %v3857_v31 = vpack.c.bf16 %v3856_v29, %v3856_v29 }
0x1189   : > { %v3852_v32 = vpop.f32.mrf.mxu1 }
0x118a   : > { %3858 = vst [vmem:[#allocation3 + $0x8] sm:$0xf] %v3857_v31 }
0x118b   : > { %v6559_v34 = vpop.f32.mrf.mxu1 }
0x118d   : > { %v3899_v35 = vpop.f32.mrf.mxu1 }
0x118e   : > { %v3905_v24 = vmul.f32 0.088388346, %v3899_v35 }
0x118f   : > { %v6564_v62 = vpop.f32.mrf.mxu1 }
0x1190   : > { %v3906_v36 = vsel %vm2080_vm1, %v3905_v24, -inf }
0x1191   : > { %3907 = vmax.xlane.f32.xlu1 %v3906_v36  ;;  %v3902_v38 = vpop.f32.mrf.mxu1  ;;  %v4002_v36 = vld [vmem:[%s9093_s17] sm:$0x3] }
0x1192   : > { %v4007_v38 = vrot.slane %v4002_v36, %v8207_v12 }
0x1193   : > { %v6565_v39 = vpop.f32.mrf.mxu1 }
0x1194   : > { %v4011_v39 = vrot.slane %v4002_v36, %v8228_v49 }
0x1195   : > { %3697 = vadd.xlane.f32.xlu1 %v3696_v37 }
0x121a   : > { %v3908_v40 = vpop.xlane.xlu1 %3907 }
0x121b   : > { %v3909_v41 = vsub.f32 %v3905_v24, %v3908_v40  ;;  %v7049_v24 = vld [vmem:[#allocation3] ss:$8 sps:$4 sm:$0xff]  }
0x121d   : > { %v3910_v42 = vmul.f32 1.442695, %v3909_v41 }
0x121e   : > { %v3698_v43 = vpop.xlane.xlu1 %3697 }
0x121f   : > { %7274 = vpow2.f32 %v3910_v42 }
0x1220   : > { %7276 = vrcp.f32 %v3698_v43 }
0x122c   : > { %v7275_v44 = vpop.eup %7274 }
0x122d   : > { %v7277_v45 = vpop.eup %7276  ;;  %v3912_v47 = vsel %vm2080_vm1, %v7275_v44, 0.0  ;;  %v3915_v48 = vpack.c.bf16 %v7275_v44, %v7275_v44 }
0x122e   : > { %v3747_v51 = vmul.f32 %v7277_v45, %v8552_v50  ;;  %3913 = vadd.xlane.f32.xlu1 %v3912_v47  ;;  %v7012_v50 = vld [vmem:[%s9091_s14 + $0x44] ss:$8 sps:$4 sm:$0xff]  }
0x122f   : > { %6569 = vmatmul.mubr.msk.bf16.vlgmr.msra.gmra.mxu1 %vm2080_vm1, %v3915_v48  ;;  %4190 = vmatprep.subr.bf16.mxu0 %v7012_v50  ;;  %v7061_v50 = vld [vmem:[%s9094_s18 + $0xc8] ss:$16 sps:$4 sm:$0xff]  }
0x1230   : > { %v3748_v52 = vpack.c.bf16 %v3747_v51, %v3747_v51  ;;  %4191 = vmatpush1.bf16.msra.mxu0 %v7010_v58  ;;  %v7066_v58 = vld [vmem:[%s9094_s18 + $0xa4] ss:$16 sps:$4 sm:$0xff]  }
0x1231   : > { %4192 = vmatprep.subr.bf16.mxu0 %v7015_v59  ;;  %v7069_v59 = vld [vmem:[%s9094_s18 + $0xac] ss:$16 sps:$4 sm:$0xff]  }
0x1232   : > { %3749 = vst [vmem:[#allocation3 + $0x4] sm:$0xf] %v3748_v52 }
0x1234   : > { %4193 = vmatpush1.bf16.msra.mxu0 %v7013_v61  ;;  %v7064_v61 = vld [vmem:[%s9094_s18 + $0xa0] ss:$16 sps:$4 sm:$0xff]  }
0x1235   : > { %4194 = vmatprep.subr.bf16.mxu0 %v7018_v63  ;;  %v7067_v63 = vld [vmem:[%s9094_s18 + $0xa8] ss:$16 sps:$4 sm:$0xff]  }
0x1238   : > { %4195 = vmatpush1.bf16.msra.mxu0 %v7016_v6  ;;  %v7072_v6 = vld [vmem:[%s9094_s18 + $0x84] ss:$16 sps:$4 sm:$0xff]  }
0x1239   : > { %4196 = vmatprep.subr.bf16.mxu0 %v7021_v7  ;;  %v7075_v7 = vld [vmem:[%s9094_s18 + $0x8c] ss:$16 sps:$4 sm:$0xff]  }
0x123c   : > { %4197 = vmatpush1.bf16.msra.mxu0 %v7019_v9  ;;  %v7070_v9 = vld [vmem:[%s9094_s18 + $0x80] ss:$16 sps:$4 sm:$0xff]  }
0x123d   : > { %4198 = vmatprep.subr.bf16.mxu0 %v7024_v60  ;;  %v7073_v60 = vld [vmem:[%s9094_s18 + $0x88] ss:$16 sps:$4 sm:$0xff]  }
0x1240   : > { %4199 = vmatpush1.bf16.msra.mxu0 %v7022_v3  ;;  %v7078_v3 = vld [vmem:[%s9094_s18 + $0x64] ss:$16 sps:$4 sm:$0xff]  }
0x1241   : > { %4200 = vmatprep.subr.bf16.mxu0 %v7027_v10  ;;  %v7081_v10 = vld [vmem:[%s9094_s18 + $0x6c] ss:$16 sps:$4 sm:$0xff]  }
0x1244   : > { %4201 = vmatpush2.bf16.msra.mxu0 %v7025_v5  ;;  %v7076_v5 = vld [vmem:[%s9094_s18 + $0x60] ss:$16 sps:$4 sm:$0xff]  }
0x1245   : > { %4202 = vmatprep.subr.bf16.mxu0 %v7030_v11  ;;  %v7079_v11 = vld [vmem:[%s9094_s18 + $0x68] ss:$16 sps:$4 sm:$0xff]  }
0x1248   : > { %4203 = vmatpush2.bf16.msra.mxu0 %v7028_v14  ;;  %v7084_v14 = vld [vmem:[%s9094_s18 + $0x44] ss:$16 sps:$4 sm:$0xff]  }
0x1249   : > { %4204 = vmatprep.subr.bf16.mxu0 %v7033_v13  ;;  %v7087_v13 = vld [vmem:[%s9094_s18 + $0x4c] ss:$16 sps:$4 sm:$0xff]  }
0x124c   : > { %4205 = vmatpush2.bf16.msra.mxu0 %v7031_v16  ;;  %v7082_v16 = vld [vmem:[%s9094_s18 + $0x40] ss:$16 sps:$4 sm:$0xff]  }
0x124d   : > { %4206 = vmatprep.subr.bf16.mxu0 %v7036_v15  ;;  %v7085_v15 = vld [vmem:[%s9094_s18 + $0x48] ss:$16 sps:$4 sm:$0xff]  }
0x1250   : > { %4207 = vmatpush2.bf16.msra.mxu0 %v7034_v17  ;;  %v7090_v17 = vld [vmem:[%s9094_s18 + $0x24] ss:$16 sps:$4 sm:$0xff]  }
0x1251   : > { %4208 = vmatprep.subr.bf16.mxu0 %v7039_v19  ;;  %v7088_v19 = vld [vmem:[%s9094_s18 + $0x20] ss:$16 sps:$4 sm:$0xff]  }
0x1254   : > { %4209 = vmatpush2.bf16.msra.mxu0 %v7037_v18  ;;  %v7093_v18 = vld [vmem:[%s9094_s18 + $0x2c] ss:$16 sps:$4 sm:$0xff]  }
0x1255   : > { %4210 = vmatprep.subr.bf16.mxu0 %v7042_v21  ;;  %v7091_v21 = vld [vmem:[%s9094_s18 + $0x28] ss:$16 sps:$4 sm:$0xff]  }
0x1258   : > { %4211 = vmatpush2.bf16.msra.mxu0 %v7040_v22  ;;  %v7096_v22 = vld [vmem:[%s9094_s18 + $0x4] ss:$16 sps:$4 sm:$0xff]  }
0x1259   : > { %4212 = vmatprep.subr.bf16.mxu0 %v7045_v23  ;;  %v7099_v23 = vld [vmem:[%s9094_s18 + $0xc] ss:$16 sps:$4 sm:$0xff]  }
0x125c   : > { %4213 = vmatpush2.bf16.msra.mxu0 %v7043_v25  ;;  %v7094_v25 = vld [vmem:[%s9094_s18] ss:$16 sps:$4 sm:$0xff]  }
0x125d   : > { %4214 = vmatprep.subr.bf16.mxu0 %v7048_v26  ;;  %v7097_v26 = vld [vmem:[%s9094_s18 + $0x8] ss:$16 sps:$4 sm:$0xff]  }
0x1260   : > { %4215 = vmatpush2.bf16.msra.mxu0 %v7046_v27  ;;  %v7102_v27 = vld [vmem:[%s9094_s18 + $0x1e4] ss:$16 sps:$4 sm:$0xff]  }
0x1261   : > { %4746 = vmatprep.subr.bf16.mxu0 %v7057_v33  ;;  %v7129_v33 = vld [vmem:[%s9094_s18 + $0x16c] ss:$16 sps:$4 sm:$0xff]  }
0x12b7   : > { %v3914_v28 = vpop.xlane.xlu1 %3913 }
0x12b8   : > { %7278 = vrcp.f32 %v3914_v28  ;;  %v7105_v28 = vld [vmem:[%s9094_s18 + $0x1ec] ss:$16 sps:$4 sm:$0xff]  }
0x12c5   : > { %v7279_v20 = vpop.eup %7278 }
0x12ef   : > { %v3958_v29 = vpop.f32.mrf.mxu1 }
0x12f0   : > { %v3965_v30 = vmul.f32 %v7279_v20, %v3958_v29  ;;  %v7100_v20 = vld [vmem:[%s9094_s18 + $0x1e0] ss:$16 sps:$4 sm:$0xff]   ;;  %v7103_v29 = vld [vmem:[%s9094_s18 + $0x1e8] ss:$16 sps:$4 sm:$0xff]  }
0x12f1   : > { %v6570_v31 = vpop.f32.mrf.mxu1 }
0x12f2   : > { %v3966_v32 = vpack.c.bf16 %v3965_v30, %v3965_v30 }
0x12f3   : > { %v3961_v34 = vpop.f32.mrf.mxu1 }
0x12f4   : > { %3967 = vst [vmem:[#allocation3 + $0xc] sm:$0xf] %v3966_v32 }
0x12f5   : > { %v6571_v35 = vpop.f32.mrf.mxu1 }
0x12fb   : > { %v7051_v62 = vld [vmem:[#allocation3 + $0x4] ss:$8 sps:$4 sm:$0xff]  }
0x12fc   : > { %4216 = vmatprep.mubr.bf16.mxu0 %v7051_v62 }
0x12fd   : > { %4217 = vmatmul.mubr.bf16.vlgmr.msra.gmra.mxu0 %v7049_v24 }
0x12fe   : > { %4747 = vmatpush1.bf16.msra.mxu0 %v7055_v56  ;;  %v7126_v56 = vld [vmem:[%s9094_s18 + $0x164] ss:$16 sps:$4 sm:$0xff]  }
0x13bd   : > { %v4218_v37 = vpop.f32.mrf.mxu0 }
0x13be   : > { %v4219_v40 = vadd.f32 %v4218_v37, %v4007_v38 }
0x13bf   : > { %v4220_v41 = vpop.f32.mrf.mxu0 }
0x13c0   : > { %v4221_v42 = vadd.f32 %v4220_v41, %v4011_v39  ;;  %v8613_v44 = vadd.f32 %v4219_v40, %v8452_v2  ;;  %v7052_v2 = vld [vmem:[%s9094_s18 + $0xe0] ss:$16 sps:$4 sm:$0xff]  }
0x13c1   : > { %v4222_v43 = vpop.f32.mrf.mxu0  ;;  %4704 = vmatpush1.bf16.msra.mxu1 %v7052_v2  ;;  %v7118_v2 = vld [vmem:[%s9094_s18 + $0x180] ss:$16 sps:$4 sm:$0xff]  }
0x13c2   : > { %v8616_v45 = vadd.f32 %v4221_v42, %v8448_v1  ;;  %v4223_v47 = vadd.f32 %v4222_v43, %v4007_v38  ;;  %4705 = vmatprep.subr.bf16.mxu1 %v7060_v57  ;;  %v7106_v43 = vld [vmem:[%s9094_s18 + $0x1c0] ss:$16 sps:$4 sm:$0xff]  }
0x13c3   : > { %v4224_v48 = vpop.f32.mrf.mxu0  ;;  %v7124_v57 = vld [vmem:[%s9094_s18 + $0x160] ss:$16 sps:$4 sm:$0xff]  }
0x13c4   : > { %v4225_v51 = vadd.f32 %v4224_v48, %v4011_v39  ;;  %v4233_v52 = vadd.f32 %v8616_v45, %v8613_v44  ;;  %v8621_v53 = vadd.f32 %v4223_v47, %v8454_v4  ;;  %v7063_v4 = vld [vmem:[%s9094_s18 + $0xcc] ss:$16 sps:$4 sm:$0xff]   ;;  %v7112_v48 = vld [vmem:[%s9094_s18 + $0x1a0] ss:$16 sps:$4 sm:$0xff]  }
0x13c5   : > { %4748 = vmatprep.subr.bf16.mxu0 %v7063_v4  ;;  %v7111_v47 = vld [vmem:[%s9094_s18 + $0x1cc] ss:$16 sps:$4 sm:$0xff]   ;;  %v7127_v4 = vld [vmem:[%s9094_s18 + $0x168] ss:$16 sps:$4 sm:$0xff]  }
0x13c6   : > { %v8624_v54 = vadd.f32 %v4225_v51, %v8450_v0  ;;  %4234 = vadd.xlane.f32.xlu0 %v4233_v52  ;;  %v7058_v0 = vld [vmem:[%s9094_s18 + $0xc0] ss:$16 sps:$4 sm:$0xff]   ;;  %4749 = vmatpush1.bf16.msra.mxu0 %v7061_v50  ;;  %v7114_v51 = vld [vmem:[%s9094_s18 + $0x1a4] ss:$16 sps:$4 sm:$0xff]   ;;  %v7115_v52 = vld [vmem:[%s9094_s18 + $0x1a8] ss:$16 sps:$4 sm:$0xff]  }
0x13c7   : > { %4706 = vmatpush1.bf16.msra.mxu1 %v7058_v0  ;;  %4750 = vmatprep.subr.bf16.mxu0 %v7069_v59  ;;  %v7132_v0 = vld [vmem:[%s9094_s18 + $0x144] ss:$16 sps:$4 sm:$0xff]   ;;  %v7135_v50 = vld [vmem:[%s9094_s18 + $0x14c] ss:$16 sps:$4 sm:$0xff]   ;;  %v7133_v59 = vld [vmem:[%s9094_s18 + $0x148] ss:$16 sps:$4 sm:$0xff]  }
0x13c8   : > { %v4236_v1 = vadd.f32 %v8624_v54, %v8621_v53  ;;  %4707 = vmatprep.subr.bf16.mxu1 %v7066_v58  ;;  %v7130_v58 = vld [vmem:[%s9094_s18 + $0x140] ss:$16 sps:$4 sm:$0xff]  }
0x13ca   : > { %4237 = vadd.xlane.f32.xlu1 %v4236_v1  ;;  %4751 = vmatpush1.bf16.msra.mxu0 %v7067_v63  ;;  %v7123_v1 = vld [vmem:[%s9094_s18 + $0x18c] ss:$16 sps:$4 sm:$0xff]  }
0x13cb   : > { %4708 = vmatpush1.bf16.msra.mxu1 %v7064_v61  ;;  %4752 = vmatprep.subr.bf16.mxu0 %v7075_v7  ;;  %v7138_v61 = vld [vmem:[%s9094_s18 + $0x124] ss:$16 sps:$4 sm:$0xff]   ;;  %v7141_v63 = vld [vmem:[%s9094_s18 + $0x12c] ss:$16 sps:$4 sm:$0xff]   ;;  %v7139_v7 = vld [vmem:[%s9094_s18 + $0x128] ss:$16 sps:$4 sm:$0xff]  }
0x13cc   : > { %4709 = vmatprep.subr.bf16.mxu1 %v7072_v6  ;;  %v7136_v6 = vld [vmem:[%s9094_s18 + $0x120] ss:$16 sps:$4 sm:$0xff]  }
0x13ce   : > { %4753 = vmatpush1.bf16.msra.mxu0 %v7073_v60  ;;  %v7147_v60 = vld [vmem:[%s9094_s18 + $0x10c] ss:$16 sps:$4 sm:$0xff]  }
0x13cf   : > { %4710 = vmatpush1.bf16.msra.mxu1 %v7070_v9  ;;  %4754 = vmatprep.subr.bf16.mxu0 %v7081_v10  ;;  %v7144_v9 = vld [vmem:[%s9094_s18 + $0x104] ss:$16 sps:$4 sm:$0xff]   ;;  %v7145_v10 = vld [vmem:[%s9094_s18 + $0x108] ss:$16 sps:$4 sm:$0xff]  }
0x13d0   : > { %4711 = vmatprep.subr.bf16.mxu1 %v7078_v3  ;;  %v7142_v3 = vld [vmem:[%s9094_s18 + $0x100] ss:$16 sps:$4 sm:$0xff]  }
0x13d2   : > { %4755 = vmatpush1.bf16.msra.mxu0 %v7079_v11  ;;  %v7153_v11 = vld [vmem:[%s9095_s25 + $0x174] ss:$8 sps:$4 sm:$0xff]  }
0x13d3   : > { %4712 = vmatpush1.bf16.msra.mxu1 %v7076_v5  ;;  %4756 = vmatprep.subr.bf16.mxu0 %v7087_v13  ;;  %v7150_v5 = vld [vmem:[%s9095_s25 + $0x74] ss:$8 sps:$4 sm:$0xff]  }
0x13d4   : > { %4713 = vmatprep.subr.bf16.mxu1 %v7084_v14 }
0x13d6   : > { %4757 = vmatpush1.bf16.msra.mxu0 %v7085_v15 }
0x13d7   : > { %4714 = vmatpush1.bf16.msra.mxu1 %v7082_v16  ;;  %4758 = vmatprep.subr.bf16.mxu0 %v7093_v18 }
0x13d8   : > { %4715 = vmatprep.subr.bf16.mxu1 %v7090_v17 }
0x13da   : > { %4759 = vmatpush1.bf16.msra.mxu0 %v7091_v21 }
0x13db   : > { %4716 = vmatpush1.bf16.msra.mxu1 %v7088_v19  ;;  %4760 = vmatprep.subr.bf16.mxu0 %v7099_v23  ;;  %v4231_v19 = vld [vmem:[%s1212_s2] sm:$0x3] }
0x13dc   : > { %4717 = vmatprep.subr.bf16.mxu1 %v7096_v22  ;;  %v4232_v22 = vld [vmem:[%s1216_s28] sm:$0x3] }
0x13de   : > { %4761 = vmatpush1.bf16.msra.mxu0 %v7097_v26  ;;  %v4273_v26 = vrot.slane %v4231_v19, %v8228_v49 }
0x13df   : > { %4718 = vmatpush1.bf16.msra.mxu1 %v7094_v25  ;;  %4762 = vmatprep.subr.bf16.mxu0 %v7105_v28  ;;  %v4269_v25 = vrot.slane %v4231_v19, %v8207_v12  ;;  %v7210_v19 = vld [vmem:[%s9095_s25 + $0xd4] ss:$8 sps:$4 sm:$0xff]  }
0x13e0   : > { %4719 = vmatprep.subr.bf16.mxu1 %v7102_v27 }
0x13e2   : > { %4763 = vmatpush2.bf16.msra.mxu0 %v7103_v29  ;;  %v4288_v29 = vrot.slane %v4232_v22, %v8228_v49 }
0x13e3   : > { %4720 = vmatpush2.bf16.msra.mxu1 %v7100_v20  ;;  %4764 = vmatprep.subr.bf16.mxu0 %v7111_v47  ;;  %v4284_v20 = vrot.slane %v4232_v22, %v8207_v12  ;;  %v7157_v47 = vld [vmem:[%s9095_s25 + $0x160] ss:$8 sps:$4 sm:$0xff]   ;;  %v7208_v22 = vld [vmem:[%s9095_s25 + $0xd0] ss:$8 sps:$4 sm:$0xff]  }
0x144f   : > { %v4235_v30 = vpop.xlane.xlu0 %4234 }
0x1450   : > { %v4239_v31 = vmul.f32 0.00390625, %v4235_v30 }
0x1452   : > { %v8665_v32 = vsub.f32 %v8613_v44, %v4239_v31  ;;  %v8668_v34 = vsub.f32 %v8616_v45, %v4239_v31  ;;  %v7108_v44 = vld [vmem:[%s9094_s18 + $0x1c4] ss:$16 sps:$4 sm:$0xff]   ;;  %v7109_v45 = vld [vmem:[%s9094_s18 + $0x1c8] ss:$16 sps:$4 sm:$0xff]  }
0x1453   : > { %v4238_v35 = vpop.xlane.xlu1 %4237  ;;  %4721 = vmatprep.subr.bf16.mxu1 %v7108_v44  ;;  %4765 = vmatpush2.bf16.msra.mxu0 %v7109_v45  ;;  %v7159_v44 = vld [vmem:[%s9095_s25 + $0x164] ss:$8 sps:$4 sm:$0xff]   ;;  %v7154_v45 = vld [vmem:[%s9095_s25 + $0x60] ss:$8 sps:$4 sm:$0xff]  }
0x1454   : > { %v4240_v24 = vmul.f32 0.00390625, %v4238_v35  ;;  %v4245_v62 = vmul.f32 %v8665_v32, %v8665_v32  ;;  %v4246_v36 = vmul.f32 %v8668_v34, %v8668_v34  ;;  %4722 = vmatpush2.bf16.msra.mxu1 %v7106_v43  ;;  %v7156_v43 = vld [vmem:[%s9095_s25 + $0x64] ss:$8 sps:$4 sm:$0xff]  }
0x1455   : > { %4723 = vmatprep.subr.bf16.mxu1 %v7114_v51  ;;  %v7165_v51 = vld [vmem:[%s9095_s25 + $0x154] ss:$8 sps:$4 sm:$0xff]  }
0x1456   : > { %v8675_v38 = vsub.f32 %v8621_v53, %v4240_v24  ;;  %v8678_v39 = vsub.f32 %v8624_v54, %v4240_v24  ;;  %v4249_v37 = vadd.f32 %v4246_v36, %v4245_v62  ;;  %v7117_v53 = vld [vmem:[%s9094_s18 + $0x1ac] ss:$16 sps:$4 sm:$0xff]   ;;  %v7120_v54 = vld [vmem:[%s9094_s18 + $0x184] ss:$16 sps:$4 sm:$0xff]  }
0x1457   : > { %4766 = vmatprep.subr.bf16.mxu0 %v7117_v53  ;;  %v7163_v53 = vld [vmem:[%s9095_s25 + $0x150] ss:$8 sps:$4 sm:$0xff]  }
0x1458   : > { %4250 = vadd.xlane.f32.xlu0 %v4249_v37  ;;  %v4247_v40 = vmul.f32 %v8675_v38, %v8675_v38  ;;  %v4248_v41 = vmul.f32 %v8678_v39, %v8678_v39  ;;  %4724 = vmatpush2.bf16.msra.mxu1 %v7112_v48  ;;  %v7162_v48 = vld [vmem:[%s9095_s25 + $0x54] ss:$8 sps:$4 sm:$0xff]  }
0x1459   : > { %4767 = vmatpush2.bf16.msra.mxu0 %v7115_v52  ;;  %4725 = vmatprep.subr.bf16.mxu1 %v7120_v54  ;;  %v7160_v52 = vld [vmem:[%s9095_s25 + $0x50] ss:$8 sps:$4 sm:$0xff]   ;;  %v7168_v54 = vld [vmem:[%s9095_s25 + $0x44] ss:$8 sps:$4 sm:$0xff]  }
0x145a   : > { %v4252_v42 = vadd.f32 %v4248_v41, %v4247_v40  ;;  %4768 = vmatprep.subr.bf16.mxu0 %v7123_v1  ;;  %v7171_v1 = vld [vmem:[%s9095_s25 + $0x144] ss:$8 sps:$4 sm:$0xff]  }
0x145c   : > { %4253 = vadd.xlane.f32.xlu1 %v4252_v42  ;;  %4726 = vmatpush2.bf16.msra.mxu1 %v7118_v2  ;;  %v7151_v42 = vld [vmem:[%s9095_s25 + $0x170] ss:$8 sps:$4 sm:$0xff]   ;;  %v7166_v2 = vld [vmem:[%s9095_s25 + $0x40] ss:$8 sps:$4 sm:$0xff]  }
0x145d   : > { %4769 = vmatpush2.bf16.msra.mxu0 %v7121_v55  ;;  %4727 = vmatprep.subr.bf16.mxu1 %v7126_v56  ;;  %v7169_v55 = vld [vmem:[%s9095_s25 + $0x140] ss:$8 sps:$4 sm:$0xff]   ;;  %v7174_v56 = vld [vmem:[%s9095_s25 + $0x34] ss:$8 sps:$4 sm:$0xff]  }
0x145e   : > { %4770 = vmatprep.subr.bf16.mxu0 %v7129_v33  ;;  %v7177_v33 = vld [vmem:[%s9095_s25 + $0x134] ss:$8 sps:$4 sm:$0xff]  }
0x1460   : > { %4728 = vmatpush2.bf16.msra.mxu1 %v7124_v57  ;;  %v7172_v57 = vld [vmem:[%s9095_s25 + $0x30] ss:$8 sps:$4 sm:$0xff]  }
0x1461   : > { %4771 = vmatpush2.bf16.msra.mxu0 %v7127_v4  ;;  %4729 = vmatprep.subr.bf16.mxu1 %v7132_v0  ;;  %v7175_v4 = vld [vmem:[%s9095_s25 + $0x130] ss:$8 sps:$4 sm:$0xff]   ;;  %v7180_v0 = vld [vmem:[%s9095_s25 + $0x24] ss:$8 sps:$4 sm:$0xff]  }
0x1462   : > { %4772 = vmatprep.subr.bf16.mxu0 %v7135_v50  ;;  %v7183_v50 = vld [vmem:[%s9095_s25 + $0x124] ss:$8 sps:$4 sm:$0xff]  }
0x1464   : > { %4730 = vmatpush2.bf16.msra.mxu1 %v7130_v58  ;;  %v7178_v58 = vld [vmem:[%s9095_s25 + $0x20] ss:$8 sps:$4 sm:$0xff]  }
0x1465   : > { %4773 = vmatpush2.bf16.msra.mxu0 %v7133_v59  ;;  %4731 = vmatprep.subr.bf16.mxu1 %v7138_v61  ;;  %v7181_v59 = vld [vmem:[%s9095_s25 + $0x120] ss:$8 sps:$4 sm:$0xff]   ;;  %v7186_v61 = vld [vmem:[%s9095_s25 + $0x14] ss:$8 sps:$4 sm:$0xff]  }
0x1466   : > { %4774 = vmatprep.subr.bf16.mxu0 %v7141_v63  ;;  %v7189_v63 = vld [vmem:[%s9095_s25 + $0x114] ss:$8 sps:$4 sm:$0xff]  }
0x1468   : > { %4732 = vmatpush2.bf16.msra.mxu1 %v7136_v6  ;;  %v7184_v6 = vld [vmem:[%s9095_s25 + $0x10] ss:$8 sps:$4 sm:$0xff]  }
0x1469   : > { %4775 = vmatpush2.bf16.msra.mxu0 %v7139_v7  ;;  %4733 = vmatprep.subr.bf16.mxu1 %v7144_v9  ;;  %v7187_v7 = vld [vmem:[%s9095_s25 + $0x110] ss:$8 sps:$4 sm:$0xff]   ;;  %v7192_v9 = vld [vmem:[%s9095_s25 + $0x4] ss:$8 sps:$4 sm:$0xff]  }
0x146a   : > { %4776 = vmatprep.subr.bf16.mxu0 %v7147_v60  ;;  %v7195_v60 = vld [vmem:[%s9095_s25 + $0x104] ss:$8 sps:$4 sm:$0xff]  }
0x146c   : > { %4734 = vmatpush2.bf16.msra.mxu1 %v7142_v3  ;;  %v7190_v3 = vld [vmem:[%s9095_s25] ss:$8 sps:$4 sm:$0xff]  }
0x146d   : > { %4777 = vmatpush2.bf16.msra.mxu0 %v7145_v10  ;;  %5261 = vmatprep.subr.bf16.mxu1 %v7150_v5  ;;  %v7193_v10 = vld [vmem:[%s9095_s25 + $0x100] ss:$8 sps:$4 sm:$0xff]   ;;  %v7198_v5 = vld [vmem:[%s9095_s25 + $0xf4] ss:$8 sps:$4 sm:$0xff]  }
0x146e   : > { %5304 = vmatprep.subr.bf16.mxu0 %v7153_v11  ;;  %v7201_v11 = vld [vmem:[%s9095_s25 + $0x1f4] ss:$8 sps:$4 sm:$0xff]  }
0x14e1   : > { %v4251_v14 = vpop.xlane.xlu0 %4250 }
0x14e2   : > { %v4255_v13 = vmul.f32 0.00390625, %v4251_v14  ;;  %v7196_v14 = vld [vmem:[%s9095_s25 + $0xf0] ss:$8 sps:$4 sm:$0xff]  }
0x14e4   : > { %v4257_v16 = vadd.f32 1e-12, %v4255_v13  ;;  %v7199_v13 = vld [vmem:[%s9095_s25 + $0x1f0] ss:$8 sps:$4 sm:$0xff]  }
0x14e5   : > { %v4254_v15 = vpop.xlane.xlu1 %4253 }
0x14e6   : > { %7280 = vrsqrt.f32 %v4257_v16  ;;  %v4256_v17 = vmul.f32 0.00390625, %v4254_v15  ;;  %v7204_v16 = vld [vmem:[%s9095_s25 + $0xe4] ss:$8 sps:$4 sm:$0xff]  }
0x14e7   : > { %v7207_v15 = vld [vmem:[%s9095_s25 + $0x1e4] ss:$8 sps:$4 sm:$0xff]  }
0x14e8   : > { %v4258_v18 = vadd.f32 1e-12, %v4256_v17  ;;  %v7202_v17 = vld [vmem:[%s9095_s25 + $0xe0] ss:$8 sps:$4 sm:$0xff]  }
0x14ea   : > { %7282 = vrsqrt.f32 %v4258_v18  ;;  %v7205_v18 = vld [vmem:[%s9095_s25 + $0x1e0] ss:$8 sps:$4 sm:$0xff]  }
0x14f3   : > { %v7281_v21 = vpop.eup %7280 }
0x14f4   : > { %v4262_v23 = vmul.f32 %v7281_v21, %v8668_v34  ;;  %v4261_v27 = vmul.f32 %v7281_v21, %v8665_v32  ;;  %v7213_v21 = vld [vmem:[%s9095_s25 + $0x1d4] ss:$8 sps:$4 sm:$0xff]  }
0x14f6   : > { %v4277_v31 = vmul.f32 %v4273_v26, %v4262_v23  ;;  %v4276_v35 = vmul.f32 %v4269_v25, %v4261_v27  ;;  %v7211_v23 = vld [vmem:[%s9095_s25 + $0x1d0] ss:$8 sps:$4 sm:$0xff]   ;;  %v7214_v27 = vld [vmem:[%s9095_s25 + $0xc0] ss:$8 sps:$4 sm:$0xff]  }
0x14f7   : > { %v7283_v28 = vpop.eup %7282 }
0x14f8   : > { %v4264_v30 = vmul.f32 %v7283_v28, %v8678_v39  ;;  %v4263_v34 = vmul.f32 %v7283_v28, %v8675_v38  ;;  %v8732_v36 = vadd.f32 %v4288_v29, %v4277_v31  ;;  %v8736_v37 = vadd.f32 %v4284_v20, %v4276_v35  ;;  %v7148_v39 = vld [vmem:[%s9095_s25 + $0x70] ss:$8 sps:$4 sm:$0xff]   ;;  %v7217_v28 = vld [vmem:[%s9095_s25 + $0x1c0] ss:$8 sps:$4 sm:$0xff]   ;;  %v7231_v35 = vld [vmem:[%s9095_s25 + $0x1a4] ss:$8 sps:$4 sm:$0xff]  }
0x14f9   : > { %v7223_v31 = vld [vmem:[%s9095_s25 + $0x1b0] ss:$8 sps:$4 sm:$0xff]  }
0x14fa   : > { %v4279_v24 = vmul.f32 %v4273_v26, %v4264_v30  ;;  %v4278_v62 = vmul.f32 %v4269_v25, %v4263_v34  ;;  %v7216_v25 = vld [vmem:[%s9095_s25 + $0xc4] ss:$8 sps:$4 sm:$0xff]   ;;  %v7220_v30 = vld [vmem:[%s9095_s25 + $0xb0] ss:$8 sps:$4 sm:$0xff]  }
0x14fb   : > { %v7219_v26 = vld [vmem:[%s9095_s25 + $0x1c4] ss:$8 sps:$4 sm:$0xff]  }
0x14fc   : > { %v8734_v32 = vadd.f32 %v4288_v29, %v4279_v24  ;;  %v8738_v40 = vadd.f32 %v4284_v20, %v4278_v62  ;;  %v7222_v20 = vld [vmem:[%s9095_s25 + $0xb4] ss:$8 sps:$4 sm:$0xff]   ;;  %v7228_v34 = vld [vmem:[%s9095_s25 + $0xa4] ss:$8 sps:$4 sm:$0xff]   ;;  %v7226_v24 = vld [vmem:[%s9095_s25 + $0xa0] ss:$8 sps:$4 sm:$0xff]  }
0x14fd   : > { %v7225_v29 = vld [vmem:[%s9095_s25 + $0x1b4] ss:$8 sps:$4 sm:$0xff]   ;;  %v7229_v62 = vld [vmem:[%s9095_s25 + $0x1a0] ss:$8 sps:$4 sm:$0xff]  }
0x14fe   : > { %v4296_v41 = vpack.c.bf16 %v8734_v32, %v8732_v36  ;;  %v4295_v38 = vpack.c.bf16 %v8738_v40, %v8736_v37 }
0x1500   : > { %4735 = vmatprep.mubr.bf16.mxu1 %v4296_v41  ;;  %4778 = vmatprep.mubr.bf16.mxu0 %v4296_v41  ;;  %v7234_v41 = vld [vmem:[%s9095_s25 + $0x94] ss:$8 sps:$4 sm:$0xff]  }
0x1501   : > { %4736 = vmatmul.mubr.bf16.vlgmr.msra.gmra.mxu1 %v4295_v38  ;;  %4779 = vmatmul.mubr.bf16.vlgmr.msra.gmra.mxu0 %v4295_v38  ;;  %v7237_v38 = vld [vmem:[%s9095_s25 + $0x194] ss:$8 sps:$4 sm:$0xff]  }
0x1502   : > { %5262 = vmatpush1.bf16.msra.mxu1 %v7148_v39  ;;  %5305 = vmatpush1.bf16.msra.mxu0 %v7151_v42  ;;  %v7232_v39 = vld [vmem:[%s9095_s25 + $0x90] ss:$8 sps:$4 sm:$0xff]  }
0x1503   : > { %5263 = vmatprep.subr.bf16.mxu1 %v7156_v43  ;;  %5306 = vmatprep.subr.bf16.mxu0 %v7159_v44  ;;  %v7235_v42 = vld [vmem:[%s9095_s25 + $0x190] ss:$8 sps:$4 sm:$0xff]   ;;  %v7240_v43 = vld [vmem:[%s9095_s25 + $0x84] ss:$8 sps:$4 sm:$0xff]  }
0x1504   : > { %v7243_v44 = vld [vmem:[%s9095_s25 + $0x184] ss:$8 sps:$4 sm:$0xff]  }
0x1506   : > { %5264 = vmatpush1.bf16.msra.mxu1 %v7154_v45  ;;  %5307 = vmatpush1.bf16.msra.mxu0 %v7157_v47  ;;  %v7238_v45 = vld [vmem:[%s9095_s25 + $0x80] ss:$8 sps:$4 sm:$0xff]  }
0x1507   : > { %5265 = vmatprep.subr.bf16.mxu1 %v7162_v48  ;;  %5308 = vmatprep.subr.bf16.mxu0 %v7165_v51  ;;  %v7241_v47 = vld [vmem:[%s9095_s25 + $0x180] ss:$8 sps:$4 sm:$0xff]  }
0x1508   : > { %v4361_v48 = vld [vmem:[%s8075_s22] sm:$0xf] }
0x1509   : > { %v4366_v51 = vrot.slane %v4361_v48, %v8207_v12 }
0x150a   : > { %5266 = vmatpush1.bf16.msra.mxu1 %v7160_v52  ;;  %5309 = vmatpush1.bf16.msra.mxu0 %v7163_v53  ;;  %v4374_v52 = vrot.slane %v4361_v48, %v8203_v8  ;;  %v4370_v53 = vrot.slane %v4361_v48, %v8228_v49 }
0x150b   : > { %5267 = vmatprep.subr.bf16.mxu1 %v7168_v54  ;;  %5310 = vmatprep.subr.bf16.mxu0 %v7171_v1  ;;  %v4378_v54 = vrot.slane %v4361_v48, %v8225_v46 }
0x150e   : > { %5268 = vmatpush1.bf16.msra.mxu1 %v7166_v2  ;;  %5311 = vmatpush1.bf16.msra.mxu0 %v7169_v55 }
0x150f   : > { %5269 = vmatprep.subr.bf16.mxu1 %v7174_v56  ;;  %5312 = vmatprep.subr.bf16.mxu0 %v7177_v33 }
0x1512   : > { %5270 = vmatpush1.bf16.msra.mxu1 %v7172_v57  ;;  %5313 = vmatpush1.bf16.msra.mxu0 %v7175_v4 }
0x1513   : > { %5271 = vmatprep.subr.bf16.mxu1 %v7180_v0  ;;  %5314 = vmatprep.subr.bf16.mxu0 %v7183_v50 }
0x1516   : > { %5272 = vmatpush1.bf16.msra.mxu1 %v7178_v58  ;;  %5315 = vmatpush1.bf16.msra.mxu0 %v7181_v59 }
0x1517   : > { %5273 = vmatprep.subr.bf16.mxu1 %v7186_v61  ;;  %5316 = vmatprep.subr.bf16.mxu0 %v7189_v63 }
0x151a   : > { %5274 = vmatpush1.bf16.msra.mxu1 %v7184_v6  ;;  %5317 = vmatpush1.bf16.msra.mxu0 %v7187_v7 }
0x151b   : > { %5275 = vmatprep.subr.bf16.mxu1 %v7192_v9  ;;  %5318 = vmatprep.subr.bf16.mxu0 %v7195_v60 }
0x151e   : > { %5276 = vmatpush1.bf16.msra.mxu1 %v7190_v3  ;;  %5319 = vmatpush1.bf16.msra.mxu0 %v7193_v10 }
0x151f   : > { %5277 = vmatprep.subr.bf16.mxu1 %v7198_v5  ;;  %5320 = vmatprep.subr.bf16.mxu0 %v7201_v11 }
0x1522   : > { %5278 = vmatpush2.bf16.msra.mxu1 %v7196_v14  ;;  %5321 = vmatpush2.bf16.msra.mxu0 %v7199_v13 }
0x1523   : > { %5279 = vmatprep.subr.bf16.mxu1 %v7204_v16  ;;  %5322 = vmatprep.subr.bf16.mxu0 %v7207_v15 }
0x1526   : > { %5280 = vmatpush2.bf16.msra.mxu1 %v7202_v17  ;;  %5323 = vmatpush2.bf16.msra.mxu0 %v7205_v18 }
0x1527   : > { %5281 = vmatprep.subr.bf16.mxu1 %v7210_v19  ;;  %5324 = vmatprep.subr.bf16.mxu0 %v7213_v21 }
0x152a   : > { %5282 = vmatpush2.bf16.msra.mxu1 %v7208_v22  ;;  %5325 = vmatpush2.bf16.msra.mxu0 %v7211_v23 }
0x152b   : > { %5283 = vmatprep.subr.bf16.mxu1 %v7216_v25  ;;  %5326 = vmatprep.subr.bf16.mxu0 %v7219_v26 }
0x152e   : > { %5284 = vmatpush2.bf16.msra.mxu1 %v7214_v27  ;;  %5327 = vmatpush2.bf16.msra.mxu0 %v7217_v28 }
0x152f   : > { %5285 = vmatprep.subr.bf16.mxu1 %v7222_v20  ;;  %5328 = vmatprep.subr.bf16.mxu0 %v7225_v29 }
0x1532   : > { %5286 = vmatpush2.bf16.msra.mxu1 %v7220_v30  ;;  %5329 = vmatpush2.bf16.msra.mxu0 %v7223_v31 }
0x1533   : > { %5287 = vmatprep.subr.bf16.mxu1 %v7228_v34  ;;  %5330 = vmatprep.subr.bf16.mxu0 %v7231_v35 }
0x1536   : > { %5288 = vmatpush2.bf16.msra.mxu1 %v7226_v24  ;;  %5331 = vmatpush2.bf16.msra.mxu0 %v7229_v62 }
0x1537   : > { %5289 = vmatprep.subr.bf16.mxu1 %v7234_v41  ;;  %5332 = vmatprep.subr.bf16.mxu0 %v7237_v38 }
0x153a   : > { %5290 = vmatpush2.bf16.msra.mxu1 %v7232_v39  ;;  %5333 = vmatpush2.bf16.msra.mxu0 %v7235_v42 }
0x153b   : > { %5291 = vmatprep.subr.bf16.mxu1 %v7240_v43  ;;  %5334 = vmatprep.subr.bf16.mxu0 %v7243_v44 }
0x153e   : > { %5292 = vmatpush2.bf16.msra.mxu1 %v7238_v45  ;;  %5335 = vmatpush2.bf16.msra.mxu0 %v7241_v47 }
0x15c1   : > { %v4737_v1 = vpop.f32.mrf.mxu1  ;;  %v4780_v2 = vpop.f32.mrf.mxu0 }
0x15c2   : > { %v8811_v55 = vadd.f32 %v4737_v1, %v4366_v51  ;;  %v8813_v56 = vadd.f32 %v4780_v2, %v4374_v52 }
0x15c3   : > { %v4739_v33 = vpop.f32.mrf.mxu1  ;;  %v4782_v57 = vpop.f32.mrf.mxu0 }
0x15c4   : > { %v4789_v4 = vmul.f32 %v8811_v55, %v8811_v55  ;;  %v4791_v0 = vmul.f32 %v8813_v56, %v8813_v56  ;;  %v8819_v50 = vadd.f32 %v4739_v33, %v4370_v53  ;;  %v8821_v8 = vadd.f32 %v4782_v57, %v4378_v54 }
0x15c5   : > { %v4741_v58 = vpop.f32.mrf.mxu1  ;;  %v4784_v46 = vpop.f32.mrf.mxu0 }
0x15c6   : > { %v4797_v59 = vmul.f32 %v4789_v4, %v8811_v55  ;;  %v4799_v61 = vmul.f32 %v4791_v0, %v8813_v56  ;;  %v4790_v63 = vmul.f32 %v8819_v50, %v8819_v50  ;;  %v4792_v6 = vmul.f32 %v8821_v8, %v8821_v8 }
0x15c7   : > { %v8829_v7 = vadd.f32 %v4741_v58, %v4366_v51  ;;  %v8831_v9 = vadd.f32 %v4784_v46, %v4374_v52  ;;  %v4743_v60 = vpop.f32.mrf.mxu1  ;;  %v4786_v3 = vpop.f32.mrf.mxu0 }
0x15c8   : > { %v4805_v10 = vmul.f32 0.044715, %v4797_v59  ;;  %v4807_v5 = vmul.f32 0.044715, %v4799_v61  ;;  %v4798_v11 = vmul.f32 %v4790_v63, %v8819_v50  ;;  %v4800_v14 = vmul.f32 %v4792_v6, %v8821_v8 }
0x15c9   : > { %v4793_v13 = vmul.f32 %v8829_v7, %v8829_v7  ;;  %v4795_v16 = vmul.f32 %v8831_v9, %v8831_v9  ;;  %v8839_v15 = vadd.f32 %v4743_v60, %v4370_v53  ;;  %v8841_v17 = vadd.f32 %v4786_v3, %v4378_v54 }
0x15ca   : > { %v4813_v18 = vadd.f32 %v4805_v10, %v8811_v55  ;;  %v4815_v19 = vadd.f32 %v4807_v5, %v8813_v56  ;;  %v4806_v21 = vmul.f32 0.044715, %v4798_v11  ;;  %v4808_v22 = vmul.f32 0.044715, %v4800_v14 }
0x15cb   : > { %v4801_v23 = vmul.f32 %v4793_v13, %v8829_v7  ;;  %v4803_v25 = vmul.f32 %v4795_v16, %v8831_v9  ;;  %v4794_v26 = vmul.f32 %v8839_v15, %v8839_v15  ;;  %v4796_v27 = vmul.f32 %v8841_v17, %v8841_v17 }
0x15cc   : > { %v4821_v28 = vmul.f32 0.7978846, %v4813_v18  ;;  %v4823_v20 = vmul.f32 0.7978846, %v4815_v19  ;;  %v4814_v29 = vadd.f32 %v4806_v21, %v8819_v50  ;;  %v4816_v30 = vadd.f32 %v4808_v22, %v8821_v8 }
0x15cd   : > { %v4809_v31 = vmul.f32 0.044715, %v4801_v23  ;;  %v4811_v34 = vmul.f32 0.044715, %v4803_v25  ;;  %v4802_v35 = vmul.f32 %v4794_v26, %v8839_v15  ;;  %v4804_v24 = vmul.f32 %v4796_v27, %v8841_v17 }
0x15ce   : > { %7284 = vtanh.f32 %v4821_v28  ;;  %v4822_v62 = vmul.f32 0.7978846, %v4814_v29  ;;  %v4824_v41 = vmul.f32 0.7978846, %v4816_v30 }
0x15cf   : > { %7286 = vtanh.f32 %v4823_v20  ;;  %v4817_v38 = vadd.f32 %v4809_v31, %v8829_v7  ;;  %v4819_v39 = vadd.f32 %v4811_v34, %v8831_v9  ;;  %v4810_v42 = vmul.f32 0.044715, %v4802_v35 }
0x15d0   : > { %7288 = vtanh.f32 %v4822_v62  ;;  %v4812_v43 = vmul.f32 0.044715, %v4804_v24 }
0x15d1   : > { %7290 = vtanh.f32 %v4824_v41  ;;  %v4825_v44 = vmul.f32 0.7978846, %v4817_v38  ;;  %v4827_v45 = vmul.f32 0.7978846, %v4819_v39  ;;  %v4818_v47 = vadd.f32 %v4810_v42, %v8839_v15 }
0x15d2   : > { %v4820_v48 = vadd.f32 %v4812_v43, %v8841_v17 }
0x15d3   : > { %7292 = vtanh.f32 %v4825_v44  ;;  %v4826_v51 = vmul.f32 0.7978846, %v4818_v47 }
0x15d4   : > { %7294 = vtanh.f32 %v4827_v45  ;;  %v4828_v52 = vmul.f32 0.7978846, %v4820_v48 }
0x15d5   : > { %7296 = vtanh.f32 %v4826_v51 }
0x15d6   : > { %7298 = vtanh.f32 %v4828_v52 }
0x15db   : > { %v7285_v53 = vpop.eup %7284 }
0x15dc   : > { %v7287_v54 = vpop.eup %7286  ;;  %v4837_v4 = vadd.f32 1.0, %v7285_v53 }
0x15dd   : > { %v7289_v1 = vpop.eup %7288  ;;  %v4839_v46 = vadd.f32 1.0, %v7287_v54 }
0x15de   : > { %v7291_v2 = vpop.eup %7290  ;;  %v4838_v33 = vadd.f32 1.0, %v7289_v1  ;;  %v4845_v5 = vmul.f32 0.5, %v4837_v4 }
0x15df   : > { %v4840_v0 = vadd.f32 1.0, %v7291_v2  ;;  %v4847_v16 = vmul.f32 0.5, %v4839_v46 }
0x15e0   : > { %v7293_v57 = vpop.eup %7292  ;;  %v4846_v10 = vmul.f32 0.5, %v4838_v33  ;;  %v4853_v26 = vmul.f32 %v4845_v5, %v8811_v55 }
0x15e1   : > { %v7295_v58 = vpop.eup %7294  ;;  %v4841_v59 = vadd.f32 1.0, %v7293_v57  ;;  %v4848_v13 = vmul.f32 0.5, %v4840_v0  ;;  %v4855_v20 = vmul.f32 %v4847_v16, %v8813_v56 }
0x15e2   : > { %v7297_v61 = vpop.eup %7296  ;;  %v4843_v63 = vadd.f32 1.0, %v7295_v58  ;;  %v4854_v23 = vmul.f32 %v4846_v10, %v8819_v50  ;;  %v4929_v50 = vld [vmem:[%s1224_s9] sm:$0x3] }
0x15e3   : > { %v7299_v6 = vpop.eup %7298  ;;  %v4849_v60 = vmul.f32 0.5, %v4841_v59  ;;  %v4842_v3 = vadd.f32 1.0, %v7297_v61  ;;  %v4856_v27 = vmul.f32 %v4848_v13, %v8821_v8  ;;  %v4934_v55 = vrot.slane %v4929_v50, %v8207_v12  ;;  %v5352_v13 = vld [vmem:[%s1232_s16] sm:$0x3]  ;;  %s9101_s16 = sld [smem:[#allocation32_spill]] (!%p6385_p0) }
0x15e4   : > { %v4851_v11 = vmul.f32 0.5, %v4843_v63  ;;  %v4844_v14 = vadd.f32 1.0, %v7299_v6  ;;  %v4938_v8 = vrot.slane %v4929_v50, %v8228_v49 }
0x15e5   : > { %v4850_v18 = vmul.f32 0.5, %v4842_v3  ;;  %v4857_v19 = vmul.f32 %v4849_v60, %v8829_v7 }
0x15e6   : > { %v4852_v21 = vmul.f32 0.5, %v4844_v14  ;;  %v4859_v22 = vmul.f32 %v4851_v11, %v8831_v9  ;;  %v5351_v14 = vld [vmem:[%s1228_s26] sm:$0x3] }
0x15e7   : > { %v4858_v25 = vmul.f32 %v4850_v18, %v8839_v15  ;;  %v4861_v31 = vpack.c.bf16 %v4857_v19, %v4853_v26  ;;  %v5389_v16 = vrot.slane %v5351_v14, %v8207_v12  ;;  %v5393_v18 = vrot.slane %v5351_v14, %v8228_v49 }
0x15e8   : > { %v4860_v28 = vmul.f32 %v4852_v21, %v8841_v17  ;;  %v4863_v7 = vpack.c.bf16 %v4859_v22, %v4855_v20  ;;  %v5404_v21 = vrot.slane %v5352_v13, %v8207_v12  ;;  %v5408_v22 = vrot.slane %v5352_v13, %v8228_v49 }
0x15e9   : > { %v4862_v29 = vpack.c.bf16 %v4858_v25, %v4854_v23 }
0x15ea   : > { %v4864_v30 = vpack.c.bf16 %v4860_v28, %v4856_v27 }
0x15eb   : > { %5293 = vmatprep.mubr.bf16.mxu1 %v4862_v29 }
0x15ec   : > { %5336 = vmatprep.mubr.bf16.mxu0 %v4864_v30  ;;  %5294 = vmatmul.mubr.bf16.vlgmr.msra.gmra.mxu1 %v4861_v31 }
0x15ed   : > { %5337 = vmatmul.mubr.bf16.vlgmr.msra.gmra.mxu0 %v4863_v7 }
0x16ac   : > { %v5295_v9 = vpop.f32.mrf.mxu1 }
0x16ad   : > { %v5296_v15 = vadd.f32 %v5295_v9, %v4934_v55  ;;  %v5338_v56 = vpop.f32.mrf.mxu0 }
0x16ae   : > { %v5297_v17 = vpop.f32.mrf.mxu1 }
0x16af   : > { %v5339_v34 = vadd.f32 %v5338_v56, %v5296_v15  ;;  %v5298_v35 = vadd.f32 %v5297_v17, %v4938_v8  ;;  %v5340_v24 = vpop.f32.mrf.mxu0 }
0x16b0   : > { %v5299_v62 = vpop.f32.mrf.mxu1 }
0x16b1   : > { %v5341_v41 = vadd.f32 %v5340_v24, %v5298_v35  ;;  %v5300_v38 = vadd.f32 %v5299_v62, %v4934_v55  ;;  %v5342_v39 = vpop.f32.mrf.mxu0  ;;  %v5347_v43 = vadd.f32 %v5339_v34, %v8736_v37 }
0x16b2   : > { %v5301_v42 = vpop.f32.mrf.mxu1 }
0x16b3   : > { %v5348_v44 = vadd.f32 %v5341_v41, %v8732_v36  ;;  %v5343_v45 = vadd.f32 %v5342_v39, %v5300_v38  ;;  %v5302_v47 = vadd.f32 %v5301_v42, %v4938_v8  ;;  %v5344_v48 = vpop.f32.mrf.mxu0 }
0x16b5   : > { %v5345_v51 = vadd.f32 %v5344_v48, %v5302_v47  ;;  %v5353_v52 = vadd.f32 %v5348_v44, %v5347_v43  ;;  %v5349_v53 = vadd.f32 %v5343_v45, %v8738_v40 }
0x16b7   : > { %v5350_v54 = vadd.f32 %v5345_v51, %v8734_v32  ;;  %5354 = vadd.xlane.f32.xlu0 %v5353_v52 }
0x16b9   : > { %v5356_v1 = vadd.f32 %v5350_v54, %v5349_v53 }
0x16bb   : > { %5357 = vadd.xlane.f32.xlu1 %v5356_v1 }
0x1740   : > { %v5355_v2 = vpop.xlane.xlu0 %5354 }
0x1741   : > { %v5359_v33 = vmul.f32 0.00390625, %v5355_v2 }
0x1743   : > { %v5361_v57 = vsub.f32 %v5347_v43, %v5359_v33  ;;  %v5362_v4 = vsub.f32 %v5348_v44, %v5359_v33 }
0x1744   : > { %v5358_v0 = vpop.xlane.xlu1 %5357 }
0x1745   : > { %v5360_v37 = vmul.f32 0.00390625, %v5358_v0  ;;  %v5365_v58 = vmul.f32 %v5361_v57, %v5361_v57  ;;  %v5366_v36 = vmul.f32 %v5362_v4, %v5362_v4 }
0x1747   : > { %v5363_v46 = vsub.f32 %v5349_v53, %v5360_v37  ;;  %v5364_v59 = vsub.f32 %v5350_v54, %v5360_v37  ;;  %v5369_v61 = vadd.f32 %v5366_v36, %v5365_v58 }
0x1749   : > { %5370 = vadd.xlane.f32.xlu0 %v5369_v61  ;;  %v5367_v40 = vmul.f32 %v5363_v46, %v5363_v46  ;;  %v5368_v63 = vmul.f32 %v5364_v59, %v5364_v59 }
0x174b   : > { %v5372_v32 = vadd.f32 %v5368_v63, %v5367_v40 }
0x174d   : > { %5373 = vadd.xlane.f32.xlu1 %v5372_v32 }
0x17d2   : > { %v5371_v6 = vpop.xlane.xlu0 %5370 }
0x17d3   : > { %v5375_v60 = vmul.f32 0.00390625, %v5371_v6 }
0x17d5   : > { %v5377_v3 = vadd.f32 1e-12, %v5375_v60 }
0x17d6   : > { %v5374_v10 = vpop.xlane.xlu1 %5373 }
0x17d7   : > { %7300 = vrsqrt.f32 %v5377_v3  ;;  %v5376_v5 = vmul.f32 0.00390625, %v5374_v10 }
0x17d9   : > { %v5378_v11 = vadd.f32 1e-12, %v5376_v5 }
0x17db   : > { %7302 = vrsqrt.f32 %v5378_v11 }
0x17e4   : > { %v7301_v19 = vpop.eup %7300 }
0x17e5   : > { %v5381_v23 = vmul.f32 %v7301_v19, %v5361_v57  ;;  %v5382_v25 = vmul.f32 %v7301_v19, %v5362_v4 }
0x17e7   : > { %v5396_v26 = vmul.f32 %v5389_v16, %v5381_v23  ;;  %v5397_v27 = vmul.f32 %v5393_v18, %v5382_v25 }
0x17e8   : > { %v7303_v28 = vpop.eup %7302 }
0x17e9   : > { %v5411_v20 = vadd.f32 %v5404_v21, %v5396_v26  ;;  %v5412_v29 = vadd.f32 %v5408_v22, %v5397_v27  ;;  %v5383_v30 = vmul.f32 %v7303_v28, %v5363_v46  ;;  %v5384_v31 = vmul.f32 %v7303_v28, %v5364_v59 }
0x17eb   : > { %5415 = vst [vmem:[#allocation2 + $0x10] sm:$0xff] %v5411_v20  ;;  %5416 = vst [vmem:[#allocation2] sm:$0xff] %v5412_v29  ;;  %v5398_v7 = vmul.f32 %v5389_v16, %v5383_v30  ;;  %v5399_v50 = vmul.f32 %v5393_v18, %v5384_v31  ;;  %5422 = sbr.rel (%p6385_p0) target bundleno = 6367 (0x18df), region = 156 }
0x17ed   : > { %v5413_v55 = vadd.f32 %v5404_v21, %v5398_v7  ;;  %v5414_v8 = vadd.f32 %v5408_v22, %v5399_v50 }
0x17ef   : > { %5417 = vst [vmem:[#allocation2 + $0x18] sm:$0xff] %v5413_v55  ;;  %5418 = vst [vmem:[#allocation2 + $0x8] sm:$0xff] %v5414_v8 }
0x17f0   : > { %v7308_v12 = vld [vmem:[%s9101_s16 + $0x78] sm:$0xff]   ;;  %v5424_v49 = vpack.c.bf16 %v5414_v8, %v5412_v29  ;;  %v7310_v15 = vld [vmem:[%s9101_s16 + $0x70] sm:$0xff]   ;;  %v7312_v17 = vld [vmem:[%s9101_s16 + $0x68] sm:$0xff]   ;;  %v5423_v47 = vpack.c.bf16 %v5413_v55, %v5411_v20 }
0x17f1   : > { %v7309_v9 = vld [vmem:[%s9101_s16 + $0x38] sm:$0xff]   ;;  %6454 = vmatprep.subr.bf16.mxu0 %v7308_v12  ;;  %v7311_v56 = vld [vmem:[%s9101_s16 + $0x30] sm:$0xff]   ;;  %v7313_v34 = vld [vmem:[%s9101_s16 + $0x28] sm:$0xff]  }
0x17f2   : > { %5592 = vmatprep.mubr.bf16.mxu0 %v5424_v49  ;;  %6455 = vmatpush3.bf16.msra.mxu0 %v7309_v9  ;;  %v7314_v35 = vld [vmem:[%s9101_s16 + $0x60] sm:$0xff]   ;;  %v7316_v62 = vld [vmem:[%s9101_s16 + $0x58] sm:$0xff]   ;;  %v7318_v38 = vld [vmem:[%s9101_s16 + $0x50] sm:$0xff]  }
0x17f3   : > { %6456 = vmatprep.subr.bf16.mxu0 %v7310_v15  ;;  %v7315_v24 = vld [vmem:[%s9101_s16 + $0x20] sm:$0xff]   ;;  %v7317_v41 = vld [vmem:[%s9101_s16 + $0x18] sm:$0xff]   ;;  %v7319_v39 = vld [vmem:[%s9101_s16 + $0x10] sm:$0xff]  }
0x17f4   : > { %v7320_v42 = vld [vmem:[%s9101_s16 + $0x48] sm:$0xff]   ;;  %v7322_v44 = vld [vmem:[%s9101_s16 + $0x40] sm:$0xff]  }
0x17f5   : > { %v7321_v43 = vld [vmem:[%s9101_s16 + $0x8] sm:$0xff]   ;;  %v7323_v45 = vld [vmem:[%s9101_s16] sm:$0xff]  }
0x17f6   : > { %6457 = vmatpush3.bf16.msra.mxu0 %v7311_v56  ;;  %v6386_v54 = vld [vmem:[%s9102_s23] ss:$0 sm:$0xff] }
0x17f7   : > { %6458 = vmatprep.subr.bf16.mxu0 %v7312_v17 }
0x17fa   : > { %6459 = vmatpush3.bf16.msra.mxu0 %v7313_v34 }
0x17fb   : > { %6460 = vmatprep.subr.bf16.mxu0 %v7314_v35 }
0x17fe   : > { %6461 = vmatpush3.bf16.msra.mxu0 %v7315_v24 }
0x17ff   : > { %6462 = vmatprep.subr.bf16.mxu0 %v7316_v62 }
0x1802   : > { %6463 = vmatpush3.bf16.msra.mxu0 %v7317_v41 }
0x1803   : > { %6464 = vmatprep.subr.bf16.mxu0 %v7318_v38 }
0x1806   : > { %6465 = vmatpush3.bf16.msra.mxu0 %v7319_v39 }
0x1807   : > { %6466 = vmatprep.subr.bf16.mxu0 %v7320_v42 }
0x180a   : > { %6467 = vmatpush3.bf16.msra.mxu0 %v7321_v43 }
0x180b   : > { %6468 = vmatprep.subr.bf16.mxu0 %v7322_v44 }
0x180e   : > { %6469 = vmatpush3.bf16.msra.mxu0 %v7323_v45 }
0x1811   : > { %5593 = vmatmul.mubr.bf16.vlgmr.msra.gmra.mxu0 %v5423_v47 }
0x18d1   : > { %v6470_v48 = vpop.f32.mrf.mxu0 }
0x18d3   : > { %v6471_v51 = vpop.f32.mrf.mxu0 }
0x18d4   : > { %v6472_v53 = vadd.f32 %v6471_v51, %v6470_v48 }
0x18d5   : > { %v6473_v52 = vpop.f32.mrf.mxu0 }
0x18d6   : > { %v5595_v33 = vadd.f32 %v6472_v53, %v6386_v54 }
0x18d7   : > { %v6474_v1 = vpop.f32.mrf.mxu0 }
0x18d8   : > { %v6475_v2 = vadd.f32 %v6474_v1, %v6473_v52 }
0x18da   : > { %v5598_v57 = vadd.f32 %v6475_v2, %v6386_v54 }
0x18dc   : > { %v6420_v4 = vpack.c.bf16 %v5598_v57, %v5595_v33 }
0x18de   : > { %6421 = vst [vmem:[#allocation15] sm:$0xff] %v6420_v4  }
0x18df PF: > { %p6612_p1 = scmp.eq.s32.totalorder %s7739_s8, 1  ;;  %s7582_s30 = smov [#allocation15]  }
0x18e0   : > { %s5617_s17 = sshll.u32 %s7582_s30, 4  ;;  %s5618_s17 = int_to_ptr.vmem [resolvable:$true] %s5617_s17 }
0x18e1   : > { %s7492_s18 = scalar_lea.vmem %s5618_s17, 128  ;;  %p7499_p4 = scmp.lt.s32.totalorder %s5618_s17, %s5618_s17 }
0x18e2   : > { %p7493_p13 = scmp.ne.s32.totalorder %s5618_s17, %s7492_s18  ;;  %p7500_p5 = scmp.lt.s32.totalorder %s7492_s18, %s7492_s18 }
0x18e4   : > { %p7494_p2 = pnand %p7493_p13, %p6612_p1  ;;  %p7501_p6 = por %p7500_p5, %p7499_p4 }
0x18e6   : > { %p7495_p3 = pneg %p7494_p2 }
0x18e8   : > { %p7502_p9 = pnand %p7501_p6, %p7495_p3 }
0x18ea   : > { %7505 = shalt.err (!%p7502_p9)
}
0x18eb   : > { %s7583_s25 = smov 64   ;;  %s7584_s1 = smov 4  }
0x18ec   : > { %s9103_s10 = sld [smem:[#allocation53_spill]] }
0x18f2   : > { %6589 = dma.vmem_to_hbm [thread:$0]  (%p6612_p1), %s5618_s17, 128, %s9103_s10, [#allocation6], %s7583_s25, %s7583_s25, %s7584_s1  }
0x18f3   : > { %7549 = dma.done.wait (%p6612_p1), [#allocation6], 128  }
0x18f4   : > { %7551 = vsyncadd (%p6612_p1), [#allocation6], 4294967168 }
0x18f5 PF: > { %s9104_s28 = sld [smem:[#allocation23_spill]] }
0x18f6   : > { %s9105_s27 = sld [smem:[#allocation21_spill]] }
0x18f7   : > { %s9106_s3 = sld [smem:[#allocation22_spill]] }
0x18f8   : > { %s9107_s7 = sld [smem:[#allocation24_spill]] }
0x18fb   : > { %p46_p11 = scmp.ge.s32.totalorder %s9104_s28, 4  }
0x18fd   :  { %48 = sbr.rel (!%p46_p11) target bundleno = 37 (0x25), region = 272 }
0x1902   :  { %5633 = vsyncpa [#allocation5], 1 }
0x1903   :  { %5635 = vsyncpa [#allocation5 + $0x1], 1 }
0x1904   :  { %5636 = vsyncpa [#allocation8], 1 }
0x1905   :  { %5638 = vsyncpa [#allocation8 + $0x1], 1 }
0x1906   :  { %5639 = vsyncpa [#allocation11], 1 }
0x1907   :  { %5641 = vsyncpa [#allocation11 + $0x1], 1 }
0x1908   :  { %5642 = vsyncpa [#allocation14], 1 }
0x1909   :  { %5644 = vsyncpa [#allocation14 + $0x1], 1 }
0x190a   :  { %5645 = vsyncpa [#allocation6], 1 }
0x190b   :  { %5647 = vsyncpa [#allocation6 + $0x1], 1 }

</bundles_post_ra>
